<compile_context>
chip_gen: v5e
topology: v5e:2x2
jax: 0.10.0
libtpu: 0.0.40
codegen_flags: <defaults>
</compile_context>

<pallas_src>
import functools

import jax
import jax.numpy as jnp
from jax.experimental import pallas as pl
from jax.experimental.pallas import tpu as pltpu

BN_EPS = 1e-5
LANE = 128          # padded node-feature width (input / hidden dims)
EDGE_HID = 32       # edge-NN hidden width (true 32 -> K=32 MXU matmuls)
MLP_HID_P = 128     # padded MLP hidden width (true 64)
EDGE_TILE = 128     # edges processed per inner-loop step


def _round_up(n, m):
    return ((n + m - 1) // m) * m


def _onehot(cond, dt):
    # bool -> f32 (always supported) -> optional bf16 downcast for the MXU.
    oh = cond.astype(jnp.float32)
    return oh if dt == jnp.float32 else oh.astype(dt)


# -----------------------------------------------------------------------------
# Fused kernel: [NNConv + BN(eval) + ReLU] x L  ->  mean-pool  ->  MLP head
# -----------------------------------------------------------------------------
def fused_gnn_kernel(*refs, in_dims, edge_tile, n_edge_tiles, unroll, use_bf16):
    num_layers = len(in_dims)
    n_fixed = 8
    (x0_ref, ea_ref, src_ref, tgt_ref, dinv_ref,
     batch_ref, icnt_ref, edft_ref) = refs[:n_fixed]
    lrefs = refs[n_fixed:n_fixed + 7 * num_layers]
    (wm1a_ref, wm1b_ref, bm1_ref, wm2_ref, bm2_ref) = refs[
        n_fixed + 7 * num_layers:n_fixed + 7 * num_layers + 5]
    out_ref = refs[n_fixed + 7 * num_layers + 5]
    scratch = refs[n_fixed + 7 * num_layers + 6:]
    if use_bf16:
        h_a_ref, h_b_ref, xb_ref = scratch
    else:
        h_a_ref, h_b_ref = scratch
        xb_ref = None

    n_p, f_p = h_a_ref.shape
    b_p = out_ref.shape[0]
    oh_dt = jnp.bfloat16 if use_bf16 else jnp.float32

    # opt 2: build the gather/scatter index planes ONCE (reused by every edge
    # tile of every layer) instead of re-materializing them per iteration.
    col_ids = jax.lax.broadcasted_iota(jnp.int32, (edge_tile, n_p), 1)
    row_ids = jax.lax.broadcasted_iota(jnp.int32, (n_p, edge_tile), 0)

    def run_layer(x_in_ref, h_out_ref, li, in_d):
        (w1_ref, b1_ref, w2_ref, b2_ref, wr_ref, sc_ref, sh_ref) = \
            lrefs[7 * li:7 * li + 7]

        # bf16 shadow of the layer input: one cast per layer (not per tile);
        # the exact f32 values stay in x_in_ref for the root-weight term.
        if use_bf16:
            xb_ref[...] = x_in_ref[...].astype(jnp.bfloat16)

        # the layer-output scratch doubles as the scatter-mean accumulator.
        h_out_ref[...] = jnp.zeros_like(h_out_ref)

        def edge_tile_body(t, carry):
            e0 = pl.multiple_of(t * edge_tile, edge_tile)
            ea_t = ea_ref[pl.ds(e0, edge_tile), :]             # (TE, 1)  f32
            src_t = src_ref[pl.ds(e0, edge_tile), :]           # (TE, 1)  i32
            tgt_t = tgt_ref[pl.ds(t, 1), :]                    # (1, TE)  i32

            # edge NN Linear(1,32) + ReLU: K=1 linear as a VPU broadcast.
            hmid = jnp.maximum(ea_t * w1_ref[...] + b1_ref[...], 0.0)   # (TE,32)

            # gather x[src] via an in-kernel one-hot (no O(E*N) HBM matrix);
            # bf16 operands feed the MXU, accumulation stays f32.
            g_oh = _onehot(src_t == col_ids, oh_dt)             # (TE, N_P)
            x_operand = xb_ref[...] if use_bf16 else x_in_ref[...]
            x_src = jnp.dot(g_oh, x_operand,
                            preferred_element_type=jnp.float32)  # (TE, F_P) f32

            # opt 1: per-k (TE,32)x(32,F_P) matmuls straight from the w2 ref
            # (K=32, no 128 pad, no wide (TE, in_d*F_P) intermediate to spill).
            m = jnp.zeros((edge_tile, f_p), jnp.float32)
            for k in range(in_d):                               # tiny static unroll
                we_k = jnp.dot(hmid, w2_ref[:, k * f_p:(k + 1) * f_p],
                               preferred_element_type=jnp.float32)
                we_k = we_k + b2_ref[:, k * f_p:(k + 1) * f_p]
                m = m + x_src[:, k:k + 1] * we_k

            # scatter-add onto target nodes; padded edges carry tgt = -1 and
            # therefore hit an all-zero one-hot row -> contribute nothing.
            s_oh = _onehot(tgt_t == row_ids, oh_dt)             # (N_P, TE)
            h_out_ref[...] += jnp.dot(s_oh, m.astype(oh_dt),
                                      preferred_element_type=jnp.float32)
            return carry

        jax.lax.fori_loop(0, n_edge_tiles, edge_tile_body, 0, unroll=unroll)

        # mean aggregation + root weight + folded BatchNorm(eval) + ReLU.
        # NOTE: padded node rows (>= n_nodes) end up as relu(shift) != 0; this
        # is safe because src never points at them and batch_id = -1 excludes
        # them from pooling.
        y = h_out_ref[...] * dinv_ref[...] + jnp.dot(
            x_in_ref[...], wr_ref[...], preferred_element_type=jnp.float32)
        h_out_ref[...] = jnp.maximum(y * sc_ref[...] + sh_ref[...], 0.0)
        # dropout: identity in eval mode.

    # opt 8: ping-pong the two node-feature scratch buffers; the layer input is
    # always read from a ref (never carried as a live (N_P, F_P) value).
    h_refs = (h_a_ref, h_b_ref)
    x_in_ref = x0_ref
    for li, in_d in enumerate(in_dims):
        h_out_ref = h_refs[li % 2]
        run_layer(x_in_ref, h_out_ref, li, in_d)
        x_in_ref = h_out_ref

    # global_mean_pool with a one-hot over graph ids (f32: tiny vs edge work).
    g_ids = jax.lax.broadcasted_iota(jnp.int32, (b_p, n_p), 0)
    p_oh = (batch_ref[...] == g_ids).astype(jnp.float32) * icnt_ref[...]   # (B_P, N_P)
    pooled = jnp.dot(p_oh, x_in_ref[...], preferred_element_type=jnp.float32)

    # MLP head: concat([pooled, edft]) @ W1 == pooled @ W1[:H] + edft * W1[H]
    z = (jnp.dot(pooled, wm1a_ref[...], preferred_element_type=jnp.float32)
         + edft_ref[...] * wm1b_ref[...] + bm1_ref[...])
    z = jnp.maximum(z, 0.0)
    # final Linear(64, 1): VPU broadcast-mul + lane reduction (no N=1 MXU pass).
    out_ref[...] = jnp.sum(z * wm2_ref[...], axis=1, keepdims=True) + bm2_ref[...]


# -----------------------------------------------------------------------------
# Parameter construction (deterministic, "PyTorch layout")
# -----------------------------------------------------------------------------
def init_params(key, input_dim, hidden_dims):
    dims = [input_dim] + list(hidden_dims)
    layers = []
    for i in range(len(hidden_dims)):
        in_d, out_d = dims[i], dims[i + 1]
        key, *ks = jax.random.split(key, 9)
        layers.append(dict(
            w1=jax.random.normal(ks[0], (1, 32), jnp.float32) * 0.2,
            b1=jax.random.normal(ks[1], (1, 32), jnp.float32) * 0.1,
            w2=jax.random.normal(ks[2], (32, in_d * out_d), jnp.float32) * 0.1,
            b2=jax.random.normal(ks[3], (1, in_d * out_d), jnp.float32) * 0.05,
            wr=jax.random.normal(ks[4], (in_d, out_d), jnp.float32) * 0.2,
            br=jax.random.normal(ks[5], (1, out_d), jnp.float32) * 0.05,
            gamma=1.0 + 0.1 * jax.random.normal(ks[6], (1, out_d), jnp.float32),
            beta=0.1 * jax.random.normal(ks[7], (1, out_d), jnp.float32),
            mean=0.05 * jax.random.normal(key, (1, out_d), jnp.float32),
            var=jnp.abs(jax.random.normal(jax.random.fold_in(key, 7), (1, out_d),
                                          jnp.float32)) * 0.2 + 0.8,
        ))
    key, k1, k2, k3, k4 = jax.random.split(key, 5)
    h_last = hidden_dims[-1]
    return dict(
        layers=layers,
        w_mlp1=jax.random.normal(k1, (h_last + 1, 64), jnp.float32) * 0.15,
        b_mlp1=jax.random.normal(k2, (1, 64), jnp.float32) * 0.05,
        w_mlp2=jax.random.normal(k3, (64, 1), jnp.float32) * 0.15,
        b_mlp2=jax.random.normal(k4, (1, 1), jnp.float32) * 0.05,
    )


# -----------------------------------------------------------------------------
# Forward pass (Pallas)
# -----------------------------------------------------------------------------
def gnn_forward(params, x, edge_index, edge_attr, batch_vec, edft, hidden_dims,
                use_bf16_onehot=True):
    f32, i32 = jnp.float32, jnp.int32
    n_nodes, in0 = x.shape
    n_edges = edge_index.shape[1]
    n_graphs = edft.shape[0]
    dims = [in0] + list(hidden_dims)
    in_dims = tuple(int(d) for d in dims[:-1])

    f_p = _round_up(max(dims), LANE)
    n_p = _round_up(n_nodes, 8)
    e_p = _round_up(n_edges, EDGE_TILE)
    b_p = _round_up(n_graphs, 8)
    n_tiles = e_p // EDGE_TILE

    src, tgt = edge_index[0], edge_index[1]

    # --- padded graph tensors: index lists + per-node / per-graph scalars only
    #     (no O(E*N) one-hot ever hits HBM). ---
    x_p = jnp.zeros((n_p, f_p), f32).at[:n_nodes, :in0].set(x.astype(f32))
    ea_p = jnp.zeros((e_p, 1), f32).at[:n_edges, 0].set(edge_attr.reshape(-1).astype(f32))
    src_p = jnp.zeros((e_p, 1), i32).at[:n_edges, 0].set(src.astype(i32))
    tgt_p = (jnp.full((e_p,), -1, i32).at[:n_edges].set(tgt.astype(i32))
             .reshape(n_tiles, EDGE_TILE))
    deg = jnp.zeros((n_nodes,), f32).at[tgt].add(1.0)
    dinv = jnp.ones((n_p, 1), f32).at[:n_nodes, 0].set(1.0 / jnp.maximum(deg, 1.0))
    batch_p = jnp.full((1, n_p), -1, i32).at[0, :n_nodes].set(batch_vec.astype(i32))
    cnt = jnp.zeros((n_graphs,), f32).at[batch_vec].add(1.0)
    icnt = jnp.ones((b_p, 1), f32).at[:n_graphs, 0].set(1.0 / jnp.maximum(cnt, 1.0))
    edft_p = jnp.zeros((b_p, 1), f32).at[:n_graphs, 0].set(edft.astype(f32))

    # --- per-layer weights: K=32 edge NN (no 128 pad), output dims padded to
    #     128 lanes, BN(eval) + NNConv root bias folded into scale/shift. ---
    layer_args = []
    for i, lp in enumerate(params["layers"]):
        in_d, out_d = dims[i], dims[i + 1]
        w1 = lp["w1"].astype(f32)                                  # (1, 32)
        b1 = lp["b1"].astype(f32)                                  # (1, 32)
        w2 = jnp.pad(lp["w2"].reshape(EDGE_HID, in_d, out_d),
                     ((0, 0), (0, 0), (0, f_p - out_d))).reshape(EDGE_HID, in_d * f_p)
        b2 = jnp.pad(lp["b2"].reshape(1, in_d, out_d),
                     ((0, 0), (0, 0), (0, f_p - out_d))).reshape(1, in_d * f_p)
        wr = jnp.zeros((f_p, f_p), f32).at[:in_d, :out_d].set(lp["wr"])
        scale = lp["gamma"] * jax.lax.rsqrt(lp["var"] + BN_EPS)     # (1, out_d)
        shift = (lp["br"] - lp["mean"]) * scale + lp["beta"]        # (1, out_d)
        sc = jnp.zeros((1, f_p), f32).at[:, :out_d].set(scale)
        sh = jnp.zeros((1, f_p), f32).at[:, :out_d].set(shift)
        layer_args += [w1, b1, w2, b2, wr, sc, sh]

    h_last = dims[-1]
    w_m1a = jnp.zeros((f_p, MLP_HID_P), f32).at[:h_last, :64].set(params["w_mlp1"][:h_last])
    w_m1b = jnp.zeros((1, MLP_HID_P), f32).at[:, :64].set(params["w_mlp1"][h_last:h_last + 1])
    b_m1 = jnp.zeros((1, MLP_HID_P), f32).at[:, :64].set(params["b_mlp1"])
    w_m2 = jnp.zeros((1, MLP_HID_P), f32).at[:, :64].set(params["w_mlp2"].T)
    b_m2 = params["b_mlp2"].reshape(1, 1).astype(f32)

    inputs = ([x_p, ea_p, src_p, tgt_p, dinv, batch_p, icnt, edft_p]
              + layer_args + [w_m1a, w_m1b, b_m1, w_m2, b_m2])

    # --- scratch: two ping-pong node buffers (+ optional bf16 shadow) ---
    scratch_shapes = [pltpu.VMEM((n_p, f_p), f32), pltpu.VMEM((n_p, f_p), f32)]
    if use_bf16_onehot:
        scratch_shapes.append(pltpu.VMEM((n_p, f_p), jnp.bfloat16))

    # --- VMEM accounting (includes the 128x lane padding of (E,1) columns)
    #     and a clamp that respects v7x's 64 MiB/TC physical VMEM. ---
    def vmem_bytes(a):
        shp = a.shape
        r = _round_up(int(shp[-2]) if len(shp) >= 2 else 1, 8)
        c = _round_up(int(shp[-1]), 128)
        lead = 1
        for s in shp[:-2]:
            lead *= int(s)
        return lead * r * c * a.dtype.itemsize

    need = (sum(vmem_bytes(a) for a in inputs)
            + (8 + (2 if use_bf16_onehot else 0)) * n_p * f_p
            + b_p * 128 * 4)
    vmem_limit = int(max(min(max(2 * need, 32 * 1024 * 1024), 48 * 1024 * 1024),
                         need + 2 * 1024 * 1024))

    flops = 0
    for in_d in in_dims:
        flops += 2 * e_p * EDGE_HID * (1 + in_d * f_p)   # edge NN (K=32 per-k matmuls)
        flops += 4 * e_p * n_p * f_p                     # gather + scatter one-hot matmuls
        flops += 2 * e_p * in_d * f_p                    # per-edge message FMAs
        flops += 2 * n_p * f_p * f_p                     # root weight
    flops += 2 * b_p * n_p * f_p + 2 * b_p * f_p * MLP_HID_P + 2 * b_p * MLP_HID_P
    in_bytes = sum(int(a.size) * a.dtype.itemsize for a in inputs)
    cost = pl.CostEstimate(flops=int(flops), transcendentals=0,
                           bytes_accessed=int(in_bytes + b_p * 4))

    unroll = 2 if (n_tiles >= 2 and n_tiles % 2 == 0) else 1
    kern = functools.partial(fused_gnn_kernel, in_dims=in_dims,
                             edge_tile=EDGE_TILE, n_edge_tiles=n_tiles,
                             unroll=unroll, use_bf16=use_bf16_onehot)

    out = pl.pallas_call(
        kern,
        out_shape=jax.ShapeDtypeStruct((b_p, 1), f32),
        scratch_shapes=scratch_shapes,
        compiler_params=pltpu.CompilerParams(vmem_limit_bytes=vmem_limit),
        cost_estimate=cost,
    )(*inputs)
    return out[:n_graphs, 0]   # (B,)


# -----------------------------------------------------------------------------
# Pure-JAX reference (full f32 precision)
# -----------------------------------------------------------------------------
def gnn_forward_ref(params, x, edge_index, edge_attr, batch_vec, edft, hidden_dims):
    hp = jax.lax.Precision.HIGHEST
    src, tgt = edge_index[0], edge_index[1]
    n_nodes = x.shape[0]
    n_graphs = edft.shape[0]
    h = x
    dims = [x.shape[1]] + list(hidden_dims)
    for i, lp in enumerate(params["layers"]):
        in_d, out_d = dims[i], dims[i + 1]
        e = jax.nn.relu(jnp.dot(edge_attr, lp["w1"], precision=hp) + lp["b1"])
        we = (jnp.dot(e, lp["w2"], precision=hp) + lp["b2"]).reshape(-1, in_d, out_d)
        msg = jnp.einsum("ek,eko->eo", h[src], we, precision=hp)
        deg = jnp.zeros((n_nodes,), jnp.float32).at[tgt].add(1.0)
        agg = (jnp.zeros((n_nodes, out_d), jnp.float32).at[tgt].add(msg)
               / jnp.maximum(deg, 1.0)[:, None])
        y = agg + jnp.dot(h, lp["wr"], precision=hp) + lp["br"]
        y = (y - lp["mean"]) / jnp.sqrt(lp["var"] + BN_EPS) * lp["gamma"] + lp["beta"]
        h = jax.nn.relu(y)
    cnt = jnp.zeros((n_graphs,), jnp.float32).at[batch_vec].add(1.0)
    pooled = (jnp.zeros((n_graphs, h.shape[1]), jnp.float32).at[batch_vec].add(h)
              / jnp.maximum(cnt, 1.0)[:, None])
    z = jnp.concatenate([pooled, edft.reshape(-1, 1)], axis=1)
    z = jax.nn.relu(jnp.dot(z, params["w_mlp1"], precision=hp) + params["b_mlp1"])
    return (jnp.dot(z, params["w_mlp2"], precision=hp) + params["b_mlp2"])[:, 0]


# -----------------------------------------------------------------------------
if __name__ == "__main__":
    key = jax.random.PRNGKey(0)

    input_dim = 4
    hidden_dims = [8, 16]
    n_nodes, n_edges, n_graphs = 12, 24, 2

    k_x, k_ea, k_src, k_tgt, k_edft, k_p = jax.random.split(key, 6)
    x = jax.random.normal(k_x, (n_nodes, input_dim), jnp.float32)
    edge_attr = jax.random.normal(k_ea, (n_edges, 1), jnp.float32)
    src = jax.random.randint(k_src, (n_edges,), 0, n_nodes)
    tgt = jax.random.randint(k_tgt, (n_edges,), 0, n_nodes)
    edge_index = jnp.stack([src, tgt], axis=0)
    batch_vec = jnp.array([0] * 6 + [1] * 6, jnp.int32)
    edft = jax.random.normal(k_edft, (n_graphs,), jnp.float32)

    params = init_params(k_p, input_dim, hidden_dims)

    ref = gnn_forward_ref(params, x, edge_index, edge_attr, batch_vec, edft, hidden_dims)

    # exact path: f32 one-hot matmuls (tight check against the f32 reference)
    out_f32 = gnn_forward(params, x, edge_index, edge_attr, batch_vec, edft,
                          hidden_dims, use_bf16_onehot=False)
    out_f32 = jax.block_until_ready(out_f32)
    assert out_f32.shape == (n_graphs,)
    assert jnp.allclose(out_f32, ref, atol=2e-3, rtol=2e-3), (out_f32, ref)

    # fast path (default): bf16 one-hot / message MXU operands, f32 accumulate.
    # bf16 rounding of node features & messages introduces ~1e-2 relative error.
    out_bf16 = gnn_forward(params, x, edge_index, edge_attr, batch_vec, edft,
                           hidden_dims, use_bf16_onehot=True)
    out_bf16 = jax.block_until_ready(out_bf16)
    assert out_bf16.shape == (n_graphs,)
    assert jnp.allclose(out_bf16, ref, atol=3e-2, rtol=3e-2), (out_bf16, ref)

    print("KERNEL_OK")
</pallas_src>

<mosaic_0001>
module attributes {stable_mosaic.version = 11 : i64} {
  func.func @fused_gnn_kernel(%arg0: memref<16x128xf32, #tpu.memory_space<vmem>>, %arg1: memref<128x1xf32, #tpu.memory_space<vmem>>, %arg2: memref<128x1xi32, #tpu.memory_space<vmem>>, %arg3: memref<1x128xi32, #tpu.memory_space<vmem>>, %arg4: memref<16x1xf32, #tpu.memory_space<vmem>>, %arg5: memref<1x16xi32, #tpu.memory_space<vmem>>, %arg6: memref<8x1xf32, #tpu.memory_space<vmem>>, %arg7: memref<8x1xf32, #tpu.memory_space<vmem>>, %arg8: memref<1x32xf32, #tpu.memory_space<vmem>>, %arg9: memref<1x32xf32, #tpu.memory_space<vmem>>, %arg10: memref<32x512xf32, #tpu.memory_space<vmem>>, %arg11: memref<1x512xf32, #tpu.memory_space<vmem>>, %arg12: memref<128x128xf32, #tpu.memory_space<vmem>>, %arg13: memref<1x128xf32, #tpu.memory_space<vmem>>, %arg14: memref<1x128xf32, #tpu.memory_space<vmem>>, %arg15: memref<1x32xf32, #tpu.memory_space<vmem>>, %arg16: memref<1x32xf32, #tpu.memory_space<vmem>>, %arg17: memref<32x1024xf32, #tpu.memory_space<vmem>>, %arg18: memref<1x1024xf32, #tpu.memory_space<vmem>>, %arg19: memref<128x128xf32, #tpu.memory_space<vmem>>, %arg20: memref<1x128xf32, #tpu.memory_space<vmem>>, %arg21: memref<1x128xf32, #tpu.memory_space<vmem>>, %arg22: memref<128x128xf32, #tpu.memory_space<vmem>>, %arg23: memref<1x128xf32, #tpu.memory_space<vmem>>, %arg24: memref<1x128xf32, #tpu.memory_space<vmem>>, %arg25: memref<1x128xf32, #tpu.memory_space<vmem>>, %arg26: memref<1x1xf32, #tpu.memory_space<vmem>>, %arg27: memref<8x1xf32, #tpu.memory_space<vmem>>, %arg28: memref<16x128xf32, #tpu.memory_space<vmem>>, %arg29: memref<16x128xf32, #tpu.memory_space<vmem>>) attributes {dimension_semantics = [], scalar_prefetch = 0 : i64, scratch_operands = 2 : i64, tpu.core_type = #tpu.core_type<tc>} {
    %0 = tpu.iota {dimensions = array<i32: 1>} : vector<128x16xi32>
    %1 = tpu.iota {dimensions = array<i32: 0>} : vector<16x128xi32>
    %cst = arith.constant 0.000000e+00 : f32
    %2 = vector.broadcast %cst : f32 to vector<16x128xf32>
    %c0 = arith.constant 0 : index
    %c0_0 = arith.constant 0 : index
    %3 = vector.load %arg28[%c0, %c0_0] : memref<16x128xf32, #tpu.memory_space<vmem>>, vector<16x128xf32>
    tpu.vector_store %arg28[%c0, %c0_0], %2 {strides = array<i32>} : memref<16x128xf32, #tpu.memory_space<vmem>>, vector<16x128xf32>,
    %c0_i32 = arith.constant 0 : i32
    %c128_i32 = arith.constant 128 : i32
    %4 = arith.muli %c0_i32, %c128_i32 : i32
    %5 = tpu.assume_multiple %4, 128 : i32
    %6 = arith.index_cast %5 : i32 to index
    %c0_1 = arith.constant 0 : index
    %7 = vector.load %arg1[%6, %c0_1] : memref<128x1xf32, #tpu.memory_space<vmem>>, vector<128x1xf32>
    %8 = arith.index_cast %5 : i32 to index
    %c0_2 = arith.constant 0 : index
    %9 = vector.load %arg2[%8, %c0_2] : memref<128x1xi32, #tpu.memory_space<vmem>>, vector<128x1xi32>
    %10 = arith.index_cast %c0_i32 : i32 to index
    %c0_3 = arith.constant 0 : index
    %11 = vector.load %arg3[%10, %c0_3] : memref<1x128xi32, #tpu.memory_space<vmem>>, vector<1x128xi32>
    %c0_4 = arith.constant 0 : index
    %c0_5 = arith.constant 0 : index
    %12 = vector.load %arg8[%c0_4, %c0_5] : memref<1x32xf32, #tpu.memory_space<vmem>>, vector<1x32xf32>
    %13 = vector.broadcast %7 : vector<128x1xf32> to vector<128x32xf32>
    %14 = vector.broadcast %12 : vector<1x32xf32> to vector<128x32xf32>
    %15 = arith.mulf %13, %14 : vector<128x32xf32>
    %c0_6 = arith.constant 0 : index
    %c0_7 = arith.constant 0 : index
    %16 = vector.load %arg9[%c0_6, %c0_7] : memref<1x32xf32, #tpu.memory_space<vmem>>, vector<1x32xf32>
    %17 = vector.broadcast %16 : vector<1x32xf32> to vector<128x32xf32>
    %18 = arith.addf %15, %17 : vector<128x32xf32>
    %cst_8 = arith.constant 0.000000e+00 : f32
    %19 = vector.broadcast %cst_8 : f32 to vector<128x32xf32>
    %20 = arith.maximumf %18, %19 : vector<128x32xf32>
    %21 = vector.broadcast %9 : vector<128x1xi32> to vector<128x16xi32>
    %22 = arith.cmpi eq, %21, %0 : vector<128x16xi32>
    %23 = arith.extui %22 : vector<128x16xi1> to vector<128x16xi32>
    %24 = arith.sitofp %23 : vector<128x16xi32> to vector<128x16xf32>
    %c0_9 = arith.constant 0 : index
    %c0_10 = arith.constant 0 : index
    %25 = vector.load %arg0[%c0_9, %c0_10] : memref<16x128xf32, #tpu.memory_space<vmem>>, vector<16x128xf32>
    %cst_11 = arith.constant dense<0.000000e+00> : vector<128x128xf32>
    %26 = tpu.matmul %24, %25, %cst_11 {dimension_numbers = #tpu.dot_dimension_numbers<[1], [0], [0], [1], [0, 0, 1, 1], [], []>} : vector<128x16xf32>, vector<16x128xf32>, vector<128x128xf32> -> vector<128x128xf32>
    %cst_12 = arith.constant 0.000000e+00 : f32
    %27 = vector.broadcast %cst_12 : f32 to vector<128x128xf32>
    %c0_13 = arith.constant 0 : index
    %c0_14 = arith.constant 0 : index
    %28 = vector.load %arg10[%c0_13, %c0_14] : memref<32x512xf32, #tpu.memory_space<vmem>>, vector<32x128xf32>
    %cst_15 = arith.constant dense<0.000000e+00> : vector<128x128xf32>
    %29 = tpu.matmul %20, %28, %cst_15 {dimension_numbers = #tpu.dot_dimension_numbers<[1], [0], [0], [1], [0, 0, 1, 1], [], []>} : vector<128x32xf32>, vector<32x128xf32>, vector<128x128xf32> -> vector<128x128xf32>
    %c0_16 = arith.constant 0 : index
    %c0_17 = arith.constant 0 : index
    %30 = vector.load %arg11[%c0_16, %c0_17] : memref<1x512xf32, #tpu.memory_space<vmem>>, vector<1x128xf32>
    %31 = vector.broadcast %30 : vector<1x128xf32> to vector<128x128xf32>
    %32 = arith.addf %29, %31 : vector<128x128xf32>
    %33 = vector.extract_strided_slice %26 {offsets = [0, 0], sizes = [128, 1], strides = [1, 1]} : vector<128x128xf32> to vector<128x1xf32>
    %34 = vector.broadcast %33 : vector<128x1xf32> to vector<128x128xf32>
    %35 = arith.mulf %34, %32 : vector<128x128xf32>
    %36 = arith.addf %27, %35 : vector<128x128xf32>
    %c0_18 = arith.constant 0 : index
    %c128 = arith.constant 128 : index
    %37 = vector.load %arg10[%c0_18, %c128] : memref<32x512xf32, #tpu.memory_space<vmem>>, vector<32x128xf32>
    %cst_19 = arith.constant dense<0.000000e+00> : vector<128x128xf32>
    %38 = tpu.matmul %20, %37, %cst_19 {dimension_numbers = #tpu.dot_dimension_numbers<[1], [0], [0], [1], [0, 0, 1, 1], [], []>} : vector<128x32xf32>, vector<32x128xf32>, vector<128x128xf32> -> vector<128x128xf32>
    %c0_20 = arith.constant 0 : index
    %c128_21 = arith.constant 128 : index
    %39 = vector.load %arg11[%c0_20, %c128_21] : memref<1x512xf32, #tpu.memory_space<vmem>>, vector<1x128xf32>
    %40 = vector.broadcast %39 : vector<1x128xf32> to vector<128x128xf32>
    %41 = arith.addf %38, %40 : vector<128x128xf32>
    %42 = vector.extract_strided_slice %26 {offsets = [0, 1], sizes = [128, 1], strides = [1, 1]} : vector<128x128xf32> to vector<128x1xf32>
    %43 = vector.broadcast %42 : vector<128x1xf32> to vector<128x128xf32>
    %44 = arith.mulf %43, %41 : vector<128x128xf32>
    %45 = arith.addf %36, %44 : vector<128x128xf32>
    %c0_22 = arith.constant 0 : index
    %c256 = arith.constant 256 : index
    %46 = vector.load %arg10[%c0_22, %c256] : memref<32x512xf32, #tpu.memory_space<vmem>>, vector<32x128xf32>
    %cst_23 = arith.constant dense<0.000000e+00> : vector<128x128xf32>
    %47 = tpu.matmul %20, %46, %cst_23 {dimension_numbers = #tpu.dot_dimension_numbers<[1], [0], [0], [1], [0, 0, 1, 1], [], []>} : vector<128x32xf32>, vector<32x128xf32>, vector<128x128xf32> -> vector<128x128xf32>
    %c0_24 = arith.constant 0 : index
    %c256_25 = arith.constant 256 : index
    %48 = vector.load %arg11[%c0_24, %c256_25] : memref<1x512xf32, #tpu.memory_space<vmem>>, vector<1x128xf32>
    %49 = vector.broadcast %48 : vector<1x128xf32> to vector<128x128xf32>
    %50 = arith.addf %47, %49 : vector<128x128xf32>
    %51 = vector.extract_strided_slice %26 {offsets = [0, 2], sizes = [128, 1], strides = [1, 1]} : vector<128x128xf32> to vector<128x1xf32>
    %52 = vector.broadcast %51 : vector<128x1xf32> to vector<128x128xf32>
    %53 = arith.mulf %52, %50 : vector<128x128xf32>
    %54 = arith.addf %45, %53 : vector<128x128xf32>
    %c0_26 = arith.constant 0 : index
    %c384 = arith.constant 384 : index
    %55 = vector.load %arg10[%c0_26, %c384] : memref<32x512xf32, #tpu.memory_space<vmem>>, vector<32x128xf32>
    %cst_27 = arith.constant dense<0.000000e+00> : vector<128x128xf32>
    %56 = tpu.matmul %20, %55, %cst_27 {dimension_numbers = #tpu.dot_dimension_numbers<[1], [0], [0], [1], [0, 0, 1, 1], [], []>} : vector<128x32xf32>, vector<32x128xf32>, vector<128x128xf32> -> vector<128x128xf32>
    %c0_28 = arith.constant 0 : index
    %c384_29 = arith.constant 384 : index
    %57 = vector.load %arg11[%c0_28, %c384_29] : memref<1x512xf32, #tpu.memory_space<vmem>>, vector<1x128xf32>
    %58 = vector.broadcast %57 : vector<1x128xf32> to vector<128x128xf32>
    %59 = arith.addf %56, %58 : vector<128x128xf32>
    %60 = vector.extract_strided_slice %26 {offsets = [0, 3], sizes = [128, 1], strides = [1, 1]} : vector<128x128xf32> to vector<128x1xf32>
    %61 = vector.broadcast %60 : vector<128x1xf32> to vector<128x128xf32>
    %62 = arith.mulf %61, %59 : vector<128x128xf32>
    %63 = arith.addf %54, %62 : vector<128x128xf32>
    %64 = vector.broadcast %11 : vector<1x128xi32> to vector<16x128xi32>
    %65 = arith.cmpi eq, %64, %1 : vector<16x128xi32>
    %66 = arith.extui %65 : vector<16x128xi1> to vector<16x128xi32>
    %67 = arith.sitofp %66 : vector<16x128xi32> to vector<16x128xf32>
    %c0_30 = arith.constant 0 : index
    %c0_31 = arith.constant 0 : index
    %68 = vector.load %arg28[%c0_30, %c0_31] : memref<16x128xf32, #tpu.memory_space<vmem>>, vector<16x128xf32>
    %cst_32 = arith.constant dense<0.000000e+00> : vector<16x128xf32>
    %69 = tpu.matmul %67, %63, %cst_32 {dimension_numbers = #tpu.dot_dimension_numbers<[1], [0], [0], [1], [0, 0, 1, 1], [], []>} : vector<16x128xf32>, vector<128x128xf32>, vector<16x128xf32> -> vector<16x128xf32>
    %70 = arith.addf %68, %69 : vector<16x128xf32>
    %c0_33 = arith.constant 0 : index
    %c0_34 = arith.constant 0 : index
    %71 = vector.load %arg28[%c0_33, %c0_34] : memref<16x128xf32, #tpu.memory_space<vmem>>, vector<16x128xf32>
    tpu.vector_store %arg28[%c0_33, %c0_34], %70 {strides = array<i32>} : memref<16x128xf32, #tpu.memory_space<vmem>>, vector<16x128xf32>,
    %c1_i32 = arith.constant 1 : i32
    %c0_35 = arith.constant 0 : index
    %c0_36 = arith.constant 0 : index
    %72 = vector.load %arg28[%c0_35, %c0_36] : memref<16x128xf32, #tpu.memory_space<vmem>>, vector<16x128xf32>
    %c0_37 = arith.constant 0 : index
    %c0_38 = arith.constant 0 : index
    %73 = vector.load %arg4[%c0_37, %c0_38] : memref<16x1xf32, #tpu.memory_space<vmem>>, vector<16x1xf32>
    %74 = vector.broadcast %73 : vector<16x1xf32> to vector<16x128xf32>
    %75 = arith.mulf %72, %74 : vector<16x128xf32>
    %c0_39 = arith.constant 0 : index
    %c0_40 = arith.constant 0 : index
    %76 = vector.load %arg0[%c0_39, %c0_40] : memref<16x128xf32, #tpu.memory_space<vmem>>, vector<16x128xf32>
    %c0_41 = arith.constant 0 : index
    %c0_42 = arith.constant 0 : index
    %77 = vector.load %arg12[%c0_41, %c0_42] : memref<128x128xf32, #tpu.memory_space<vmem>>, vector<128x128xf32>
    %cst_43 = arith.constant dense<0.000000e+00> : vector<16x128xf32>
    %78 = tpu.matmul %76, %77, %cst_43 {dimension_numbers = #tpu.dot_dimension_numbers<[1], [0], [0], [1], [0, 0, 1, 1], [], []>} : vector<16x128xf32>, vector<128x128xf32>, vector<16x128xf32> -> vector<16x128xf32>
    %79 = arith.addf %75, %78 : vector<16x128xf32>
    %c0_44 = arith.constant 0 : index
    %c0_45 = arith.constant 0 : index
    %80 = vector.load %arg13[%c0_44, %c0_45] : memref<1x128xf32, #tpu.memory_space<vmem>>, vector<1x128xf32>
    %81 = vector.broadcast %80 : vector<1x128xf32> to vector<16x128xf32>
    %82 = arith.mulf %79, %81 : vector<16x128xf32>
    %c0_46 = arith.constant 0 : index
    %c0_47 = arith.constant 0 : index
    %83 = vector.load %arg14[%c0_46, %c0_47] : memref<1x128xf32, #tpu.memory_space<vmem>>, vector<1x128xf32>
    %84 = vector.broadcast %83 : vector<1x128xf32> to vector<16x128xf32>
    %85 = arith.addf %82, %84 : vector<16x128xf32>
    %cst_48 = arith.constant 0.000000e+00 : f32
    %86 = vector.broadcast %cst_48 : f32 to vector<16x128xf32>
    %87 = arith.maximumf %85, %86 : vector<16x128xf32>
    %c0_49 = arith.constant 0 : index
    %c0_50 = arith.constant 0 : index
    %88 = vector.load %arg28[%c0_49, %c0_50] : memref<16x128xf32, #tpu.memory_space<vmem>>, vector<16x128xf32>
    tpu.vector_store %arg28[%c0_49, %c0_50], %87 {strides = array<i32>} : memref<16x128xf32, #tpu.memory_space<vmem>>, vector<16x128xf32>,
    %cst_51 = arith.constant 0.000000e+00 : f32
    %89 = vector.broadcast %cst_51 : f32 to vector<16x128xf32>
    %c0_52 = arith.constant 0 : index
    %c0_53 = arith.constant 0 : index
    %90 = vector.load %arg29[%c0_52, %c0_53] : memref<16x128xf32, #tpu.memory_space<vmem>>, vector<16x128xf32>
    tpu.vector_store %arg29[%c0_52, %c0_53], %89 {strides = array<i32>} : memref<16x128xf32, #tpu.memory_space<vmem>>, vector<16x128xf32>,
    %c0_i32_54 = arith.constant 0 : i32
    %c128_i32_55 = arith.constant 128 : i32
    %91 = arith.muli %c0_i32_54, %c128_i32_55 : i32
    %92 = tpu.assume_multiple %91, 128 : i32
    %93 = arith.index_cast %92 : i32 to index
    %c0_56 = arith.constant 0 : index
    %94 = vector.load %arg1[%93, %c0_56] : memref<128x1xf32, #tpu.memory_space<vmem>>, vector<128x1xf32>
    %95 = arith.index_cast %92 : i32 to index
    %c0_57 = arith.constant 0 : index
    %96 = vector.load %arg2[%95, %c0_57] : memref<128x1xi32, #tpu.memory_space<vmem>>, vector<128x1xi32>
    %97 = arith.index_cast %c0_i32_54 : i32 to index
    %c0_58 = arith.constant 0 : index
    %98 = vector.load %arg3[%97, %c0_58] : memref<1x128xi32, #tpu.memory_space<vmem>>, vector<1x128xi32>
    %c0_59 = arith.constant 0 : index
    %c0_60 = arith.constant 0 : index
    %99 = vector.load %arg15[%c0_59, %c0_60] : memref<1x32xf32, #tpu.memory_space<vmem>>, vector<1x32xf32>
    %100 = vector.broadcast %94 : vector<128x1xf32> to vector<128x32xf32>
    %101 = vector.broadcast %99 : vector<1x32xf32> to vector<128x32xf32>
    %102 = arith.mulf %100, %101 : vector<128x32xf32>
    %c0_61 = arith.constant 0 : index
    %c0_62 = arith.constant 0 : index
    %103 = vector.load %arg16[%c0_61, %c0_62] : memref<1x32xf32, #tpu.memory_space<vmem>>, vector<1x32xf32>
    %104 = vector.broadcast %103 : vector<1x32xf32> to vector<128x32xf32>
    %105 = arith.addf %102, %104 : vector<128x32xf32>
    %cst_63 = arith.constant 0.000000e+00 : f32
    %106 = vector.broadcast %cst_63 : f32 to vector<128x32xf32>
    %107 = arith.maximumf %105, %106 : vector<128x32xf32>
    %108 = vector.broadcast %96 : vector<128x1xi32> to vector<128x16xi32>
    %109 = arith.cmpi eq, %108, %0 : vector<128x16xi32>
    %110 = arith.extui %109 : vector<128x16xi1> to vector<128x16xi32>
    %111 = arith.sitofp %110 : vector<128x16xi32> to vector<128x16xf32>
    %c0_64 = arith.constant 0 : index
    %c0_65 = arith.constant 0 : index
    %112 = vector.load %arg28[%c0_64, %c0_65] : memref<16x128xf32, #tpu.memory_space<vmem>>, vector<16x128xf32>
    %cst_66 = arith.constant dense<0.000000e+00> : vector<128x128xf32>
    %113 = tpu.matmul %111, %112, %cst_66 {dimension_numbers = #tpu.dot_dimension_numbers<[1], [0], [0], [1], [0, 0, 1, 1], [], []>} : vector<128x16xf32>, vector<16x128xf32>, vector<128x128xf32> -> vector<128x128xf32>
    %cst_67 = arith.constant 0.000000e+00 : f32
    %114 = vector.broadcast %cst_67 : f32 to vector<128x128xf32>
    %c0_68 = arith.constant 0 : index
    %c0_69 = arith.constant 0 : index
    %115 = vector.load %arg17[%c0_68, %c0_69] : memref<32x1024xf32, #tpu.memory_space<vmem>>, vector<32x128xf32>
    %cst_70 = arith.constant dense<0.000000e+00> : vector<128x128xf32>
    %116 = tpu.matmul %107, %115, %cst_70 {dimension_numbers = #tpu.dot_dimension_numbers<[1], [0], [0], [1], [0, 0, 1, 1], [], []>} : vector<128x32xf32>, vector<32x128xf32>, vector<128x128xf32> -> vector<128x128xf32>
    %c0_71 = arith.constant 0 : index
    %c0_72 = arith.constant 0 : index
    %117 = vector.load %arg18[%c0_71, %c0_72] : memref<1x1024xf32, #tpu.memory_space<vmem>>, vector<1x128xf32>
    %118 = vector.broadcast %117 : vector<1x128xf32> to vector<128x128xf32>
    %119 = arith.addf %116, %118 : vector<128x128xf32>
    %120 = vector.extract_strided_slice %113 {offsets = [0, 0], sizes = [128, 1], strides = [1, 1]} : vector<128x128xf32> to vector<128x1xf32>
    %121 = vector.broadcast %120 : vector<128x1xf32> to vector<128x128xf32>
    %122 = arith.mulf %121, %119 : vector<128x128xf32>
    %123 = arith.addf %114, %122 : vector<128x128xf32>
    %c0_73 = arith.constant 0 : index
    %c128_74 = arith.constant 128 : index
    %124 = vector.load %arg17[%c0_73, %c128_74] : memref<32x1024xf32, #tpu.memory_space<vmem>>, vector<32x128xf32>
    %cst_75 = arith.constant dense<0.000000e+00> : vector<128x128xf32>
    %125 = tpu.matmul %107, %124, %cst_75 {dimension_numbers = #tpu.dot_dimension_numbers<[1], [0], [0], [1], [0, 0, 1, 1], [], []>} : vector<128x32xf32>, vector<32x128xf32>, vector<128x128xf32> -> vector<128x128xf32>
    %c0_76 = arith.constant 0 : index
    %c128_77 = arith.constant 128 : index
    %126 = vector.load %arg18[%c0_76, %c128_77] : memref<1x1024xf32, #tpu.memory_space<vmem>>, vector<1x128xf32>
    %127 = vector.broadcast %126 : vector<1x128xf32> to vector<128x128xf32>
    %128 = arith.addf %125, %127 : vector<128x128xf32>
    %129 = vector.extract_strided_slice %113 {offsets = [0, 1], sizes = [128, 1], strides = [1, 1]} : vector<128x128xf32> to vector<128x1xf32>
    %130 = vector.broadcast %129 : vector<128x1xf32> to vector<128x128xf32>
    %131 = arith.mulf %130, %128 : vector<128x128xf32>
    %132 = arith.addf %123, %131 : vector<128x128xf32>
    %c0_78 = arith.constant 0 : index
    %c256_79 = arith.constant 256 : index
    %133 = vector.load %arg17[%c0_78, %c256_79] : memref<32x1024xf32, #tpu.memory_space<vmem>>, vector<32x128xf32>
    %cst_80 = arith.constant dense<0.000000e+00> : vector<128x128xf32>
    %134 = tpu.matmul %107, %133, %cst_80 {dimension_numbers = #tpu.dot_dimension_numbers<[1], [0], [0], [1], [0, 0, 1, 1], [], []>} : vector<128x32xf32>, vector<32x128xf32>, vector<128x128xf32> -> vector<128x128xf32>
    %c0_81 = arith.constant 0 : index
    %c256_82 = arith.constant 256 : index
    %135 = vector.load %arg18[%c0_81, %c256_82] : memref<1x1024xf32, #tpu.memory_space<vmem>>, vector<1x128xf32>
    %136 = vector.broadcast %135 : vector<1x128xf32> to vector<128x128xf32>
    %137 = arith.addf %134, %136 : vector<128x128xf32>
    %138 = vector.extract_strided_slice %113 {offsets = [0, 2], sizes = [128, 1], strides = [1, 1]} : vector<128x128xf32> to vector<128x1xf32>
    %139 = vector.broadcast %138 : vector<128x1xf32> to vector<128x128xf32>
    %140 = arith.mulf %139, %137 : vector<128x128xf32>
    %141 = arith.addf %132, %140 : vector<128x128xf32>
    %c0_83 = arith.constant 0 : index
    %c384_84 = arith.constant 384 : index
    %142 = vector.load %arg17[%c0_83, %c384_84] : memref<32x1024xf32, #tpu.memory_space<vmem>>, vector<32x128xf32>
    %cst_85 = arith.constant dense<0.000000e+00> : vector<128x128xf32>
    %143 = tpu.matmul %107, %142, %cst_85 {dimension_numbers = #tpu.dot_dimension_numbers<[1], [0], [0], [1], [0, 0, 1, 1], [], []>} : vector<128x32xf32>, vector<32x128xf32>, vector<128x128xf32> -> vector<128x128xf32>
    %c0_86 = arith.constant 0 : index
    %c384_87 = arith.constant 384 : index
    %144 = vector.load %arg18[%c0_86, %c384_87] : memref<1x1024xf32, #tpu.memory_space<vmem>>, vector<1x128xf32>
    %145 = vector.broadcast %144 : vector<1x128xf32> to vector<128x128xf32>
    %146 = arith.addf %143, %145 : vector<128x128xf32>
    %147 = vector.extract_strided_slice %113 {offsets = [0, 3], sizes = [128, 1], strides = [1, 1]} : vector<128x128xf32> to vector<128x1xf32>
    %148 = vector.broadcast %147 : vector<128x1xf32> to vector<128x128xf32>
    %149 = arith.mulf %148, %146 : vector<128x128xf32>
    %150 = arith.addf %141, %149 : vector<128x128xf32>
    %c0_88 = arith.constant 0 : index
    %c512 = arith.constant 512 : index
    %151 = vector.load %arg17[%c0_88, %c512] : memref<32x1024xf32, #tpu.memory_space<vmem>>, vector<32x128xf32>
    %cst_89 = arith.constant dense<0.000000e+00> : vector<128x128xf32>
    %152 = tpu.matmul %107, %151, %cst_89 {dimension_numbers = #tpu.dot_dimension_numbers<[1], [0], [0], [1], [0, 0, 1, 1], [], []>} : vector<128x32xf32>, vector<32x128xf32>, vector<128x128xf32> -> vector<128x128xf32>
    %c0_90 = arith.constant 0 : index
    %c512_91 = arith.constant 512 : index
    %153 = vector.load %arg18[%c0_90, %c512_91] : memref<1x1024xf32, #tpu.memory_space<vmem>>, vector<1x128xf32>
    %154 = vector.broadcast %153 : vector<1x128xf32> to vector<128x128xf32>
    %155 = arith.addf %152, %154 : vector<128x128xf32>
    %156 = vector.extract_strided_slice %113 {offsets = [0, 4], sizes = [128, 1], strides = [1, 1]} : vector<128x128xf32> to vector<128x1xf32>
    %157 = vector.broadcast %156 : vector<128x1xf32> to vector<128x128xf32>
    %158 = arith.mulf %157, %155 : vector<128x128xf32>
    %159 = arith.addf %150, %158 : vector<128x128xf32>
    %c0_92 = arith.constant 0 : index
    %c640 = arith.constant 640 : index
    %160 = vector.load %arg17[%c0_92, %c640] : memref<32x1024xf32, #tpu.memory_space<vmem>>, vector<32x128xf32>
    %cst_93 = arith.constant dense<0.000000e+00> : vector<128x128xf32>
    %161 = tpu.matmul %107, %160, %cst_93 {dimension_numbers = #tpu.dot_dimension_numbers<[1], [0], [0], [1], [0, 0, 1, 1], [], []>} : vector<128x32xf32>, vector<32x128xf32>, vector<128x128xf32> -> vector<128x128xf32>
    %c0_94 = arith.constant 0 : index
    %c640_95 = arith.constant 640 : index
    %162 = vector.load %arg18[%c0_94, %c640_95] : memref<1x1024xf32, #tpu.memory_space<vmem>>, vector<1x128xf32>
    %163 = vector.broadcast %162 : vector<1x128xf32> to vector<128x128xf32>
    %164 = arith.addf %161, %163 : vector<128x128xf32>
    %165 = vector.extract_strided_slice %113 {offsets = [0, 5], sizes = [128, 1], strides = [1, 1]} : vector<128x128xf32> to vector<128x1xf32>
    %166 = vector.broadcast %165 : vector<128x1xf32> to vector<128x128xf32>
    %167 = arith.mulf %166, %164 : vector<128x128xf32>
    %168 = arith.addf %159, %167 : vector<128x128xf32>
    %c0_96 = arith.constant 0 : index
    %c768 = arith.constant 768 : index
    %169 = vector.load %arg17[%c0_96, %c768] : memref<32x1024xf32, #tpu.memory_space<vmem>>, vector<32x128xf32>
    %cst_97 = arith.constant dense<0.000000e+00> : vector<128x128xf32>
    %170 = tpu.matmul %107, %169, %cst_97 {dimension_numbers = #tpu.dot_dimension_numbers<[1], [0], [0], [1], [0, 0, 1, 1], [], []>} : vector<128x32xf32>, vector<32x128xf32>, vector<128x128xf32> -> vector<128x128xf32>
    %c0_98 = arith.constant 0 : index
    %c768_99 = arith.constant 768 : index
    %171 = vector.load %arg18[%c0_98, %c768_99] : memref<1x1024xf32, #tpu.memory_space<vmem>>, vector<1x128xf32>
    %172 = vector.broadcast %171 : vector<1x128xf32> to vector<128x128xf32>
    %173 = arith.addf %170, %172 : vector<128x128xf32>
    %174 = vector.extract_strided_slice %113 {offsets = [0, 6], sizes = [128, 1], strides = [1, 1]} : vector<128x128xf32> to vector<128x1xf32>
    %175 = vector.broadcast %174 : vector<128x1xf32> to vector<128x128xf32>
    %176 = arith.mulf %175, %173 : vector<128x128xf32>
    %177 = arith.addf %168, %176 : vector<128x128xf32>
    %c0_100 = arith.constant 0 : index
    %c896 = arith.constant 896 : index
    %178 = vector.load %arg17[%c0_100, %c896] : memref<32x1024xf32, #tpu.memory_space<vmem>>, vector<32x128xf32>
    %cst_101 = arith.constant dense<0.000000e+00> : vector<128x128xf32>
    %179 = tpu.matmul %107, %178, %cst_101 {dimension_numbers = #tpu.dot_dimension_numbers<[1], [0], [0], [1], [0, 0, 1, 1], [], []>} : vector<128x32xf32>, vector<32x128xf32>, vector<128x128xf32> -> vector<128x128xf32>
    %c0_102 = arith.constant 0 : index
    %c896_103 = arith.constant 896 : index
    %180 = vector.load %arg18[%c0_102, %c896_103] : memref<1x1024xf32, #tpu.memory_space<vmem>>, vector<1x128xf32>
    %181 = vector.broadcast %180 : vector<1x128xf32> to vector<128x128xf32>
    %182 = arith.addf %179, %181 : vector<128x128xf32>
    %183 = vector.extract_strided_slice %113 {offsets = [0, 7], sizes = [128, 1], strides = [1, 1]} : vector<128x128xf32> to vector<128x1xf32>
    %184 = vector.broadcast %183 : vector<128x1xf32> to vector<128x128xf32>
    %185 = arith.mulf %184, %182 : vector<128x128xf32>
    %186 = arith.addf %177, %185 : vector<128x128xf32>
    %187 = vector.broadcast %98 : vector<1x128xi32> to vector<16x128xi32>
    %188 = arith.cmpi eq, %187, %1 : vector<16x128xi32>
    %189 = arith.extui %188 : vector<16x128xi1> to vector<16x128xi32>
    %190 = arith.sitofp %189 : vector<16x128xi32> to vector<16x128xf32>
    %c0_104 = arith.constant 0 : index
    %c0_105 = arith.constant 0 : index
    %191 = vector.load %arg29[%c0_104, %c0_105] : memref<16x128xf32, #tpu.memory_space<vmem>>, vector<16x128xf32>
    %cst_106 = arith.constant dense<0.000000e+00> : vector<16x128xf32>
    %192 = tpu.matmul %190, %186, %cst_106 {dimension_numbers = #tpu.dot_dimension_numbers<[1], [0], [0], [1], [0, 0, 1, 1], [], []>} : vector<16x128xf32>, vector<128x128xf32>, vector<16x128xf32> -> vector<16x128xf32>
    %193 = arith.addf %191, %192 : vector<16x128xf32>
    %c0_107 = arith.constant 0 : index
    %c0_108 = arith.constant 0 : index
    %194 = vector.load %arg29[%c0_107, %c0_108] : memref<16x128xf32, #tpu.memory_space<vmem>>, vector<16x128xf32>
    tpu.vector_store %arg29[%c0_107, %c0_108], %193 {strides = array<i32>} : memref<16x128xf32, #tpu.memory_space<vmem>>, vector<16x128xf32>,
    %c1_i32_109 = arith.constant 1 : i32
    %c0_110 = arith.constant 0 : index
    %c0_111 = arith.constant 0 : index
    %195 = vector.load %arg29[%c0_110, %c0_111] : memref<16x128xf32, #tpu.memory_space<vmem>>, vector<16x128xf32>
    %c0_112 = arith.constant 0 : index
    %c0_113 = arith.constant 0 : index
    %196 = vector.load %arg4[%c0_112, %c0_113] : memref<16x1xf32, #tpu.memory_space<vmem>>, vector<16x1xf32>
    %197 = vector.broadcast %196 : vector<16x1xf32> to vector<16x128xf32>
    %198 = arith.mulf %195, %197 : vector<16x128xf32>
    %c0_114 = arith.constant 0 : index
    %c0_115 = arith.constant 0 : index
    %199 = vector.load %arg28[%c0_114, %c0_115] : memref<16x128xf32, #tpu.memory_space<vmem>>, vector<16x128xf32>
    %c0_116 = arith.constant 0 : index
    %c0_117 = arith.constant 0 : index
    %200 = vector.load %arg19[%c0_116, %c0_117] : memref<128x128xf32, #tpu.memory_space<vmem>>, vector<128x128xf32>
    %cst_118 = arith.constant dense<0.000000e+00> : vector<16x128xf32>
    %201 = tpu.matmul %199, %200, %cst_118 {dimension_numbers = #tpu.dot_dimension_numbers<[1], [0], [0], [1], [0, 0, 1, 1], [], []>} : vector<16x128xf32>, vector<128x128xf32>, vector<16x128xf32> -> vector<16x128xf32>
    %202 = arith.addf %198, %201 : vector<16x128xf32>
    %c0_119 = arith.constant 0 : index
    %c0_120 = arith.constant 0 : index
    %203 = vector.load %arg20[%c0_119, %c0_120] : memref<1x128xf32, #tpu.memory_space<vmem>>, vector<1x128xf32>
    %204 = vector.broadcast %203 : vector<1x128xf32> to vector<16x128xf32>
    %205 = arith.mulf %202, %204 : vector<16x128xf32>
    %c0_121 = arith.constant 0 : index
    %c0_122 = arith.constant 0 : index
    %206 = vector.load %arg21[%c0_121, %c0_122] : memref<1x128xf32, #tpu.memory_space<vmem>>, vector<1x128xf32>
    %207 = vector.broadcast %206 : vector<1x128xf32> to vector<16x128xf32>
    %208 = arith.addf %205, %207 : vector<16x128xf32>
    %cst_123 = arith.constant 0.000000e+00 : f32
    %209 = vector.broadcast %cst_123 : f32 to vector<16x128xf32>
    %210 = arith.maximumf %208, %209 : vector<16x128xf32>
    %c0_124 = arith.constant 0 : index
    %c0_125 = arith.constant 0 : index
    %211 = vector.load %arg29[%c0_124, %c0_125] : memref<16x128xf32, #tpu.memory_space<vmem>>, vector<16x128xf32>
    tpu.vector_store %arg29[%c0_124, %c0_125], %210 {strides = array<i32>} : memref<16x128xf32, #tpu.memory_space<vmem>>, vector<16x128xf32>,
    %212 = tpu.iota {dimensions = array<i32: 0>} : vector<8x16xi32>
    %c0_126 = arith.constant 0 : index
    %c0_127 = arith.constant 0 : index
    %213 = vector.load %arg5[%c0_126, %c0_127] : memref<1x16xi32, #tpu.memory_space<vmem>>, vector<1x16xi32>
    %214 = vector.broadcast %213 : vector<1x16xi32> to vector<8x16xi32>
    %215 = arith.cmpi eq, %214, %212 : vector<8x16xi32>
    %216 = arith.extui %215 : vector<8x16xi1> to vector<8x16xi32>
    %217 = arith.sitofp %216 : vector<8x16xi32> to vector<8x16xf32>
    %c0_128 = arith.constant 0 : index
    %c0_129 = arith.constant 0 : index
    %218 = vector.load %arg6[%c0_128, %c0_129] : memref<8x1xf32, #tpu.memory_space<vmem>>, vector<8x1xf32>
    %219 = vector.broadcast %218 : vector<8x1xf32> to vector<8x16xf32>
    %220 = arith.mulf %217, %219 : vector<8x16xf32>
    %c0_130 = arith.constant 0 : index
    %c0_131 = arith.constant 0 : index
    %221 = vector.load %arg29[%c0_130, %c0_131] : memref<16x128xf32, #tpu.memory_space<vmem>>, vector<16x128xf32>
    %cst_132 = arith.constant dense<0.000000e+00> : vector<8x128xf32>
    %222 = tpu.matmul %220, %221, %cst_132 {dimension_numbers = #tpu.dot_dimension_numbers<[1], [0], [0], [1], [0, 0, 1, 1], [], []>} : vector<8x16xf32>, vector<16x128xf32>, vector<8x128xf32> -> vector<8x128xf32>
    %c0_133 = arith.constant 0 : index
    %c0_134 = arith.constant 0 : index
    %223 = vector.load %arg22[%c0_133, %c0_134] : memref<128x128xf32, #tpu.memory_space<vmem>>, vector<128x128xf32>
    %cst_135 = arith.constant dense<0.000000e+00> : vector<8x128xf32>
    %224 = tpu.matmul %222, %223, %cst_135 {dimension_numbers = #tpu.dot_dimension_numbers<[1], [0], [0], [1], [0, 0, 1, 1], [], []>} : vector<8x128xf32>, vector<128x128xf32>, vector<8x128xf32> -> vector<8x128xf32>
    %c0_136 = arith.constant 0 : index
    %c0_137 = arith.constant 0 : index
    %225 = vector.load %arg7[%c0_136, %c0_137] : memref<8x1xf32, #tpu.memory_space<vmem>>, vector<8x1xf32>
    %c0_138 = arith.constant 0 : index
    %c0_139 = arith.constant 0 : index
    %226 = vector.load %arg23[%c0_138, %c0_139] : memref<1x128xf32, #tpu.memory_space<vmem>>, vector<1x128xf32>
    %227 = vector.broadcast %225 : vector<8x1xf32> to vector<8x128xf32>
    %228 = vector.broadcast %226 : vector<1x128xf32> to vector<8x128xf32>
    %229 = arith.mulf %227, %228 : vector<8x128xf32>
    %230 = arith.addf %224, %229 : vector<8x128xf32>
    %c0_140 = arith.constant 0 : index
    %c0_141 = arith.constant 0 : index
    %231 = vector.load %arg24[%c0_140, %c0_141] : memref<1x128xf32, #tpu.memory_space<vmem>>, vector<1x128xf32>
    %232 = vector.broadcast %231 : vector<1x128xf32> to vector<8x128xf32>
    %233 = arith.addf %230, %232 : vector<8x128xf32>
    %cst_142 = arith.constant 0.000000e+00 : f32
    %234 = vector.broadcast %cst_142 : f32 to vector<8x128xf32>
    %235 = arith.maximumf %233, %234 : vector<8x128xf32>
    %c0_143 = arith.constant 0 : index
    %c0_144 = arith.constant 0 : index
    %236 = vector.load %arg25[%c0_143, %c0_144] : memref<1x128xf32, #tpu.memory_space<vmem>>, vector<1x128xf32>
    %237 = vector.broadcast %236 : vector<1x128xf32> to vector<8x128xf32>
    %238 = arith.mulf %235, %237 : vector<8x128xf32>
    %cst_145 = arith.constant dense<0.000000e+00> : vector<8xf32>
    %239 = vector.multi_reduction <add>, %238, %cst_145 [1] : vector<8x128xf32> to vector<8xf32>
    %240 = vector.shape_cast %239 : vector<8xf32> to vector<8x1xf32>
    %c0_146 = arith.constant 0 : index
    %c0_147 = arith.constant 0 : index
    %241 = vector.load %arg26[%c0_146, %c0_147] : memref<1x1xf32, #tpu.memory_space<vmem>>, vector<1x1xf32>
    %242 = vector.broadcast %241 : vector<1x1xf32> to vector<8x1xf32>
    %243 = arith.addf %240, %242 : vector<8x1xf32>
    %c0_148 = arith.constant 0 : index
    %c0_149 = arith.constant 0 : index
    %244 = vector.load %arg27[%c0_148, %c0_149] : memref<8x1xf32, #tpu.memory_space<vmem>>, vector<8x1xf32>
    tpu.vector_store %arg27[%c0_148, %c0_149], %243 {strides = array<i32>} : memref<8x1xf32, #tpu.memory_space<vmem>>, vector<8x1xf32>,
    return
  }
}

</mosaic_0001>

<bundles_post_ra>
// kernel: tpu_custom_call.1
= control target key start
LH: loop header
LB: loop body
LE: loop exit
PB: predicated region body
PF: predicated region fallthrough
CT: control target
= control target key end

     0   :  { %s6682_s0 = inlined_call_operand.vmem [shape: f32[16,128], index: 0, kind: input, shape index: {}]   ;;  %s6683_s1 = inlined_call_operand.vmem [shape: f32[128,1], index: 1, kind: input, shape index: {}]   ;;  %s6684_s2 = inlined_call_operand.vmem [shape: s32[128,1], index: 2, kind: input, shape index: {}]   ;;  %s6685_s3 = inlined_call_operand.vmem [shape: s32[1,128], index: 3, kind: input, shape index: {}]   ;;  %s6686_s4 = inlined_call_operand.vmem [shape: f32[16,1], index: 4, kind: input, shape index: {}]   ;;  %s6687_s5 = inlined_call_operand.vmem [shape: s32[1,16], index: 5, kind: input, shape index: {}]   ;;  %s6688_s6 = inlined_call_operand.vmem [shape: f32[8,1], index: 6, kind: input, shape index: {}]   ;;  %s6689_s7 = inlined_call_operand.vmem [shape: f32[8,1], index: 7, kind: input, shape index: {}]   ;;  %s6690_s8 = inlined_call_operand.vmem [shape: f32[1,32], index: 8, kind: input, shape index: {}]   ;;  %s6691_s9 = inlined_call_operand.vmem [shape: f32[1,32], index: 9, kind: input, shape index: {}]   ;;  %s6692_s10 = inlined_call_operand.hbm [shape: f32[32,512], index: 10, kind: input, shape index: {}]   ;;  %s6693_s11 = inlined_call_operand.vmem [shape: f32[1,512], index: 11, kind: input, shape index: {}]   ;;  %s6694_s12 = inlined_call_operand.hbm [shape: f32[128,128], index: 12, kind: input, shape index: {}]   ;;  %s6695_s13 = inlined_call_operand.vmem [shape: f32[1,128], index: 13, kind: input, shape index: {}]   ;;  %s6696_s14 = inlined_call_operand.vmem [shape: f32[1,128], index: 14, kind: input, shape index: {}]   ;;  %s6697_s15 = inlined_call_operand.vmem [shape: f32[1,32], index: 15, kind: input, shape index: {}]   ;;  %s6698_s16 = inlined_call_operand.vmem [shape: f32[1,32], index: 16, kind: input, shape index: {}]   ;;  %s6699_s17 = inlined_call_operand.vmem [shape: f32[32,1024], index: 17, kind: input, shape index: {}]   ;;  %s6700_s18 = inlined_call_operand.vmem [shape: f32[1,1024], index: 18, kind: input, shape index: {}]   ;;  %s6701_s19 = inlined_call_operand.hbm [shape: f32[128,128], index: 19, kind: input, shape index: {}]   ;;  %s6702_s20 = inlined_call_operand.vmem [shape: f32[1,128], index: 20, kind: input, shape index: {}]   ;;  %s6703_s21 = inlined_call_operand.vmem [shape: f32[1,128], index: 21, kind: input, shape index: {}]   ;;  %s6704_s22 = inlined_call_operand.hbm [shape: f32[128,128], index: 22, kind: input, shape index: {}]   ;;  %s6705_s23 = inlined_call_operand.vmem [shape: f32[1,128], index: 23, kind: input, shape index: {}]   ;;  %s6706_s24 = inlined_call_operand.vmem [shape: f32[1,128], index: 24, kind: input, shape index: {}]   ;;  %s6707_s25 = inlined_call_operand.vmem [shape: f32[1,128], index: 25, kind: input, shape index: {}]   ;;  %s6708_s26 = inlined_call_operand.<no memory space> [shape: f32[1,1], index: 26, kind: input, shape index: {}]   ;;  %s6709_s27 = inlined_call_operand.vmem [shape: f32[8,1], index: 27, kind: output, shape index: {}]  }
   0x1   :  { %6766 = sst [smem:[#allocation70_spill]] %s6682_s0  ;;  %v32_v0 = vstv %s6708_s26 }
   0x2   :  { %6767 = sst [smem:[#allocation71_spill]] %s6683_s1  ;;  %33 = vst [vmem:[#allocation4] sm:$0x1] %v32_v0 }
   0x3   :  { %6768 = sst [smem:[#allocation72_spill]] %s6684_s2 }
   0x4   :  { %6769 = sst [smem:[#allocation73_spill]] %s6685_s3 }
   0x5   :  { %6770 = sst [smem:[#allocation74_spill]] %s6686_s4 }
   0x6   :  { %6771 = sst [smem:[#allocation75_spill]] %s6687_s5 }
   0x7   :  { %6772 = sst [smem:[#allocation76_spill]] %s6688_s6 }
   0x8   :  { %6773 = sst [smem:[#allocation77_spill]] %s6689_s7 }
   0x9   :  { %6774 = sst [smem:[#allocation78_spill]] %s6690_s8 }
   0xa   :  { %6775 = sst [smem:[#allocation79_spill]] %s6691_s9 }
   0xb   :  { %6776 = sst [smem:[#allocation80_spill]] %s6692_s10 }
   0xc   :  { %6777 = sst [smem:[#allocation81_spill]] %s6693_s11 }
   0xd   :  { %34 = vsyncpa [#allocation6], 0 }
   0xe   :  { %35 = vsyncpa [#allocation8], 0  ;;  %s76_s9 = sshll.u32 %s6694_s12, 4  ;;  %s77_s9 = int_to_ptr.hbm [resolvable:$true] %s76_s9 }
   0xf   :  { %36 = vsyncpa [#allocation11], 0  ;;  %s4023_s5 = smov [#allocation7]   ;;  %s6778_s29 = sld [smem:[#allocation80_spill]] }
  0x10   :  { %s78_s28 = sshll.u32 %s4023_s5, 4  ;;  %s4024_s6 = smov 128   ;;  %s79_s28 = int_to_ptr.vmem [resolvable:$true] %s78_s28 }
  0x11   :  { %s4025_s11 = smov 8   ;;  %s4026_s26 = smov [#allocation5]  }
  0x12   :  { %84 = dma.hbm_to_vmem [thread:$0]  %s77_s9, 2048, %s79_s28, [#allocation8], %s4024_s6, %s4024_s6, %s4025_s11  }
  0x13   :  { %s63_s2 = sshll.u32 %s4026_s26, 4  ;;  %s4027_s3 = smov 512   ;;  %s64_s2 = int_to_ptr.vmem [resolvable:$true] %s63_s2 }
  0x14   :  { %s4028_s7 = smov 32   ;;  %s101_s8 = sshll.u32 %s6701_s19, 4  ;;  %s102_s8 = int_to_ptr.hbm [resolvable:$true] %s101_s8 }
  0x15   :  { %s61_s1 = sshll.u32 %s6778_s29, 4  ;;  %s4029_s30 = smov [#allocation9]   ;;  %s62_s1 = int_to_ptr.hbm [resolvable:$true] %s61_s1 }
  0x16   :  { %69 = dma.hbm_to_vmem [thread:$0]  %s62_s1, 2048, %s64_s2, [#allocation6], %s4027_s3, %s4027_s3, %s4028_s7  }
  0x17   :  { %s103_s5 = sshll.u32 %s4029_s30, 4  ;;  %s118_s29 = sshll.u32 %s6704_s22, 4  ;;  %s104_s5 = int_to_ptr.vmem [resolvable:$true] %s103_s5  ;;  %s119_s29 = int_to_ptr.hbm [resolvable:$true] %s118_s29 }
  0x18   :  { %109 = dma.hbm_to_vmem [thread:$0]  %s102_s8, 2048, %s104_s5, [#allocation8], %s4024_s6, %s4024_s6, %s4025_s11  }
  0x19   :  { %s4030_s9 = smov [#allocation10]  }
  0x1a   :  { %s120_s28 = sshll.u32 %s4030_s9, 4  ;;  %s121_s28 = int_to_ptr.vmem [resolvable:$true] %s120_s28 }
  0x1b   :  { %126 = dma.hbm_to_vmem [thread:$0]  %s119_s29, 2048, %s121_s28, [#allocation11], %s4024_s6, %s4024_s6, %s4025_s11  }
  0x1c   :  { %4017 = dma.done.wait [#allocation6], 2048  }
  0x1d   :  { %4018 = vsyncadd [#allocation6], 4294965248 }
  0x1e   :  { %4019 = dma.done.wait [#allocation8], 4096  }
  0x1f   :  { %4020 = vsyncadd [#allocation8], 4294963200 }
  0x20   :  { %4021 = dma.done.wait [#allocation11], 2048  }
  0x21   :  { %4022 = vsyncadd [#allocation11], 4294965248  ;;  %v6721_v1 = vmov 0   ;;  %s6779_s1 = sld [smem:[#allocation72_spill]]  ;;  %v542_v34 = vld [vmem:[#allocation5 + $0x60] sm:$0xff]  ;;  %v6718_v37 = vlaneseq  ;;  %vm425_vm0 = vcmask 130048  }
  0x22   :  { %3703 = vset.pattern.permute.xlu2 %v6721_v1  ;;  %3702 = vset.pattern.permute.xlu1 %v6721_v1  ;;  %s6780_s6 = sld [smem:[#allocation71_spill]]  ;;  %v541_v38 = vld [vmem:[#allocation5 + $0x40] sm:$0xff]  ;;  %v6716_v43 = vmov 0.0   ;;  %v945_v46 = vld [vmem:[#allocation5 + $0x70] sm:$0xff]  ;;  %vm547_vm3 = vcmask 261120  }
  0x23   :  { %3701 = vset.pattern.permute.xlu0 %v6721_v1  ;;  %s6781_s30 = sld [smem:[#allocation70_spill]]  ;;  %608 = vmatpush.msra.mxu1 %v542_v34  ;;  %v540_v39 = vld [vmem:[#allocation5 + $0x20] sm:$0xff]  ;;  %v4302_v40 = vand.u32 127, %v6718_v37  ;;  %v944_v48 = vld [vmem:[#allocation5 + $0x50] sm:$0xff] }
  0x24   :  { %v539_v41 = vld [vmem:[#allocation5] sm:$0xff]  ;;  %3679 = vmatpush.msra.mxu3 %v945_v46  ;;  %v943_v49 = vld [vmem:[#allocation5 + $0x30] sm:$0xff]  ;;  %s6783_s11 = sld [smem:[#allocation78_spill]] }
  0x25   :  { %609 = vmatpush.msra.mxu1 %v541_v38  ;;  %6782 = vst [vmem:[#allocation15_spill] sm:$0xff] %v4302_v40  ;;  %v942_v50 = vld [vmem:[#allocation5 + $0x10] sm:$0xff]  ;;  %s6784_s12 = sld [smem:[#allocation79_spill]] }
  0x26   :  { %3680 = vmatpush.msra.mxu3 %v944_v48  ;;  %s6828_s5 = sld [smem:[#allocation81_spill]] }
  0x27   :  { %v174_v2 = vld [vmem:[%s6779_s1] sm:$0xff]  ;;  %v175_v5 = vld [vmem:[%s6779_s1 + $0x8] sm:$0xff]  ;;  %v177_v8 = vld [vmem:[%s6779_s1 + $0x18] sm:$0xff]  ;;  %610 = vmatpush.msra.mxu1 %v540_v39  ;;  %s7015_s22 = sld [smem:[#allocation76_spill]] }
  0x28   :  { %v160_v3 = vld [vmem:[%s6780_s6 + $0x10] sm:$0xff]  ;;  %v158_v4 = vld [vmem:[%s6780_s6] sm:$0xff]  ;;  %328 = vperm.xlu2 %3703, %v174_v2   ;;  %v161_v6 = vld [vmem:[%s6780_s6 + $0x18] sm:$0xff]  ;;  %3681 = vmatpush.msra.mxu3 %v943_v49 }
  0x29   :  { %204 = vperm.xlu1 %3702, %v160_v3   ;;  %194 = vperm.xlu0 %3701, %v158_v4   ;;  %v159_v7 = vld [vmem:[%s6780_s6 + $0x8] sm:$0xff]  ;;  %v162_v9 = vld [vmem:[%s6780_s6 + $0x20] sm:$0xff]  ;;  %v176_v10 = vld [vmem:[%s6779_s1 + $0x10] sm:$0xff] }
  0x2a   :  { %v163_v11 = vld [vmem:[%s6780_s6 + $0x28] sm:$0xff]  ;;  %v178_v13 = vld [vmem:[%s6779_s1 + $0x20] sm:$0xff]  ;;  %v181_v14 = vld [vmem:[%s6779_s1 + $0x38] sm:$0xff]  ;;  %611 = vmatpush.msra.mxu1 %v539_v41  ;;  %3682 = vmatpush.msra.mxu3 %v942_v50 }
  0x2b   :  { %v179_v12 = vld [vmem:[%s6779_s1 + $0x28] sm:$0xff]  ;;  %v186_v15 = vld [vmem:[%s6779_s1 + $0x60] sm:$0xff]  ;;  %v180_v16 = vld [vmem:[%s6779_s1 + $0x30] sm:$0xff] }
  0x2c   :  { %v188_v17 = vld [vmem:[%s6779_s1 + $0x70] sm:$0xff]  ;;  %v182_v18 = vld [vmem:[%s6779_s1 + $0x40] sm:$0xff]  ;;  %v187_v19 = vld [vmem:[%s6779_s1 + $0x68] sm:$0xff]  ;;  %962 = vmatpush.msrb.mxu1 %v945_v46 }
  0x2d   :  { %v184_v20 = vld [vmem:[%s6779_s1 + $0x50] sm:$0xff]  ;;  %v189_v21 = vld [vmem:[%s6779_s1 + $0x78] sm:$0xff]  ;;  %v183_v22 = vld [vmem:[%s6779_s1 + $0x48] sm:$0xff] }
  0x2e   :  { %v424_v23 = vld [vmem:[%s6781_s30 + $0x8] sm:$0xff]  ;;  %v165_v24 = vld [vmem:[%s6780_s6 + $0x38] sm:$0xff]  ;;  %v164_v25 = vld [vmem:[%s6780_s6 + $0x30] sm:$0xff]  ;;  %963 = vmatpush.msrb.mxu1 %v944_v48 }
  0x2f   :  { %488 = vmatpush.msra.mxu0 %v424_v23  ;;  %3677 = vmatpush.msra.mxu2 %v424_v23  ;;  %v185_v26 = vld [vmem:[%s6779_s1 + $0x58] sm:$0xff]  ;;  %v423_v27 = vld [vmem:[%s6781_s30] sm:$0xff]  ;;  %v168_v28 = vld [vmem:[%s6780_s6 + $0x50] sm:$0xff] }
  0x30   :  { %331 = vperm.xlu2 %3703, %v175_v5   ;;  %v167_v29 = vld [vmem:[%s6780_s6 + $0x48] sm:$0xff]  ;;  %v166_v30 = vld [vmem:[%s6780_s6 + $0x40] sm:$0xff]  ;;  %v169_v33 = vld [vmem:[%s6780_s6 + $0x58] sm:$0xff]  ;;  %964 = vmatpush.msrb.mxu1 %v943_v49 }
  0x31   :  { %209 = vperm.xlu1 %3702, %v161_v6   ;;  %199 = vperm.xlu0 %3701, %v159_v7   ;;  %v171_v31 = vld [vmem:[%s6780_s6 + $0x68] sm:$0xff]  ;;  %v170_v32 = vld [vmem:[%s6780_s6 + $0x60] sm:$0xff]  ;;  %v173_v35 = vld [vmem:[%s6780_s6 + $0x78] sm:$0xff] }
  0x32   :  { %489 = vmatpush.msra.mxu0 %v423_v27  ;;  %3678 = vmatpush.msra.mxu2 %v423_v27  ;;  %v172_v36 = vld [vmem:[%s6780_s6 + $0x70] sm:$0xff]  ;;  %v4313_v52 = vld [vmem:[%s6783_s11] ss:$0 sm:$0xff]  ;;  %s6908_s11 = sld [smem:[#allocation73_spill]] }
  0x33   :  { %965 = vmatpush.msrb.mxu1 %v942_v50  ;;  %v4318_v53 = vld [vmem:[%s6784_s12] ss:$0 sm:$0xff]  ;;  %s6834_s12 = sld [smem:[#allocation74_spill]] }
  0x34   :  { %v1114_v49 = vld [vmem:[#allocation5 + $0x78] sm:$0xff] }
  0x35   :  { %1131 = vmatpush.msrb.mxu0 %v1114_v49 }
  0x38   :  { %337 = vperm.xlu2 %3703, %v177_v8  }
  0x39   :  { %214 = vperm.xlu1 %3702, %v162_v9   ;;  %334 = vperm.xlu0 %3701, %v176_v10  }
  0x40   :  { %219 = vperm.xlu2 %3703, %v163_v11  }
  0x41   :  { %343 = vperm.xlu1 %3702, %v179_v12   ;;  %340 = vperm.xlu0 %3701, %v178_v13  }
  0x48   :  { %349 = vperm.xlu2 %3703, %v181_v14  }
  0x49   :  { %364 = vperm.xlu1 %3702, %v186_v15   ;;  %346 = vperm.xlu0 %3701, %v180_v16  }
  0x50   :  { %370 = vperm.xlu2 %3703, %v188_v17   ;;  %v776_v17 = vld [vmem:[#allocation5 + $0x68] sm:$0xff] }
  0x51   :  { %352 = vperm.xlu1 %3702, %v182_v18   ;;  %367 = vperm.xlu0 %3701, %v187_v19   ;;  %v775_v18 = vld [vmem:[#allocation5 + $0x48] sm:$0xff] }
  0x52   :  { %793 = vmatpush.msrb.mxu2 %v776_v17 }
  0x54   :  { %794 = vmatpush.msrb.mxu2 %v775_v18 }
  0x58   :  { %358 = vperm.xlu2 %3703, %v184_v20  }
  0x59   :  { %373 = vperm.xlu1 %3702, %v189_v21   ;;  %355 = vperm.xlu0 %3701, %v183_v22   ;;  %v774_v21 = vld [vmem:[#allocation5 + $0x28] sm:$0xff] }
  0x5a   :  { %795 = vmatpush.msrb.mxu2 %v774_v21 }
  0x60   :  { %229 = vperm.xlu2 %3703, %v165_v24  }
  0x61   :  { %224 = vperm.xlu1 %3702, %v164_v25   ;;  %361 = vperm.xlu0 %3701, %v185_v26   ;;  %v773_v26 = vld [vmem:[#allocation5 + $0x8] sm:$0xff] }
  0x62   :  { %796 = vmatpush.msrb.mxu2 %v773_v26 }
  0x68   :  { %244 = vperm.xlu2 %3703, %v168_v28  }
  0x69   :  { %239 = vperm.xlu1 %3702, %v167_v29   ;;  %234 = vperm.xlu0 %3701, %v166_v30  }
  0x70   :  { %259 = vperm.xlu2 %3703, %v171_v31  }
  0x71   :  { %254 = vperm.xlu1 %3702, %v170_v32   ;;  %249 = vperm.xlu0 %3701, %v169_v33  }
  0x79   :  { %269 = vperm.xlu1 %3702, %v173_v35   ;;  %264 = vperm.xlu0 %3701, %v172_v36  }
  0x82   :  { %v329_v42 = vpop.permute.xlu2 %328 }
  0x83   :  { %vm375_vm1 = vcmp.eq.s32.totalorder %v329_v42, %v4302_v40 }
  0x84   :  { %v3411_v44 = vsel %vm375_vm1, 1.0, %v6716_v43 }
  0x85   :  { %3427 = vmatmul.msk.f32.vlgmr.msra.gmra.mxu0 %vm425_vm0, %v3411_v44 }
  0x8a   :  { %v332_v45 = vpop.permute.xlu2 %331 }
  0x8b   :  { %vm376_vm2 = vcmp.eq.s32.totalorder %v332_v45, %v4302_v40 }
  0x8c   :  { %v3412_v47 = vsel %vm376_vm2, 1.0, %v6716_v43 }
  0x8d   :  { %3428 = vmatmul.msk.f32.gmra.mxu0 %vm425_vm0, %v3412_v47 }
  0x92   :  { %v338_v51 = vpop.permute.xlu2 %337 }
  0x93   :  { %vm378_vm5 = vcmp.eq.s32.totalorder %v338_v51, %v4302_v40 }
  0x94   :  { %v3414_v15 = vsel %vm378_vm5, 1.0, %v6716_v43 }
  0x9a   :  { %v220_v54 = vpop.permute.xlu2 %219 }
  0x9b   :  { %v205_v55 = vpop.permute.xlu1 %204  ;;  %v280_v56 = vmul.f32 %v4313_v52, %v220_v54  ;;  %v195_v57 = vpop.permute.xlu0 %194  ;;  %v1113_v54 = vld [vmem:[#allocation5 + $0x58] sm:$0xff] }
  0x9c   :  { %v275_v58 = vmul.f32 %v4313_v52, %v195_v57  ;;  %v277_v4 = vmul.f32 %v4313_v52, %v205_v55  ;;  %v1112_v55 = vld [vmem:[#allocation5 + $0x38] sm:$0xff]  ;;  %1132 = vmatpush.msrb.mxu0 %v1113_v54 }
  0x9d   :  { %v300_v59 = vadd.f32 %v4318_v53, %v280_v56 }
  0x9e   :  { %v295_v60 = vadd.f32 %v4318_v53, %v275_v58  ;;  %v297_v8 = vadd.f32 %v4318_v53, %v277_v4  ;;  %1133 = vmatpush.msrb.mxu0 %v1112_v55  ;;  %v1111_v58 = vld [vmem:[#allocation5 + $0x18] sm:$0xff] }
  0x9f   :  { %v4324_v61 = vmax.f32 %v300_v59, 0.0 }
  0xa0   :  { %v4326_v62 = vmax.f32 %v295_v60, 0.0  ;;  %v4343_v10 = vmax.f32 %v297_v8, 0.0  ;;  %1134 = vmatpush.msrb.mxu0 %v1111_v58 }
  0xa1   :  { %3480 = vmatmul.msk.f32.vlgmr.msra.gmra.mxu3 %vm547_vm3, %v4324_v61 }
  0xa2   :  { %3443 = vmatmul.msk.f32.vlgmr.msra.gmra.mxu1 %vm547_vm3, %v4326_v62  ;;  %v350_v16 = vpop.permute.xlu2 %349 }
  0xa3   :  { %v210_v63 = vpop.permute.xlu1 %209  ;;  %v200_v0 = vpop.permute.xlu0 %199  ;;  %vm382_vm12 = vcmp.eq.s32.totalorder %v350_v16, %v4302_v40 }
  0xa4   :  { %v276_v2 = vmul.f32 %v4313_v52, %v200_v0  ;;  %v278_v11 = vmul.f32 %v4313_v52, %v210_v63  ;;  %v3418_v47 = vsel %vm382_vm12, 1.0, %v6716_v43 }
  0xa6   :  { %v296_v3 = vadd.f32 %v4318_v53, %v276_v2  ;;  %v298_v14 = vadd.f32 %v4318_v53, %v278_v11  ;;  %v6719_v2 = vmov 1  }
  0xa7   :  { %3704 = vset.pattern.permute.xlu0 %v6719_v2  ;;  %3705 = vset.pattern.permute.xlu1 %v6719_v2 }
  0xa8   :  { %v4335_v5 = vmax.f32 %v296_v3, 0.0  ;;  %v4352_v19 = vmax.f32 %v298_v14, 0.0 }
  0xaa   :  { %3444 = vmatmul.msk.f32.gmra.mxu1 %vm547_vm3, %v4335_v5  ;;  %v371_v28 = vpop.permute.xlu2 %370 }
  0xab   :  { %v215_v6 = vpop.permute.xlu1 %214  ;;  %v335_v7 = vpop.permute.xlu0 %334  ;;  %vm389_vm10 = vcmp.eq.s32.totalorder %v371_v28, %v4302_v40 }
  0xac   :  { %vm377_vm4 = vcmp.eq.s32.totalorder %v335_v7, %v4302_v40  ;;  %v279_v20 = vmul.f32 %v4313_v52, %v215_v6  ;;  %v3425_v39 = vsel %vm389_vm10, 1.0, %v6716_v43 }
  0xad   :  { %v3413_v9 = vsel %vm377_vm4, 1.0, %v6716_v43 }
  0xae   :  { %3429 = vmatmul.msk.f32.gmra.mxu0 %vm425_vm0, %v3413_v9  ;;  %v299_v24 = vadd.f32 %v4318_v53, %v279_v20 }
  0xb0   :  { %v4364_v29 = vmax.f32 %v299_v24, 0.0 }
  0xb2   :  { %3445 = vmatmul.msk.f32.gmra.mxu1 %vm547_vm3, %v4343_v10  ;;  %v359_v34 = vpop.permute.xlu2 %358 }
  0xb3   :  { %v344_v12 = vpop.permute.xlu1 %343  ;;  %v341_v13 = vpop.permute.xlu0 %340  ;;  %vm385_vm1 = vcmp.eq.s32.totalorder %v359_v34, %v4302_v40 }
  0xb4   :  { %vm379_vm6 = vcmp.eq.s32.totalorder %v341_v13, %v4302_v40  ;;  %vm380_vm8 = vcmp.eq.s32.totalorder %v344_v12, %v4302_v40  ;;  %v3421_v11 = vsel %vm385_vm1, 1.0, %v6716_v43 }
  0xb5   :  { %v3415_v27 = vsel %vm379_vm6, 1.0, %v6716_v43  ;;  %v3416_v32 = vsel %vm380_vm8, 1.0, %v6716_v43 }
  0xb6   :  { %3430 = vmatmul.msk.f32.gmra.mxu0 %vm425_vm0, %v3414_v15 }
  0xba   :  { %3446 = vmatmul.msk.f32.gmra.mxu1 %vm547_vm3, %v4352_v19  ;;  %v230_v45 = vpop.permute.xlu2 %229 }
  0xbb   :  { %v365_v22 = vpop.permute.xlu1 %364  ;;  %v347_v23 = vpop.permute.xlu0 %346  ;;  %v282_v50 = vmul.f32 %v4313_v52, %v230_v45 }
  0xbc   :  { %vm387_vm7 = vcmp.eq.s32.totalorder %v365_v22, %v4302_v40  ;;  %vm381_vm11 = vcmp.eq.s32.totalorder %v347_v23, %v4302_v40 }
  0xbd   :  { %v3423_v25 = vsel %vm387_vm7, 1.0, %v6716_v43  ;;  %v3417_v38 = vsel %vm381_vm11, 1.0, %v6716_v43  ;;  %v302_v56 = vadd.f32 %v4318_v53, %v282_v50 }
  0xbe   :  { %3439 = vmatmul.msk.f32.vlgmr.msra.gmra.mxu2 %vm425_vm0, %v3423_v25  ;;  %3431 = vmatmul.msk.f32.gmra.mxu0 %vm425_vm0, %v3415_v27 }
  0xbf   :  { %v4403_v60 = vmax.f32 %v302_v56, 0.0 }
  0xc2   :  { %3447 = vmatmul.msk.f32.gmra.mxu1 %vm547_vm3, %v4364_v29  ;;  %v245_v9 = vpop.permute.xlu2 %244 }
  0xc3   :  { %v353_v30 = vpop.permute.xlu1 %352  ;;  %v368_v31 = vpop.permute.xlu0 %367  ;;  %v285_v12 = vmul.f32 %v4313_v52, %v245_v9 }
  0xc4   :  { %vm388_vm9 = vcmp.eq.s32.totalorder %v368_v31, %v4302_v40  ;;  %vm383_vm14 = vcmp.eq.s32.totalorder %v353_v30, %v4302_v40 }
  0xc5   :  { %v3424_v33 = vsel %vm388_vm9, 1.0, %v6716_v43  ;;  %v3419_v59 = vsel %vm383_vm14, 1.0, %v6716_v43  ;;  %v305_v14 = vadd.f32 %v4318_v53, %v285_v12 }
  0xc6   :  { %3432 = vmatmul.msk.f32.gmra.mxu0 %vm425_vm0, %v3416_v32  ;;  %3440 = vmatmul.msk.f32.gmra.mxu2 %vm425_vm0, %v3424_v33 }
  0xc7   :  { %v4444_v17 = vmax.f32 %v305_v14, 0.0 }
  0xca   :  { %3448 = vmatmul.msk.f32.gmra.mxu1 %vm547_vm3, %v4324_v61  ;;  %v260_v26 = vpop.permute.xlu2 %259 }
  0xcb   :  { %v374_v35 = vpop.permute.xlu1 %373  ;;  %v356_v36 = vpop.permute.xlu0 %355  ;;  %v288_v27 = vmul.f32 %v4313_v52, %v260_v26 }
  0xcc   :  { %vm390_vm13 = vcmp.eq.s32.totalorder %v374_v35, %v4302_v40  ;;  %vm384_vm15 = vcmp.eq.s32.totalorder %v356_v36, %v4302_v40 }
  0xcd   :  { %v3426_v48 = vsel %vm390_vm13, 1.0, %v6716_v43  ;;  %v3420_v4 = vsel %vm384_vm15, 1.0, %v6716_v43  ;;  %v308_v31 = vadd.f32 %v4318_v53, %v288_v27 }
  0xce   :  { %3433 = vmatmul.msk.f32.gmra.mxu0 %vm425_vm0, %v3417_v38  ;;  %3441 = vmatmul.msk.f32.gmra.mxu2 %vm425_vm0, %v3425_v39 }
  0xcf   :  { %v4488_v33 = vmax.f32 %v308_v31, 0.0 }
  0xd3   :  { %v225_v41 = vpop.permute.xlu1 %224  ;;  %v362_v44 = vpop.permute.xlu0 %361 }
  0xd4   :  { %v281_v42 = vmul.f32 %v4313_v52, %v225_v41  ;;  %vm386_vm2 = vcmp.eq.s32.totalorder %v362_v44, %v4302_v40  ;;  %v6727_v44 = vmov 2  }
  0xd5   :  { %v3422_v16 = vsel %vm386_vm2, 1.0, %v6716_v43 }
  0xd6   :  { %v301_v46 = vadd.f32 %v4318_v53, %v281_v42  ;;  %3434 = vmatmul.msk.f32.gmra.mxu0 %vm425_vm0, %v3418_v47  ;;  %3442 = vmatmul.msk.f32.gmra.mxu2 %vm425_vm0, %v3426_v48 }
  0xd8   :  { %v4391_v51 = vmax.f32 %v301_v46, 0.0  ;;  %v6723_v46 = vmov 3  }
  0xda   :  { %3449 = vmatmul.msk.f32.gmra.mxu1 %vm547_vm3, %v4391_v51  ;;  %3481 = vmatmul.msk.f32.gmra.mxu3 %vm547_vm3, %v4391_v51 }
  0xdb   :  { %v235_v57 = vpop.permute.xlu0 %234  ;;  %v240_v3 = vpop.permute.xlu1 %239 }
  0xdc   :  { %v283_v63 = vmul.f32 %v4313_v52, %v235_v57  ;;  %v284_v6 = vmul.f32 %v4313_v52, %v240_v3 }
  0xde   :  { %3435 = vmatmul.msk.f32.gmra.mxu0 %vm425_vm0, %v3419_v59  ;;  %3459 = vmatmul.msk.f32.vlgmr.msrb.gmra.mxu2 %vm547_vm3, %v4326_v62  ;;  %v303_v0 = vadd.f32 %v4318_v53, %v283_v63  ;;  %v304_v8 = vadd.f32 %v4318_v53, %v284_v6 }
  0xe0   :  { %v4419_v7 = vmax.f32 %v303_v0, 0.0  ;;  %v4432_v13 = vmax.f32 %v304_v8, 0.0 }
  0xe2   :  { %3450 = vmatmul.msk.f32.gmra.mxu1 %vm547_vm3, %v4403_v60  ;;  %3482 = vmatmul.msk.f32.gmra.mxu3 %vm547_vm3, %v4403_v60 }
  0xe3   :  { %v250_v15 = vpop.permute.xlu0 %249  ;;  %v255_v21 = vpop.permute.xlu1 %254 }
  0xe4   :  { %v286_v18 = vmul.f32 %v4313_v52, %v250_v15  ;;  %v287_v22 = vmul.f32 %v4313_v52, %v255_v21 }
  0xe6   :  { %3436 = vmatmul.msk.f32.gmra.mxu0 %vm425_vm0, %v3420_v4  ;;  %3460 = vmatmul.msk.f32.gmra.mxu2 %vm547_vm3, %v4335_v5  ;;  %v306_v20 = vadd.f32 %v4318_v53, %v286_v18  ;;  %v307_v25 = vadd.f32 %v4318_v53, %v287_v22 }
  0xe8   :  { %v4457_v23 = vmax.f32 %v306_v20, 0.0  ;;  %v4473_v28 = vmax.f32 %v307_v25, 0.0 }
  0xea   :  { %3451 = vmatmul.msk.f32.gmra.mxu1 %vm547_vm3, %v4419_v7  ;;  %3483 = vmatmul.msk.f32.gmra.mxu3 %vm547_vm3, %v4419_v7 }
  0xeb   :  { %v265_v32 = vpop.permute.xlu0 %264  ;;  %v270_v36 = vpop.permute.xlu1 %269 }
  0xec   :  { %v289_v34 = vmul.f32 %v4313_v52, %v265_v32  ;;  %v290_v38 = vmul.f32 %v4313_v52, %v270_v36 }
  0xee   :  { %3437 = vmatmul.msk.f32.gmra.mxu0 %vm425_vm0, %v3421_v11  ;;  %3461 = vmatmul.msk.f32.gmra.mxu2 %vm547_vm3, %v4343_v10  ;;  %v309_v35 = vadd.f32 %v4318_v53, %v289_v34  ;;  %v310_v41 = vadd.f32 %v4318_v53, %v290_v38 }
  0xf0   :  { %v4501_v39 = vmax.f32 %v309_v35, 0.0  ;;  %v4512_v42 = vmax.f32 %v310_v41, 0.0 }
  0xf2   :  { %3452 = vmatmul.msk.f32.gmra.mxu1 %vm547_vm3, %v4432_v13  ;;  %3484 = vmatmul.msk.f32.gmra.mxu3 %vm547_vm3, %v4432_v13 }
  0xf6   :  { %3438 = vmatmul.msk.f32.gmra.mxu0 %vm425_vm0, %v3422_v16  ;;  %3462 = vmatmul.msk.f32.gmra.mxu2 %vm547_vm3, %v4352_v19 }
  0xfa   :  { %3453 = vmatmul.msk.f32.gmra.mxu1 %vm547_vm3, %v4444_v17  ;;  %3485 = vmatmul.msk.f32.gmra.mxu3 %vm547_vm3, %v4444_v17 }
  0xfe   :  { %3463 = vmatmul.msk.f32.gmra.mxu2 %vm547_vm3, %v4364_v29  ;;  %3491 = vmatmul.msk.f32.vlgmr.msrb.gmra.mxu0 %vm547_vm3, %v4326_v62 }
 0x102   :  { %3454 = vmatmul.msk.f32.gmra.mxu1 %vm547_vm3, %v4457_v23  ;;  %3486 = vmatmul.msk.f32.gmra.mxu3 %vm547_vm3, %v4457_v23  ;;  %v4463_v24 = vpop.f32.mrf.mxu0 }
 0x103   :  { %663 = vperm.xlu2 %3703, %v4463_v24   ;;  %847 = vperm.xlu0 %3704, %v4463_v24  }
 0x106   :  { %3464 = vmatmul.msk.f32.gmra.mxu2 %vm547_vm3, %v4324_v61  ;;  %3492 = vmatmul.msk.f32.gmra.mxu0 %vm547_vm3, %v4335_v5 }
 0x10a   :  { %3455 = vmatmul.msk.f32.gmra.mxu1 %vm547_vm3, %v4473_v28  ;;  %3487 = vmatmul.msk.f32.gmra.mxu3 %vm547_vm3, %v4473_v28  ;;  %v4479_v30 = vpop.f32.mrf.mxu0 }
 0x10b   :  { %3708 = vset.pattern.permute.xlu0 %v6721_v1 }
 0x10c   :  { %668 = vperm.xlu0 %3708, %v4479_v30  }
 0x10e   :  { %3465 = vmatmul.msk.f32.gmra.mxu2 %vm547_vm3, %v4391_v51  ;;  %3493 = vmatmul.msk.f32.gmra.mxu0 %vm547_vm3, %v4343_v10 }
 0x112   :  { %3456 = vmatmul.msk.f32.gmra.mxu1 %vm547_vm3, %v4488_v33  ;;  %3488 = vmatmul.msk.f32.gmra.mxu3 %vm547_vm3, %v4488_v33 }
 0x116   :  { %3466 = vmatmul.msk.f32.gmra.mxu2 %vm547_vm3, %v4403_v60  ;;  %3494 = vmatmul.msk.f32.gmra.mxu0 %vm547_vm3, %v4352_v19 }
 0x11a   :  { %3457 = vmatmul.msk.f32.gmra.mxu1 %vm547_vm3, %v4501_v39  ;;  %3489 = vmatmul.msk.f32.gmra.mxu3 %vm547_vm3, %v4501_v39 }
 0x11e   :  { %3467 = vmatmul.msk.f32.gmra.mxu2 %vm547_vm3, %v4419_v7  ;;  %3495 = vmatmul.msk.f32.gmra.mxu0 %vm547_vm3, %v4364_v29 }
 0x11f   :  { %v4574_v47 = vpop.f32.mrf.mxu1 }
 0x120   :  { %6785 = vst [vmem:[#allocation16_spill] sm:$0xff] %v4574_v47  ;;  %v6821_v47 = vmov 3  }
 0x122   :  { %3458 = vmatmul.msk.f32.gmra.mxu1 %vm547_vm3, %v4512_v42  ;;  %3490 = vmatmul.msk.f32.gmra.mxu3 %vm547_vm3, %v4512_v42 }
 0x124   :  { %v4644_v11 = vpop.f32.mrf.mxu3 }
 0x126   :  { %3468 = vmatmul.msk.f32.gmra.mxu2 %vm547_vm3, %v4432_v13  ;;  %3496 = vmatmul.msk.f32.gmra.mxu0 %vm547_vm3, %v4324_v61 }
 0x12a   :  { %3475 = vmatmul.msk.f32.vlgmr.msrb.gmra.mxu1 %vm547_vm3, %v4326_v62 }
 0x12b   :  { %v4524_v52 = vpop.f32.mrf.mxu0 }
 0x12e   :  { %3469 = vmatmul.msk.f32.gmra.mxu2 %vm547_vm3, %v4444_v17  ;;  %3497 = vmatmul.msk.f32.gmra.mxu0 %vm547_vm3, %v4391_v51  ;;  %v4584_v51 = vpop.f32.mrf.mxu1 }
 0x132   :  { %3476 = vmatmul.msk.f32.gmra.mxu1 %vm547_vm3, %v4335_v5 }
 0x133   :  { %v4532_v53 = vpop.f32.mrf.mxu0 }
 0x136   :  { %3470 = vmatmul.msk.f32.gmra.mxu2 %vm547_vm3, %v4457_v23  ;;  %3498 = vmatmul.msk.f32.gmra.mxu0 %vm547_vm3, %v4403_v60  ;;  %v4598_v57 = vpop.f32.mrf.mxu1 }
 0x13a   :  { %3477 = vmatmul.msk.f32.gmra.mxu1 %vm547_vm3, %v4343_v10 }
 0x13b   :  { %v4540_v61 = vpop.f32.mrf.mxu0 }
 0x13e   :  { %3471 = vmatmul.msk.f32.gmra.mxu2 %vm547_vm3, %v4473_v28  ;;  %3499 = vmatmul.msk.f32.gmra.mxu0 %vm547_vm3, %v4419_v7  ;;  %v4612_v60 = vpop.f32.mrf.mxu1 }
 0x141   :  { %v527_v62 = vpop.f32.mrf.mxu2 }
 0x142   :  { %895 = vperm.xlu1 %3705, %v527_v62   ;;  %723 = vperm.xlu2 %3703, %v527_v62  }
 0x143   :  { %3478 = vmatmul.msk.f32.gmra.mxu1 %vm547_vm3, %v4352_v19  ;;  %v4548_v5 = vpop.f32.mrf.mxu0 }
 0x146   :  { %3472 = vmatmul.msk.f32.gmra.mxu2 %vm547_vm3, %v4488_v33  ;;  %3500 = vmatmul.msk.f32.gmra.mxu0 %vm547_vm3, %v4432_v13  ;;  %v4625_v3 = vpop.f32.mrf.mxu1 }
 0x149   :  { %v530_v10 = vpop.f32.mrf.mxu2 }
 0x14a   :  { %851 = vperm.xlu1 %3705, %v4479_v30   ;;  %3706 = vset.pattern.permute.xlu2 %v6727_v44 }
 0x14b   :  { %728 = vperm.xlu0 %3708, %v530_v10   ;;  %3479 = vmatmul.msk.f32.gmra.mxu1 %vm547_vm3, %v4364_v29  ;;  %v4558_v19 = vpop.f32.mrf.mxu0 }
 0x14c   :  { %1064 = vperm.xlu2 %3706, %v527_v62  }
 0x14e   :  { %3473 = vmatmul.msk.f32.gmra.mxu2 %vm547_vm3, %v4501_v39  ;;  %3501 = vmatmul.msk.f32.gmra.mxu0 %vm547_vm3, %v4444_v17  ;;  %v4639_v8 = vpop.f32.mrf.mxu1 }
 0x151   :  { %v533_v45 = vpop.f32.mrf.mxu2 }
 0x152   :  { %3712 = vset.pattern.permute.xlu1 %v6721_v1 }
 0x153   :  { %3711 = vset.pattern.permute.xlu0 %v6723_v46  ;;  %673 = vperm.xlu1 %3712, %v4524_v52   ;;  %v4568_v29 = vpop.f32.mrf.mxu0 }
 0x154   :  { %3707 = vset.pattern.permute.xlu2 %v6723_v46  ;;  %1237 = vperm.xlu0 %3711, %v530_v10  }
 0x155   :  { %1233 = vperm.xlu2 %3707, %v527_v62  }
 0x156   :  { %3474 = vmatmul.msk.f32.gmra.mxu2 %vm547_vm3, %v4512_v42  ;;  %3502 = vmatmul.msk.f32.gmra.mxu0 %vm547_vm3, %v4457_v23 }
 0x157   :  { %v4649_v12 = vpop.f32.mrf.mxu1 }
 0x159   :  { %v536_v48 = vpop.f32.mrf.mxu2 }
 0x15b   :  { %733 = vperm.xlu1 %3712, %v533_v45   ;;  %v4576_v49 = vpop.f32.mrf.mxu0 }
 0x15c   :  { %3714 = vset.pattern.permute.xlu0 %v6719_v2 }
 0x15d   :  { %3709 = vset.pattern.permute.xlu2 %v6719_v2  ;;  %903 = vperm.xlu0 %3714, %v533_v45   ;;  %v4654_v14 = vpop.permute.xlu2 %663  ;;  %v4659_v16 = vpop.f32.mrf.mxu3 }
 0x15e   :  { %899 = vperm.xlu2 %3709, %v530_v10   ;;  %3503 = vmatmul.msk.f32.gmra.mxu0 %vm547_vm3, %v4473_v28  ;;  %6795 = vst [vmem:[#allocation26_spill] sm:$0xff] %v4654_v14 }
 0x15f   :  { %v4670_v20 = vpop.f32.mrf.mxu1 }
 0x161   :  { %v4582_v50 = vpop.f32.mrf.mxu2 }
 0x162   :  { %6786 = vst [vmem:[#allocation17_spill] sm:$0xff] %v4582_v50 }
 0x163   :  { %3716 = vset.pattern.permute.xlu1 %v6723_v46  ;;  %v4587_v54 = vpop.f32.mrf.mxu0 }
 0x164   :  { %1241 = vperm.xlu1 %3716, %v533_v45  }
 0x165   :  { %3715 = vset.pattern.permute.xlu0 %v6727_v44  ;;  %v4675_v22 = vpop.f32.mrf.mxu3 }
 0x166   :  { %3710 = vset.pattern.permute.xlu2 %v6727_v44  ;;  %1072 = vperm.xlu0 %3715, %v533_v45  }
 0x167   :  { %1068 = vperm.xlu2 %3710, %v530_v10   ;;  %3504 = vmatmul.msk.f32.gmra.mxu0 %vm547_vm3, %v4488_v33  ;;  %v4687_v26 = vpop.f32.mrf.mxu1 }
 0x169   :  { %v4593_v55 = vpop.f32.mrf.mxu2 }
 0x16b   :  { %v4595_v56 = vpop.f32.mrf.mxu0 }
 0x16c   :  { %3718 = vset.pattern.permute.xlu1 %v6719_v2 }
 0x16d   :  { %859 = vperm.xlu1 %3718, %v4532_v53   ;;  %v4691_v28 = vpop.f32.mrf.mxu3 }
 0x16e   :  { %3722 = vset.pattern.permute.xlu0 %v6721_v1  ;;  %6801 = vst [vmem:[#allocation32_spill] sm:$0xff] %v4691_v28 }
 0x16f   :  { %3713 = vset.pattern.permute.xlu2 %v6719_v2  ;;  %683 = vperm.xlu0 %3722, %v4540_v61   ;;  %v4703_v33 = vpop.f32.mrf.mxu1 }
 0x170   :  { %3505 = vmatmul.msk.f32.gmra.mxu0 %vm547_vm3, %v4501_v39  ;;  %855 = vperm.xlu2 %3713, %v4524_v52   ;;  %6803 = vst [vmem:[#allocation34_spill] sm:$0xff] %v4703_v33 }
 0x171   :  { %v4607_v58 = vpop.f32.mrf.mxu2 }
 0x172   :  { %6787 = vst [vmem:[#allocation18_spill] sm:$0xff] %v4607_v58 }
 0x173   :  { %v4609_v59 = vpop.f32.mrf.mxu0 }
 0x175   :  { %3720 = vset.pattern.permute.xlu1 %v6727_v44  ;;  %v4707_v35 = vpop.f32.mrf.mxu3 }
 0x176   :  { %1076 = vperm.xlu1 %3720, %v536_v48   ;;  %6805 = vst [vmem:[#allocation36_spill] sm:$0xff] %v4707_v35 }
 0x177   :  { %3723 = vset.pattern.permute.xlu0 %v6727_v44  ;;  %v4721_v41 = vpop.f32.mrf.mxu1 }
 0x178   :  { %3506 = vmatmul.msk.f32.gmra.mxu0 %vm547_vm3, %v4512_v42  ;;  %3717 = vset.pattern.permute.xlu2 %v6721_v1  ;;  %6807 = vst [vmem:[#allocation38_spill] sm:$0xff] %v4721_v41 }
 0x179   :  { %1032 = vperm.xlu0 %3723, %v4540_v61   ;;  %678 = vperm.xlu2 %3717, %v4532_v53   ;;  %v4620_v63 = vpop.f32.mrf.mxu2 }
 0x17a   :  { %6788 = vst [vmem:[#allocation19_spill] sm:$0xff] %v4620_v63 }
 0x17b   :  { %v4622_v0 = vpop.f32.mrf.mxu0 }
 0x17c   :  { %6789 = vst [vmem:[#allocation20_spill] sm:$0xff] %v4622_v0 }
 0x17e   :  { %3721 = vset.pattern.permute.xlu1 %v6723_v46 }
 0x17f   :  { %1245 = vperm.xlu1 %3721, %v536_v48  }
 0x181   :  { %3725 = vset.pattern.permute.xlu0 %v6719_v2  ;;  %738 = vperm.xlu2 %3717, %v536_v48   ;;  %v4629_v4 = vpop.f32.mrf.mxu2 }
 0x182   :  { %867 = vperm.xlu0 %3725, %v4548_v5   ;;  %6790 = vst [vmem:[#allocation21_spill] sm:$0xff] %v4629_v4 }
 0x183   :  { %v4631_v6 = vpop.f32.mrf.mxu0 }
 0x184   :  { %6791 = vst [vmem:[#allocation22_spill] sm:$0xff] %v4631_v6 }
 0x187   :  { %3724 = vset.pattern.permute.xlu1 %v6721_v1 }
 0x188   :  { %688 = vperm.xlu1 %3724, %v4548_v5  }
 0x189   :  { %3719 = vset.pattern.permute.xlu2 %v6719_v2  ;;  %v4637_v7 = vpop.f32.mrf.mxu2 }
 0x18a   :  { %3731 = vset.pattern.permute.xlu0 %v6721_v1  ;;  %907 = vperm.xlu2 %3719, %v536_v48   ;;  %6792 = vst [vmem:[#allocation23_spill] sm:$0xff] %v4637_v7  ;;  %v4738_v48 = vpop.permute.xlu0 %847 }
 0x18b   :  { %698 = vperm.xlu0 %3731, %v4568_v29   ;;  %v4642_v9 = vpop.f32.mrf.mxu0  ;;  %6812 = vst [vmem:[#allocation43_spill] sm:$0xff] %v4738_v48 }
 0x18c   :  { %6793 = vst [vmem:[#allocation24_spill] sm:$0xff] %v4642_v9 }
 0x190   :  { %3726 = vset.pattern.permute.xlu1 %v6727_v44 }
 0x191   :  { %1036 = vperm.xlu1 %3726, %v4548_v5   ;;  %v4652_v13 = vpop.f32.mrf.mxu2 }
 0x192   :  { %863 = vperm.xlu2 %3719, %v4540_v61   ;;  %6794 = vst [vmem:[#allocation25_spill] sm:$0xff] %v4652_v13  ;;  %v4759_v0 = vpop.permute.xlu0 %668 }
 0x193   :  { %3736 = vset.pattern.permute.xlu0 %v6719_v2  ;;  %v4657_v15 = vpop.f32.mrf.mxu0  ;;  %6820 = vst [vmem:[#allocation51_spill] sm:$0xff] %v4759_v0 }
 0x194   :  { %879 = vperm.xlu0 %3736, %v4576_v49   ;;  %6796 = vst [vmem:[#allocation27_spill] sm:$0xff] %v4657_v15 }
 0x199   :  { %3728 = vset.pattern.permute.xlu1 %v6719_v2  ;;  %v4672_v21 = vpop.f32.mrf.mxu2 }
 0x19a   :  { %3727 = vset.pattern.permute.xlu2 %v6721_v1  ;;  %871 = vperm.xlu1 %3728, %v4558_v19   ;;  %6798 = vst [vmem:[#allocation29_spill] sm:$0xff] %v4672_v21 }
 0x19b   :  { %693 = vperm.xlu2 %3727, %v4558_v19   ;;  %v4666_v17 = vpop.f32.mrf.mxu0 }
 0x19c   :  { %3740 = vset.pattern.permute.xlu0 %v6727_v44  ;;  %6797 = vst [vmem:[#allocation28_spill] sm:$0xff] %v4666_v17  ;;  %v4668_v18 = vpop.permute.xlu2 %723 }
 0x19d   :  { %1052 = vperm.xlu0 %3740, %v4587_v54  }
 0x1a1   :  { %v4689_v27 = vpop.f32.mrf.mxu2 }
 0x1a2   :  { %3729 = vset.pattern.permute.xlu1 %v6727_v44  ;;  %6800 = vst [vmem:[#allocation31_spill] sm:$0xff] %v4689_v27 }
 0x1a3   :  { %3730 = vset.pattern.permute.xlu2 %v6723_v46  ;;  %1040 = vperm.xlu1 %3729, %v4558_v19   ;;  %v4681_v23 = vpop.f32.mrf.mxu0 }
 0x1a4   :  { %1209 = vperm.xlu2 %3730, %v4558_v19   ;;  %6799 = vst [vmem:[#allocation30_spill] sm:$0xff] %v4681_v23  ;;  %v4729_v19 = vpop.f32.mrf.mxu3 }
 0x1a5   :  { %3742 = vset.pattern.permute.xlu0 %v6721_v1  ;;  %6811 = vst [vmem:[#allocation42_spill] sm:$0xff] %v4729_v19 }
 0x1a6   :  { %713 = vperm.xlu0 %3742, %v4595_v56   ;;  %v4685_v25 = vpop.permute.xlu2 %1064 }
 0x1a9   :  { %v4705_v34 = vpop.f32.mrf.mxu2 }
 0x1aa   :  { %6804 = vst [vmem:[#allocation35_spill] sm:$0xff] %v4705_v34 }
 0x1ab   :  { %3735 = vset.pattern.permute.xlu1 %v6721_v1  ;;  %v4695_v31 = vpop.f32.mrf.mxu0  ;;  %v4746_v1 = vpop.f32.mrf.mxu1 }
 0x1ac   :  { %3732 = vset.pattern.permute.xlu2 %v6719_v2  ;;  %6802 = vst [vmem:[#allocation33_spill] sm:$0xff] %v4695_v31  ;;  %703 = vperm.xlu1 %3735, %v4576_v49  }
 0x1ad   :  { %875 = vperm.xlu2 %3732, %v4568_v29   ;;  %6816 = vst [vmem:[#allocation47_spill] sm:$0xff] %v4746_v1 }
 0x1ae   :  { %3747 = vset.pattern.permute.xlu0 %v6719_v2 }
 0x1af   :  { %891 = vperm.xlu0 %3747, %v4609_v59   ;;  %v4701_v32 = vpop.permute.xlu2 %1233 }
 0x1b1   :  { %v4723_v42 = vpop.f32.mrf.mxu2 }
 0x1b2   :  { %6808 = vst [vmem:[#allocation39_spill] sm:$0xff] %v4723_v42 }
 0x1b3   :  { %v4709_v36 = vpop.f32.mrf.mxu0  ;;  %v4764_v6 = vpop.f32.mrf.mxu1 }
 0x1b4   :  { %6806 = vst [vmem:[#allocation37_spill] sm:$0xff] %v4709_v36  ;;  %v4711_v38 = vpop.permute.xlu1 %895  ;;  %3739 = vset.pattern.permute.xlu1 %v6719_v2 }
 0x1b5   :  { %3733 = vset.pattern.permute.xlu2 %v6727_v44  ;;  %883 = vperm.xlu1 %3739, %v4587_v54  }
 0x1b6   :  { %1044 = vperm.xlu2 %3733, %v4568_v29  }
 0x1b7   :  { %3748 = vset.pattern.permute.xlu0 %v6723_v46 }
 0x1b8   :  { %1217 = vperm.xlu0 %3748, %v4576_v49   ;;  %v4719_v39 = vpop.permute.xlu2 %899 }
 0x1b9   :  { %v4742_v37 = vpop.f32.mrf.mxu2 }
 0x1ba   :  { %6814 = vst [vmem:[#allocation45_spill] sm:$0xff] %v4742_v37 }
 0x1bb   :  { %v4725_v62 = vpop.f32.mrf.mxu0  ;;  %v652_v36 = vpop.f32.mrf.mxu1 }
 0x1bc   :  { %6809 = vst [vmem:[#allocation40_spill] sm:$0xff] %v4725_v62  ;;  %v4727_v10 = vpop.permute.xlu1 %851 }
 0x1bd   :  { %6810 = vst [vmem:[#allocation41_spill] sm:$0xff] %v4727_v10  ;;  %3741 = vset.pattern.permute.xlu1 %v6723_v46  ;;  %v729_v15 = vpop.permute.xlu0 %728  ;;  %v6825_v10 = vmov 1  }
 0x1be   :  { %3734 = vset.pattern.permute.xlu2 %v6723_v46  ;;  %1221 = vperm.xlu1 %3741, %v4587_v54   ;;  %v4749_v46 = vpop.f32.mrf.mxu3 }
 0x1bf   :  { %1213 = vperm.xlu2 %3734, %v4568_v29   ;;  %6817 = vst [vmem:[#allocation48_spill] sm:$0xff] %v4749_v46  ;;  %v4806_v46 = vld [vmem:[%s6828_s5] ss:$0 sm:$0xff] }
 0x1c0   :  { %1197 = vperm.xlu0 %3748, %v4532_v53   ;;  %6831 = vst [vmem:[#allocation57_spill] sm:$0xff] %v4806_v46 }
 0x1c1   :  { %v4736_v45 = vpop.permute.xlu2 %1068  ;;  %v834_v48 = vpop.f32.mrf.mxu2 }
 0x1c3   :  { %v4740_v43 = vpop.f32.mrf.mxu0 }
 0x1c4   :  { %6813 = vst [vmem:[#allocation44_spill] sm:$0xff] %v4740_v43 }
 0x1c5   :  { %v4744_v2 = vpop.permute.xlu1 %673 }
 0x1c6   :  { %6815 = vst [vmem:[#allocation46_spill] sm:$0xff] %v4744_v2  ;;  %3744 = vset.pattern.permute.xlu1 %v6727_v44  ;;  %v4768_v50 = vpop.f32.mrf.mxu3 }
 0x1c7   :  { %3737 = vset.pattern.permute.xlu2 %v6727_v44  ;;  %1056 = vperm.xlu1 %3744, %v4595_v56   ;;  %v6822_v44 = vmov 0  }
 0x1c8   :  { %1185 = vperm.xlu0 %3748, %v4463_v24   ;;  %1048 = vperm.xlu2 %3737, %v4576_v49  }
 0x1ca   :  { %v4755_v29 = vpop.permute.xlu2 %855 }
 0x1cb   :  { %6818 = vst [vmem:[#allocation49_spill] sm:$0xff] %v4755_v29  ;;  %v4757_v40 = vpop.f32.mrf.mxu0  ;;  %v837_v29 = vpop.f32.mrf.mxu2 }
 0x1cc   :  { %6819 = vst [vmem:[#allocation50_spill] sm:$0xff] %v4757_v40  ;;  %v4782_v40 = vpop.permute.xlu0 %1237 }
 0x1cd   :  { %v4761_v14 = vpop.permute.xlu1 %733 }
 0x1cf   :  { %3745 = vset.pattern.permute.xlu1 %v6821_v47 }
 0x1d0   :  { %3738 = vset.pattern.permute.xlu2 %v6822_v44  ;;  %1225 = vperm.xlu1 %3745, %v4595_v56  }
 0x1d1   :  { %708 = vperm.xlu2 %3738, %v4587_v54   ;;  %3759 = vset.pattern.permute.xlu0 %v6822_v44  ;;  %v1006_v54 = vpop.f32.mrf.mxu3 }
 0x1d3   :  { %v4772_v49 = vpop.permute.xlu2 %678  ;;  %v4774_v2 = vpop.f32.mrf.mxu0 }
 0x1d4   :  { %6823 = vst [vmem:[#allocation52_spill] sm:$0xff] %v4772_v49  ;;  %v840_v31 = vpop.f32.mrf.mxu2  ;;  %v904_v17 = vpop.permute.xlu0 %903 }
 0x1d5   :  { %6824 = vst [vmem:[#allocation53_spill] sm:$0xff] %v4774_v2  ;;  %v6827_v2 = vmov 2  }
 0x1d6   :  { %v4776_v9 = vpop.permute.xlu1 %1241 }
 0x1d8   :  { %3746 = vset.pattern.permute.xlu1 %v6822_v44 }
 0x1d9   :  { %3743 = vset.pattern.permute.xlu2 %v6825_v10  ;;  %718 = vperm.xlu1 %3746, %v4609_v59   ;;  %v655_v10 = vpop.f32.mrf.mxu1  ;;  %v1009_v34 = vpop.f32.mrf.mxu3 }
 0x1da   :  { %887 = vperm.xlu2 %3743, %v4595_v56   ;;  %v656_v41 = vadd.f32 %v4806_v46, %v655_v10 }
 0x1db   :  { %v739_v43 = vpop.permute.xlu2 %738  ;;  %v1172_v62 = vpop.f32.mrf.mxu0 }
 0x1dc   :  { %v1073_v58 = vpop.permute.xlu0 %1072 }
 0x1df   :  { %v4784_v49 = vpop.permute.xlu1 %859 }
 0x1e0   :  { %6826 = vst [vmem:[#allocation54_spill] sm:$0xff] %v4784_v49 }
 0x1e1   :  { %3749 = vset.pattern.permute.xlu1 %v6821_v47  ;;  %v658_v37 = vpop.f32.mrf.mxu1  ;;  %v1012_v42 = vpop.f32.mrf.mxu3 }
 0x1e2   :  { %3750 = vset.pattern.permute.xlu2 %v6827_v2  ;;  %1205 = vperm.xlu1 %3749, %v4548_v5   ;;  %v4797_v5 = vld [vmem:[%s6828_s5 + $0x1] ss:$0 sm:$0xff] }
 0x1e3   :  { %1028 = vperm.xlu2 %3750, %v4532_v53   ;;  %6829 = vst [vmem:[#allocation55_spill] sm:$0xff] %v4797_v5  ;;  %v843_v53 = vpop.f32.mrf.mxu2  ;;  %v838_v21 = vadd.f32 %v4797_v5, %v837_v29  ;;  %v841_v13 = vadd.f32 %v4797_v5, %v840_v31  ;;  %v835_v0 = vadd.f32 %v4797_v5, %v834_v48  ;;  %v4818_v31 = vld [vmem:[%s6828_s5 + $0x3] ss:$0 sm:$0xff] }
 0x1e4   :  { %v1175_v23 = vpop.f32.mrf.mxu0  ;;  %v908_v56 = vpop.permute.xlu2 %907  ;;  %v844_v4 = vadd.f32 %v4797_v5, %v843_v53  ;;  %v653_v29 = vadd.f32 %v4806_v46, %v652_v36 }
 0x1e5   :  { %v923_v53 = vmul.f32 %v4719_v39, %v838_v21  ;;  %v924_v48 = vmul.f32 %v904_v17, %v841_v13  ;;  %v755_v21 = vmul.f32 %v4761_v14, %v656_v41 }
 0x1e6   :  { %v925_v63 = vmul.f32 %v908_v56, %v844_v4  ;;  %v754_v4 = vmul.f32 %v729_v15, %v653_v29  ;;  %v1173_v15 = vadd.f32 %v4818_v31, %v1172_v62  ;;  %v1410_v56 = vld [vmem:[%s6779_s1 + $0x8] sm:$0xff] }
 0x1e8   :  { %v1077_v27 = vpop.permute.xlu1 %1076  ;;  %v939_v39 = vadd.f32 %v923_v53, %v754_v4  ;;  %v1318_v53 = vld [vmem:[%s6834_s12] sm:$0xff]  ;;  %v1412_v4 = vld [vmem:[%s6779_s1 + $0x18] sm:$0xff] }
 0x1ea   :  { %3751 = vset.pattern.permute.xlu1 %v6827_v2 }
 0x1eb   :  { %3753 = vset.pattern.permute.xlu2 %v6821_v47  ;;  %1060 = vperm.xlu1 %3751, %v4609_v59  }
 0x1ec   :  { %1229 = vperm.xlu2 %3753, %v4609_v59   ;;  %v4801_v7 = vpop.permute.xlu2 %863  ;;  %v4811_v59 = vld [vmem:[%s6828_s5 + $0x2] ss:$0 sm:$0xff] }
 0x1ed   :  { %v1178_v49 = vpop.f32.mrf.mxu0  ;;  %6830 = vst [vmem:[#allocation56_spill] sm:$0xff] %v4801_v7  ;;  %v659_v7 = vadd.f32 %v4806_v46, %v658_v37  ;;  %v1013_v19 = vadd.f32 %v4811_v59, %v1012_v42  ;;  %v1010_v35 = vadd.f32 %v4811_v59, %v1009_v34  ;;  %v650_v37 = vadd.f32 %v4806_v46, %v4764_v6 }
 0x1ee   :  { %v1179_v5 = vadd.f32 %v4818_v31, %v1178_v49  ;;  %v922_v34 = vmul.f32 %v4711_v38, %v835_v0  ;;  %v1007_v36 = vadd.f32 %v4811_v59, %v1006_v54  ;;  %v940_v6 = vadd.f32 %v924_v48, %v755_v21  ;;  %v1420_v48 = vld [vmem:[%s6779_s1 + $0x58] sm:$0xff]  ;;  %v1411_v21 = vld [vmem:[%s6779_s1 + $0x10] sm:$0xff] }
 0x1ef   :  { %v756_v33 = vmul.f32 %v739_v43, %v659_v7  ;;  %v1094_v28 = vmul.f32 %v1077_v27, %v1013_v19  ;;  %v1093_v17 = vmul.f32 %v1073_v58, %v1010_v35  ;;  %v1176_v7 = vadd.f32 %v4818_v31, %v1175_v23 }
 0x1f0   :  { %v1262_v14 = vmul.f32 %v4776_v9, %v1179_v5  ;;  %v1004_v58 = vadd.f32 %v4811_v59, %v4768_v50 }
 0x1f1   :  { %v1246_v1 = vpop.permute.xlu1 %1245  ;;  %v941_v43 = vadd.f32 %v925_v63, %v756_v33  ;;  %v1092_v63 = vmul.f32 %v4736_v45, %v1007_v36  ;;  %v1109_v35 = vadd.f32 %v1093_v17, %v940_v6  ;;  %v1261_v41 = vmul.f32 %v4782_v40, %v1176_v7  ;;  %v1319_v45 = vld [vmem:[%s6834_s12 + $0x8] sm:$0xff]  ;;  %v1413_v36 = vld [vmem:[%s6779_s1 + $0x20] sm:$0xff] }
 0x1f2   :  { %v1091_v62 = vmul.f32 %v4685_v25, %v1004_v58  ;;  %v1409_v25 = vld [vmem:[%s6779_s1] sm:$0xff]  ;;  %v1418_v6 = vld [vmem:[%s6779_s1 + $0x48] sm:$0xff] }
 0x1f3   :  { %3752 = vset.pattern.permute.xlu1 %v6821_v47  ;;  %v1110_v0 = vadd.f32 %v1094_v28, %v941_v43  ;;  %v1260_v28 = vmul.f32 %v4701_v32, %v1173_v15  ;;  %v1108_v50 = vadd.f32 %v1092_v63, %v939_v39  ;;  %1563 = vperm.xlu0 %3759, %v1409_v25   ;;  %v1415_v43 = vld [vmem:[%s6779_s1 + $0x30] sm:$0xff]  ;;  %v1416_v15 = vld [vmem:[%s6779_s1 + $0x38] sm:$0xff]  ;;  %v1421_v58 = vld [vmem:[%s6779_s1 + $0x60] sm:$0xff] }
 0x1f4   :  { %3754 = vset.pattern.permute.xlu2 %v6827_v2  ;;  %1201 = vperm.xlu1 %3752, %v4540_v61   ;;  %v753_v61 = vmul.f32 %v4668_v18, %v650_v37  ;;  %v1346_v25 = vld [vmem:[#allocation7 + $0x60] sm:$0xff] }
 0x1f5   :  { %v1181_v13 = vpop.f32.mrf.mxu0  ;;  %1024 = vperm.xlu2 %3754, %v4524_v52   ;;  %v4844_v23 = vpop.permute.xlu2 %693  ;;  %v1277_v40 = vadd.f32 %v1261_v41, %v1108_v50  ;;  %v1422_v50 = vld [vmem:[%s6779_s1 + $0x68] sm:$0xff] }
 0x1f6   :  { %v1182_v27 = vadd.f32 %v4818_v31, %v1181_v13  ;;  %v938_v33 = vadd.f32 %v922_v34, %v753_v61  ;;  %v1423_v13 = vld [vmem:[%s6779_s1 + $0x70] sm:$0xff]  ;;  %v1394_v61 = vld [vmem:[%s6780_s6 + $0x8] sm:$0xff] }
 0x1f8   :  { %v1263_v38 = vmul.f32 %v1246_v1, %v1182_v27  ;;  %v1278_v1 = vadd.f32 %v1262_v14, %v1109_v35  ;;  %v1107_v9 = vadd.f32 %v1091_v62, %v938_v33  ;;  %v1419_v33 = vld [vmem:[%s6779_s1 + $0x50] sm:$0xff] }
 0x1f9   :  { %v1348_v62 = vld [vmem:[#allocation7 + $0x70] sm:$0xff] }
 0x1fa   :  { %v1279_v18 = vadd.f32 %v1263_v38, %v1110_v0  ;;  %v4847_v42 = vpop.permute.xlu1 %688  ;;  %v1276_v32 = vadd.f32 %v1260_v28, %v1107_v9  ;;  %v1349_v38 = vld [vmem:[#allocation7 + $0x78] sm:$0xff]  ;;  %v4949_v28 = vpop.f32.mrf.mxu1  ;;  %v1347_v9 = vld [vmem:[#allocation7 + $0x68] sm:$0xff] }
 0x1fb   :  { %1350 = vmatpush.msra.mxu2 %v1349_v38  ;;  %6836 = vst [vmem:[#allocation61_spill] sm:$0xff] %v4949_v28  ;;  %v1396_v38 = vld [vmem:[%s6780_s6 + $0x18] sm:$0xff] }
 0x1fc   :  { %1289 = vmatpush.msra.mxu1 %v1279_v18  ;;  %3755 = vset.pattern.permute.xlu1 %v6827_v2  ;;  %v1393_v18 = vld [vmem:[%s6780_s6] sm:$0xff]  ;;  %v6857_v28 = vld [vmem:[#allocation21_spill] sm:$0xff] }
 0x1fd   :  { %3756 = vset.pattern.permute.xlu2 %v6821_v47  ;;  %1020 = vperm.xlu1 %3755, %v4479_v30   ;;  %v6854_v2 = vld [vmem:[#allocation47_spill] sm:$0xff] }
 0x1fe   :  { %1290 = vmatpush.msra.mxu1 %v1278_v1  ;;  %1193 = vperm.xlu2 %3756, %v4524_v52   ;;  %v4858_v10 = vpop.permute.xlu2 %1209  ;;  %v1414_v52 = vld [vmem:[%s6779_s1 + $0x28] sm:$0xff] }
 0x1ff   :  { %6832 = vst [vmem:[#allocation58_spill] sm:$0xff] %v4858_v10  ;;  %1578 = vperm.xlu0 %3759, %v1414_v52   ;;  %1351 = vmatpush.msra.mxu2 %v1348_v62  ;;  %v4985_v62 = vadd.f32 %v4811_v59, %v4644_v11  ;;  %v1337_v11 = vld [vmem:[#allocation7 + $0x18] sm:$0xff]  ;;  %v6855_v47 = vld [vmem:[#allocation51_spill] sm:$0xff]  ;;  %v6869_v10 = vld [vmem:[#allocation33_spill] sm:$0xff] }
 0x200   :  { %1291 = vmatpush.msra.mxu1 %v1277_v40  ;;  %v1397_v40 = vld [vmem:[%s6780_s6 + $0x20] sm:$0xff] }
 0x201   :  { %1352 = vmatpush.msra.mxu2 %v1347_v9  ;;  %6840 = vst [vmem:[#allocation65_spill] sm:$0xff] %v4985_v62  ;;  %v4993_v9 = vadd.f32 %v4806_v46, %v4598_v57  ;;  %v5010_v57 = vadd.f32 %v4806_v46, %v4639_v8  ;;  %v638_v8 = vadd.f32 %v4806_v46, %v4687_v26  ;;  %v6871_v62 = vld [vmem:[#allocation53_spill] sm:$0xff] }
 0x202   :  { %1292 = vmatpush.msra.mxu1 %v1276_v32 }
 0x203   :  { %v4860_v19 = vpop.permute.xlu1 %1036  ;;  %1353 = vmatpush.msra.mxu2 %v1346_v25  ;;  %6841 = vst [vmem:[#allocation66_spill] sm:$0xff] %v4993_v9  ;;  %v4997_v25 = vadd.f32 %v4806_v46, %v4612_v60  ;;  %v5014_v60 = vadd.f32 %v4806_v46, %v4649_v12  ;;  %v6844_v12 = vld [vmem:[#allocation55_spill] sm:$0xff] }
 0x204   :  { %6833 = vst [vmem:[#allocation59_spill] sm:$0xff] %v4860_v19 }
 0x205   :  { %1016 = vperm.xlu1 %3755, %v4463_v24   ;;  %v1417_v24 = vld [vmem:[%s6779_s1 + $0x40] sm:$0xff]  ;;  %6842 = vst [vmem:[#allocation67_spill] sm:$0xff] %v4997_v25  ;;  %v5096_v25 = vadd.f32 %v4818_v31, %v6869_v10 }
 0x206   :  { %1189 = vperm.xlu2 %3756, %v4479_v30   ;;  %v4879_v30 = vpop.permute.xlu0 %683 }
 0x207   :  { %v4872_v54 = vpop.permute.xlu2 %875  ;;  %1587 = vperm.xlu0 %3759, %v1417_v24   ;;  %v1345_v24 = vld [vmem:[#allocation7 + $0x58] sm:$0xff] }
 0x208   :  { %1354 = vmatpush.msra.mxu2 %v1345_v24 }
 0x20c   :  { %v4870_v49 = vpop.permute.xlu1 %871 }
 0x20d   :  { %3757 = vset.pattern.permute.xlu1 %v6822_v44 }
 0x20e   :  { %1327 = vperm.xlu1 %3757, %v1319_v45   ;;  %3758 = vset.pattern.permute.xlu2 %v6822_v44  ;;  %v4894_v37 = vpop.permute.xlu0 %1032  ;;  %v1395_v45 = vld [vmem:[%s6780_s6 + $0x10] sm:$0xff] }
 0x20f   :  { %1322 = vperm.xlu2 %3758, %v1318_v53   ;;  %1596 = vperm.xlu0 %3759, %v1420_v48   ;;  %6835 = vst [vmem:[#allocation60_spill] sm:$0xff] %v4894_v37  ;;  %v1424_v53 = vld [vmem:[%s6779_s1 + $0x78] sm:$0xff]  ;;  %v4969_v48 = vpop.f32.mrf.mxu1 }
 0x210   :  { %v4886_v29 = vpop.permute.xlu2 %1044  ;;  %6837 = vst [vmem:[#allocation62_spill] sm:$0xff] %v4969_v48  ;;  %v6859_v48 = vld [vmem:[#allocation23_spill] sm:$0xff]  ;;  %v6860_v37 = vld [vmem:[#allocation25_spill] sm:$0xff] }
 0x215   :  { %v4884_v5 = vpop.permute.xlu1 %1040 }
 0x216   :  { %1566 = vperm.xlu1 %3757, %v1410_v56   ;;  %v4912_v7 = vpop.permute.xlu0 %867  ;;  %v1344_v56 = vld [vmem:[#allocation7 + $0x50] sm:$0xff] }
 0x217   :  { %1569 = vperm.xlu2 %3758, %v1411_v21   ;;  %1605 = vperm.xlu0 %3759, %v1423_v13   ;;  %v1343_v21 = vld [vmem:[#allocation7 + $0x48] sm:$0xff]  ;;  %v1342_v13 = vld [vmem:[#allocation7 + $0x40] sm:$0xff] }
 0x218   :  { %1355 = vmatpush.msra.mxu2 %v1344_v56  ;;  %v5022_v56 = vadd.f32 %v4806_v46, %v4670_v20 }
 0x219   :  { %v4907_v17 = vpop.permute.xlu2 %1213 }
 0x21a   :  { %1356 = vmatpush.msra.mxu2 %v1343_v21  ;;  %v5026_v21 = vadd.f32 %v4811_v59, %v4675_v22  ;;  %v6850_v22 = vld [vmem:[#allocation36_spill] sm:$0xff] }
 0x21c   :  { %1357 = vmatpush.msra.mxu2 %v1342_v13  ;;  %v5032_v13 = vadd.f32 %v6844_v12, %v4593_v55  ;;  %v6852_v55 = vld [vmem:[#allocation19_spill] sm:$0xff] }
 0x21d   :  { %v5048_v44 = vadd.f32 %v6844_v12, %v6852_v55  ;;  %v5065_v55 = vadd.f32 %v6844_v12, %v6859_v48  ;;  %v1332_v48 = vld [vmem:[%s6781_s30] sm:$0xff] }
 0x21e   :  { %v4899_v34 = vpop.permute.xlu1 %703  ;;  %1572 = vperm.xlu1 %3757, %v1412_v4   ;;  %v4930_v0 = vpop.permute.xlu0 %698  ;;  %6845 = vst [vmem:[#allocation69_spill] sm:$0xff] %v5032_v13 }
 0x21f   :  { %1575 = vperm.xlu2 %3758, %v1413_v36   ;;  %1434 = vperm.xlu0 %3759, %v1394_v61   ;;  %v1398_v36 = vld [vmem:[%s6780_s6 + $0x28] sm:$0xff]  ;;  %v1341_v61 = vld [vmem:[#allocation7 + $0x38] sm:$0xff] }
 0x220   :  { %1358 = vmatpush.msra.mxu2 %v1341_v61  ;;  %v6847_v61 = vld [vmem:[#allocation34_spill] sm:$0xff] }
 0x221   :  { %v641_v20 = vadd.f32 %v4806_v46, %v6847_v61  ;;  %v647_v61 = vadd.f32 %v4806_v46, %v6854_v2  ;;  %v6861_v2 = vld [vmem:[#allocation29_spill] sm:$0xff] }
 0x222   :  { %v4922_v39 = vpop.permute.xlu2 %1048 }
 0x226   :  { %1581 = vperm.xlu1 %3757, %v1415_v43   ;;  %v4942_v35 = vpop.permute.xlu0 %879 }
 0x227   :  { %v4914_v27 = vpop.permute.xlu1 %883  ;;  %1584 = vperm.xlu2 %3758, %v1416_v15   ;;  %1449 = vperm.xlu0 %3759, %v1397_v40   ;;  %v1340_v15 = vld [vmem:[#allocation7 + $0x30] sm:$0xff]  ;;  %v617_v40 = vadd.f32 %v4806_v46, %v4584_v51 }
 0x228   :  { %1359 = vmatpush.msra.mxu2 %v1340_v15  ;;  %v1400_v51 = vld [vmem:[%s6780_s6 + $0x38] sm:$0xff] }
 0x229   :  { %v6848_v15 = vld [vmem:[#allocation18_spill] sm:$0xff] }
 0x22b   :  { %v4937_v63 = vpop.permute.xlu2 %708 }
 0x22e   :  { %1590 = vperm.xlu1 %3757, %v1418_v6   ;;  %v4961_v52 = vpop.permute.xlu0 %1052 }
 0x22f   :  { %1593 = vperm.xlu2 %3758, %v1419_v33   ;;  %v1339_v33 = vld [vmem:[#allocation7 + $0x28] sm:$0xff]  ;;  %1464 = vperm.xlu0 %3759, %v1400_v51  }
 0x230   :  { %v4932_v14 = vpop.permute.xlu1 %1221  ;;  %1360 = vmatpush.msra.mxu2 %v1339_v33  ;;  %v995_v33 = vadd.f32 %v4811_v59, %v6850_v22  ;;  %v5059_v22 = vadd.f32 %v6844_v12, %v6857_v28 }
 0x234   :  { %v4951_v1 = vpop.permute.xlu2 %887 }
 0x236   :  { %1599 = vperm.xlu1 %3757, %v1421_v58   ;;  %v4976_v6 = vpop.permute.xlu0 %713  ;;  %v4981_v58 = vpop.f32.mrf.mxu1 }
 0x237   :  { %1602 = vperm.xlu2 %3758, %v1422_v50   ;;  %6839 = vst [vmem:[#allocation64_spill] sm:$0xff] %v4981_v58  ;;  %v6864_v58 = vld [vmem:[#allocation28_spill] sm:$0xff] }
 0x239   :  { %v4944_v41 = vpop.permute.xlu1 %1056 }
 0x23d   :  { %v4971_v4 = vpop.permute.xlu2 %1028 }
 0x23e   :  { %1429 = vperm.xlu1 %3757, %v1393_v18   ;;  %6838 = vst [vmem:[#allocation63_spill] sm:$0xff] %v4971_v4  ;;  %v1338_v18 = vld [vmem:[#allocation7 + $0x20] sm:$0xff]  ;;  %v892_v51 = vpop.permute.xlu0 %891 }
 0x23f   :  { %1608 = vperm.xlu2 %3758, %v1424_v53   ;;  %1361 = vmatpush.msra.mxu2 %v1338_v18  ;;  %v1336_v53 = vld [vmem:[#allocation7 + $0x10] sm:$0xff]  ;;  %v6851_v18 = vld [vmem:[#allocation38_spill] sm:$0xff] }
 0x240   :  { %v644_v26 = vadd.f32 %v4806_v46, %v6851_v18  ;;  %v6858_v18 = vld [vmem:[#allocation48_spill] sm:$0xff] }
 0x241   :  { %1362 = vmatpush.msra.mxu2 %v1337_v11  ;;  %v1001_v9 = vadd.f32 %v4811_v59, %v6858_v18  ;;  %v1334_v18 = vld [vmem:[#allocation7] sm:$0xff] }
 0x242   :  { %v4959_v32 = vpop.permute.xlu1 %1225  ;;  %v751_v10 = vmul.f32 %v4976_v6, %v644_v26 }
 0x243   :  { %1363 = vmatpush.msra.mxu2 %v1336_v53 }
 0x246   :  { %1439 = vperm.xlu1 %3757, %v1395_v45   ;;  %v4987_v50 = vpop.permute.xlu2 %1229  ;;  %v5001_v45 = vadd.f32 %v4806_v46, %v4625_v3  ;;  %v5018_v3 = vadd.f32 %v4811_v59, %v4659_v16  ;;  %v6863_v46 = vld [vmem:[#allocation45_spill] sm:$0xff]  ;;  %v1218_v26 = vpop.permute.xlu0 %1217 }
 0x247   :  { %1444 = vperm.xlu2 %3758, %v1396_v38   ;;  %v5040_v38 = vadd.f32 %v6844_v12, %v6848_v15  ;;  %v5055_v15 = vmul.f32 %v6855_v47, %v617_v40  ;;  %v820_v47 = vadd.f32 %v6844_v12, %v6861_v2  ;;  %v6862_v40 = vld [vmem:[#allocation39_spill] sm:$0xff]  ;;  %v832_v28 = vadd.f32 %v6844_v12, %v6863_v46 }
 0x248   :  { %v829_v53 = vadd.f32 %v6844_v12, %v6862_v40  ;;  %v5083_v2 = vadd.f32 %v4818_v31, %v6864_v58  ;;  %v6866_v40 = vld [vmem:[#allocation31_spill] sm:$0xff] }
 0x249   :  { %6856 = vst [vmem:[#allocation34_spill] sm:$0xff] %v5055_v15  ;;  %v976_v15 = vpop.f32.mrf.mxu1  ;;  %v6867_v46 = vld [vmem:[#allocation35_spill] sm:$0xff]  ;;  %v921_v19 = vmul.f32 %v892_v51, %v832_v28  ;;  %v6872_v28 = vld [vmem:[#allocation40_spill] sm:$0xff] }
 0x24a   :  { %6865 = vst [vmem:[#allocation18_spill] sm:$0xff] %v5083_v2  ;;  %v920_v58 = vmul.f32 %v4951_v1, %v829_v53  ;;  %v6870_v2 = vld [vmem:[#allocation50_spill] sm:$0xff] }
 0x24b   :  { %v719_v43 = vpop.permute.xlu1 %718 }
 0x24c   :  { %v752_v13 = vmul.f32 %v719_v43, %v647_v61  ;;  %v826_v43 = vadd.f32 %v6844_v12, %v6867_v46  ;;  %v6868_v61 = vld [vmem:[#allocation30_spill] sm:$0xff]  ;;  %v1170_v46 = vadd.f32 %v4818_v31, %v6871_v62 }
 0x24d   :  { %v5092_v4 = vadd.f32 %v4818_v31, %v6868_v61 }
 0x24e   :  { %1454 = vperm.xlu1 %3757, %v1398_v36   ;;  %v6846_v36 = vld [vmem:[#allocation32_spill] sm:$0xff]  ;;  %v937_v1 = vadd.f32 %v921_v19, %v752_v13 }
 0x24f   :  { %v992_v16 = vadd.f32 %v4811_v59, %v6846_v36  ;;  %6849 = vst [vmem:[#allocation32_spill] sm:$0xff] %v5040_v38  ;;  %v6853_v36 = vld [vmem:[#allocation42_spill] sm:$0xff]  ;;  %v1335_v38 = vld [vmem:[#allocation7 + $0x8] sm:$0xff] }
 0x250   :  { %v998_v11 = vadd.f32 %v4811_v59, %v6853_v36  ;;  %v817_v36 = vadd.f32 %v6844_v12, %v6860_v37  ;;  %1364 = vmatpush.msra.mxu2 %v1335_v38  ;;  %v1401_v37 = vld [vmem:[%s6780_s6 + $0x40] sm:$0xff]  ;;  %v750_v38 = vmul.f32 %v4937_v63, %v641_v20  ;;  %v749_v63 = vmul.f32 %v4899_v34, %v638_v8  ;;  %v1399_v19 = vld [vmem:[%s6780_s6 + $0x30] sm:$0xff] }
 0x251   :  { %v919_v20 = vmul.f32 %v4914_v27, %v826_v43  ;;  %v936_v27 = vadd.f32 %v920_v58, %v751_v10  ;;  %1459 = vperm.xlu2 %3758, %v1399_v19   ;;  %v6875_v58 = vld [vmem:[#allocation56_spill] sm:$0xff]  ;;  %v6886_v19 = vld [vmem:[#allocation41_spill] sm:$0xff] }
 0x252   :  { %1365 = vmatpush.msra.mxu2 %v1334_v18  ;;  %v1089_v51 = vmul.f32 %v4944_v41, %v998_v11  ;;  %v1161_v18 = vadd.f32 %v4818_v31, %v6872_v28  ;;  %v917_v41 = vmul.f32 %v4872_v54, %v820_v47  ;;  %v916_v6 = vmul.f32 %v4870_v49, %v817_v36  ;;  %v1333_v11 = vld [vmem:[%s6781_s30 + $0x8] sm:$0xff] }
 0x253   :  { %1366 = vmatmul.f32.vlgmr.msra.gmra.mxu2 %v1332_v48  ;;  %v935_v8 = vadd.f32 %v919_v20, %v750_v38  ;;  %v1259_v48 = vmul.f32 %v4987_v50, %v1170_v46  ;;  %v6874_v38 = vld [vmem:[#allocation37_spill] sm:$0xff]  ;;  %v747_v49 = vmul.f32 %v4844_v23, %v5014_v60  ;;  %v977_v47 = vadd.f32 %v4811_v59, %v976_v15  ;;  %v6876_v46 = vld [vmem:[#allocation54_spill] sm:$0xff]  ;;  %v6878_v20 = vld [vmem:[#allocation59_spill] sm:$0xff] }
 0x254   :  { %v5003_v24 = vpop.permute.xlu1 %1205  ;;  %v1158_v54 = vadd.f32 %v4818_v31, %v6874_v38  ;;  %v746_v23 = vmul.f32 %v4847_v42, %v5010_v57  ;;  %v913_v15 = vmul.f32 %v6876_v46, %v5048_v44  ;;  %v915_v42 = vmul.f32 %v4912_v7, %v5065_v55  ;;  %v6881_v44 = vld [vmem:[#allocation58_spill] sm:$0xff]  ;;  %v1403_v7 = vld [vmem:[%s6780_s6 + $0x50] sm:$0xff]  ;;  %v6882_v55 = vld [vmem:[#allocation63_spill] sm:$0xff] }
 0x255   :  { %6843 = vst [vmem:[#allocation68_spill] sm:$0xff] %v5003_v24  ;;  %v823_v24 = vadd.f32 %v6844_v12, %v6866_v40  ;;  %v1167_v40 = vadd.f32 %v4818_v31, %v6870_v2  ;;  %v6873_v2 = vld [vmem:[#allocation44_spill] sm:$0xff]  ;;  %v932_v60 = vadd.f32 %v916_v6, %v747_v49  ;;  %1479 = vperm.xlu0 %3759, %v1403_v7   ;;  %v6904_v7 = vld [vmem:[#allocation61_spill] sm:$0xff] }
 0x256   :  { %1469 = vperm.xlu1 %3757, %v1401_v37   ;;  %v5105_v37 = vpop.permute.xlu2 %1024  ;;  %v1164_v62 = vadd.f32 %v4818_v31, %v6873_v2  ;;  %v931_v2 = vadd.f32 %v915_v42, %v746_v23  ;;  %v6887_v6 = vld [vmem:[#allocation32_spill] sm:$0xff] }
 0x257   :  { %v918_v34 = vmul.f32 %v4942_v35, %v823_v24  ;;  %v1258_v43 = vmul.f32 %v4959_v32, %v1167_v40  ;;  %v1087_v35 = vmul.f32 %v4922_v39, %v992_v16  ;;  %v1105_v24 = vadd.f32 %v1089_v51, %v936_v27  ;;  %v979_v16 = vpop.f32.mrf.mxu1 }
 0x258   :  { %v1257_v32 = vmul.f32 %v4932_v14, %v1164_v62  ;;  %v1086_v39 = vmul.f32 %v4886_v29, %v5026_v21  ;;  %v1085_v14 = vmul.f32 %v4884_v5, %v5018_v3  ;;  %v914_v40 = vmul.f32 %v6875_v58, %v5059_v22 }
 0x259   :  { %v934_v13 = vadd.f32 %v918_v34, %v749_v63  ;;  %v1274_v36 = vadd.f32 %v1258_v43, %v1105_v24  ;;  %v1255_v29 = vmul.f32 %v4907_v17, %v1158_v54  ;;  %v980_v3 = vadd.f32 %v4811_v59, %v979_v16  ;;  %v6877_v63 = vld [vmem:[#allocation65_spill] sm:$0xff]  ;;  %v6884_v43 = vld [vmem:[#allocation64_spill] sm:$0xff]  ;;  %v6893_v16 = vld [vmem:[#allocation62_spill] sm:$0xff] }
 0x25a   :  { %v745_v22 = vmul.f32 %v4879_v30, %v5001_v45  ;;  %v1101_v10 = vadd.f32 %v1085_v14, %v932_v60  ;;  %v1254_v62 = vmul.f32 %v6881_v44, %v5096_v25  ;;  %v1404_v30 = vld [vmem:[%s6780_s6 + $0x58] sm:$0xff]  ;;  %v1082_v34 = vmul.f32 %v6882_v55, %v977_v47  ;;  %v6891_v54 = vld [vmem:[#allocation24_spill] sm:$0xff] }
 0x25b   :  { %1369 = vmatmul.f32.gmra.mxu2 %v1333_v11  ;;  %v6885_v25 = vld [vmem:[#allocation69_spill] sm:$0xff]  ;;  %v6890_v11 = vld [vmem:[#allocation18_spill] sm:$0xff]  ;;  %v1143_v49 = vadd.f32 %v4818_v31, %v6891_v54  ;;  %v971_v14 = vadd.f32 %v4811_v59, %v6893_v16  ;;  %v2009_v16 = vld [vmem:[%s6699_s17 + $0xc8] sm:$0xff] }
 0x25c   :  { %2026 = vmatpush.msrb.mxu2 %v2009_v16 }
 0x25d   :  { %v1061_v61 = vpop.permute.xlu1 %1060 }
 0x25e   :  { %v1090_v53 = vmul.f32 %v1061_v61, %v1001_v9  ;;  %v1088_v9 = vmul.f32 %v4961_v52, %v995_v33  ;;  %v748_v52 = vmul.f32 %v4930_v0, %v5022_v56  ;;  %v1103_v56 = vadd.f32 %v1087_v35, %v934_v13  ;;  %v1194_v57 = vpop.permute.xlu2 %1193  ;;  %1484 = vperm.xlu1 %3757, %v1404_v30   ;;  %v6889_v35 = vld [vmem:[#allocation60_spill] sm:$0xff] }
 0x25f   :  { %v1084_v61 = vmul.f32 %v6878_v20, %v6877_v63  ;;  %v6899_v63 = vld [vmem:[#allocation22_spill] sm:$0xff] }
 0x260   :  { %v1106_v12 = vadd.f32 %v1090_v53, %v937_v1  ;;  %v1104_v33 = vadd.f32 %v1088_v9, %v935_v8  ;;  %v933_v0 = vadd.f32 %v917_v41, %v748_v52  ;;  %v6879_v1 = vld [vmem:[#allocation67_spill] sm:$0xff]  ;;  %v6880_v53 = vld [vmem:[#allocation52_spill] sm:$0xff]  ;;  %v911_v41 = vmul.f32 %v6886_v19, %v6885_v25  ;;  %v6888_v9 = vld [vmem:[#allocation49_spill] sm:$0xff] }
 0x261   :  { %v744_v28 = vmul.f32 %v6880_v53, %v6879_v1  ;;  %v6883_v8 = vld [vmem:[#allocation68_spill] sm:$0xff]  ;;  %v912_v13 = vmul.f32 %v6888_v9, %v6887_v6  ;;  %v1100_v24 = vadd.f32 %v1084_v61, %v931_v2  ;;  %v6892_v52 = vld [vmem:[#allocation27_spill] sm:$0xff]  ;;  %v1140_v20 = vadd.f32 %v4818_v31, %v6899_v63  ;;  %v6901_v1 = vld [vmem:[#allocation57_spill] sm:$0xff] }
 0x262   :  { %v1275_v50 = vadd.f32 %v1259_v48, %v1106_v12  ;;  %v1256_v12 = vmul.f32 %v1218_v26, %v1161_v18  ;;  %v1273_v21 = vadd.f32 %v1257_v32, %v1104_v33  ;;  %v1102_v17 = vadd.f32 %v1086_v39, %v933_v0  ;;  %v6895_v33 = vld [vmem:[#allocation46_spill] sm:$0xff]  ;;  %v1406_v9 = vld [vmem:[%s6780_s6 + $0x68] sm:$0xff] }
 0x263   :  { %v930_v18 = vadd.f32 %v914_v40, %v745_v22  ;;  %v1253_v27 = vmul.f32 %v6883_v8, %v5092_v4  ;;  %v974_v48 = vadd.f32 %v4811_v59, %v6884_v43  ;;  %v929_v26 = vadd.f32 %v913_v15, %v744_v28  ;;  %v6896_v0 = vld [vmem:[#allocation34_spill] sm:$0xff]  ;;  %v6897_v15 = vld [vmem:[#allocation17_spill] sm:$0xff]  ;;  %v6898_v22 = vld [vmem:[#allocation55_spill] sm:$0xff]  ;;  %1494 = vperm.xlu0 %3759, %v1406_v9  }
 0x264   :  { %1293 = vmatpush.msra.mxu1 %v1275_v50  ;;  %v1272_v51 = vadd.f32 %v1256_v12, %v1103_v56  ;;  %v1271_v45 = vadd.f32 %v1255_v29, %v1102_v17  ;;  %v1083_v32 = vmul.f32 %v6889_v35, %v980_v3  ;;  %v1198_v50 = vpop.permute.xlu0 %1197  ;;  %v1270_v4 = vadd.f32 %v1254_v62, %v1101_v10  ;;  %v6894_v12 = vld [vmem:[#allocation66_spill] sm:$0xff]  ;;  %v6902_v28 = vld [vmem:[#allocation43_spill] sm:$0xff]  ;;  %v6905_v43 = vld [vmem:[#allocation20_spill] sm:$0xff] }
 0x265   :  { %v1146_v39 = vadd.f32 %v4818_v31, %v6892_v52  ;;  %v1098_v47 = vadd.f32 %v1082_v34, %v929_v26  ;;  %v1081_v58 = vmul.f32 %v5105_v37, %v974_v48  ;;  %v1269_v40 = vadd.f32 %v1253_v27, %v1100_v24  ;;  %v1407_v37 = vld [vmem:[%s6780_s6 + $0x70] sm:$0xff]  ;;  %v6903_v62 = vld [vmem:[#allocation26_spill] sm:$0xff] }
 0x266   :  { %v1202_v5 = vpop.permute.xlu1 %1201  ;;  %1294 = vmatpush.msra.mxu1 %v1274_v36  ;;  %v743_v36 = vmul.f32 %v6895_v33, %v6894_v12  ;;  %v1099_v23 = vadd.f32 %v1083_v32, %v930_v18  ;;  %v927_v60 = vadd.f32 %v911_v41, %v6896_v0  ;;  %v799_v42 = vadd.f32 %v6898_v22, %v6897_v15  ;;  %v1190_v61 = vpop.permute.xlu2 %1189  ;;  %v3893_v6 = vld [vmem:[%s6908_s11] ss:$0 sm:$0xff] }
 0x267   :  { %v1252_v38 = vmul.f32 %v1202_v5, %v6890_v11  ;;  %v1250_v5 = vmul.f32 %v1194_v57, %v1143_v49  ;;  %1499 = vperm.xlu1 %3757, %v1407_v37   ;;  %v6900_v57 = vld [vmem:[#allocation16_spill] sm:$0xff]  ;;  %v1249_v44 = vmul.f32 %v1190_v61, %v1140_v20  ;;  %v1137_v48 = vadd.f32 %v4818_v31, %v6905_v43  ;;  %v1774_v0 = vld [vmem:[%s6699_s17 + $0x40] sm:$0xff] }
 0x268   :  { %1295 = vmatpush.msra.mxu1 %v1273_v21  ;;  %v928_v29 = vadd.f32 %v912_v13, %v743_v36  ;;  %v1251_v21 = vmul.f32 %v1198_v50, %v1146_v39  ;;  %v614_v53 = vadd.f32 %v6901_v1, %v6900_v57  ;;  %v910_v18 = vmul.f32 %v6902_v28, %v799_v42  ;;  %v1408_v39 = vld [vmem:[%s6780_s6 + $0x78] sm:$0xff]  ;;  %v1776_v36 = vld [vmem:[%s6699_s17 + $0xc0] sm:$0xff] }
 0x269   :  { %v1268_v3 = vadd.f32 %v1252_v38, %v1099_v23  ;;  %v6906_v19 = vlaneseq  ;;  %v6909_v35 = vmov 1   ;;  %v6736_v50 = vmov 1.0   ;;  %v2177_v23 = vld [vmem:[%s6699_s17 + $0x90] sm:$0xff]  ;;  %v5298_v37 = vld [vmem:[%s6697_s15] ss:$0 sm:$0xff] }
 0x26a   :  { %1296 = vmatpush.msra.mxu1 %v1272_v51  ;;  %v1097_v17 = vadd.f32 %v1081_v58, %v928_v29  ;;  %v1267_v51 = vadd.f32 %v1251_v21, %v1098_v47  ;;  %v741_v30 = vmul.f32 %v6903_v62, %v614_v53  ;;  %v1775_v58 = vld [vmem:[%s6699_s17 + $0x80] sm:$0xff]  ;;  %v2176_v29 = vld [vmem:[%s6699_s17 + $0x50] sm:$0xff]  ;;  %v2006_v21 = vld [vmem:[%s6699_s17 + $0x8] sm:$0xff] }
 0x26b   :  { %v5199_v41 = vshrl.u32 %v6906_v19, 7 }
 0x26c   :  { %1297 = vmatpush.msra.mxu1 %v1271_v45  ;;  %v1266_v2 = vadd.f32 %v1250_v5, %v1097_v17  ;;  %v968_v45 = vadd.f32 %v4811_v59, %v6904_v7  ;;  %v1186_v55 = vpop.permute.xlu0 %1185  ;;  %v926_v27 = vadd.f32 %v910_v18, %v741_v30  ;;  %v1402_v59 = vld [vmem:[%s6780_s6 + $0x48] sm:$0xff]  ;;  %v2175_v5 = vld [vmem:[%s6699_s17 + $0x10] sm:$0xff]  ;;  %v5303_v17 = vld [vmem:[%s6698_s16] ss:$0 sm:$0xff]  ;;  %s7025_s16 = sld [smem:[#allocation75_spill]] }
 0x26d   :  { %6907 = vst [vmem:[#allocation36_spill] sm:$0xff] %v5199_v41  ;;  %v1248_v13 = vmul.f32 %v1186_v55, %v1137_v48  ;;  %1474 = vperm.xlu2 %3758, %v1402_v59   ;;  %vm1281_vm4 = vcmp.eq.s32.totalorder %v3893_v6, %v5199_v41  ;;  %v5220_v38 = vadd.s32 8, %v5199_v41 }
 0x26e   :  { %1298 = vmatpush.msra.mxu1 %v1270_v4  ;;  %v5210_v31 = vpop.permute.xlu2 %1322  ;;  %v1405_v4 = vld [vmem:[%s6780_s6 + $0x60] sm:$0xff]  ;;  %s7019_s6 = sld [smem:[#allocation77_spill]] }
 0x26f   :  { %v1021_v56 = vpop.permute.xlu1 %1020  ;;  %3760 = vset.pattern.permute.xlu1 %v6909_v35  ;;  %6910 = vst [vmem:[#allocation38_spill] sm:$0xff] %v5220_v38  ;;  %vm1282_vm5 = vcmp.eq.s32.totalorder %v3893_v6, %v5220_v38 }
 0x270   :  { %v1080_v46 = vmul.f32 %v1021_v56, %v971_v14  ;;  %1299 = vmatpush.msra.mxu1 %v1269_v40  ;;  %v2178_v14 = vld [vmem:[%s6699_s17 + $0xd0] sm:$0xff]  ;;  %v2008_v40 = vld [vmem:[%s6699_s17 + $0x88] sm:$0xff]  ;;  %v1773_v56 = vld [vmem:[%s6699_s17] sm:$0xff] }
 0x271   :  { %2195 = vmatpush.msra.mxu0 %v2178_v14  ;;  %2027 = vmatpush.msrb.mxu2 %v2008_v40 }
 0x272   :  { %v1096_v10 = vadd.f32 %v1080_v46, %v927_v60  ;;  %1300 = vmatpush.msra.mxu1 %v1268_v3  ;;  %v2007_v60 = vld [vmem:[%s6699_s17 + $0x48] sm:$0xff] }
 0x273   :  { %2196 = vmatpush.msra.mxu0 %v2177_v23  ;;  %2028 = vmatpush.msrb.mxu2 %v2007_v60 }
 0x274   :  { %1301 = vmatpush.msra.mxu1 %v1267_v51  ;;  %v1265_v34 = vadd.f32 %v1249_v44, %v1096_v10  ;;  %v5214_v24 = vpop.permute.xlu0 %1563 }
 0x275   :  { %1489 = vperm.xlu2 %3758, %v1405_v4   ;;  %2197 = vmatpush.msra.mxu0 %v2176_v29 }
 0x276   :  { %1302 = vmatpush.msra.mxu1 %v1266_v2  ;;  %v5226_v54 = vpop.permute.xlu2 %1569  ;;  %2029 = vmatpush.msrb.mxu2 %v2006_v21 }
 0x277   :  { %v1017_v8 = vpop.permute.xlu1 %1016  ;;  %2198 = vmatpush.msra.mxu0 %v2175_v5 }
 0x278   :  { %v1079_v25 = vmul.f32 %v1017_v8, %v968_v45  ;;  %1303 = vmatpush.msra.mxu1 %v1265_v34 }
 0x27a   :  { %v1095_v26 = vadd.f32 %v1079_v25, %v926_v27 }
 0x27c   :  { %v1264_v32 = vadd.f32 %v1248_v13, %v1095_v26  ;;  %v5231_v52 = vpop.permute.xlu0 %1578 }
 0x27d   :  { %1504 = vperm.xlu2 %3758, %v1408_v39  }
 0x27e   :  { %1304 = vmatpush.msra.mxu1 %v1264_v32  ;;  %v5242_v12 = vpop.permute.xlu2 %1575 }
 0x27f   :  { %3509 = vmatmul.msk.f32.vlgmr.msra.gmra.mxu1 %vm1281_vm4, %v6736_v50 }
 0x280   :  { %v5217_v11 = vpop.permute.xlu1 %1327  ;;  %1841 = vmatpush.msrb.mxu1 %v1776_v36 }
 0x282   :  { %1842 = vmatpush.msrb.mxu1 %v1775_v58 }
 0x284   :  { %v5249_v47 = vpop.permute.xlu0 %1587  ;;  %1843 = vmatpush.msrb.mxu1 %v1774_v0 }
 0x285   :  { %3764 = vset.pattern.permute.xlu2 %v6909_v35 }
 0x286   :  { %v5281_v46 = vpop.permute.xlu2 %1584  ;;  %1844 = vmatpush.msrb.mxu1 %v1773_v56 }
 0x287   :  { %3510 = vmatmul.msk.f32.gmra.mxu1 %vm1282_vm5, %v6736_v50 }
 0x288   :  { %v5229_v49 = vpop.permute.xlu1 %1566 }
 0x28c   :  { %v5283_v15 = vpop.permute.xlu0 %1596 }
 0x28e   :  { %v5287_v42 = vpop.permute.xlu2 %1593 }
 0x290   :  { %v5244_v33 = vpop.permute.xlu1 %1572 }
 0x294   :  { %v5289_v63 = vpop.permute.xlu0 %1605 }
 0x296   :  { %v5293_v61 = vpop.permute.xlu2 %1602 }
 0x298   :  { %v5279_v3 = vpop.permute.xlu1 %1581 }
 0x29c   :  { %v1435_v51 = vpop.permute.xlu0 %1434 }
 0x29d   :  { %v1511_v53 = vmul.f32 %v5298_v37, %v1435_v51 }
 0x29e   :  { %v5310_v18 = vpop.permute.xlu2 %1608 }
 0x29f   :  { %v1531_v2 = vadd.f32 %v5303_v17, %v1511_v53 }
 0x2a0   :  { %v5285_v22 = vpop.permute.xlu1 %1590 }
 0x2a1   :  { %v5319_v62 = vmax.f32 %v1531_v2, 0.0 }
 0x2a4   :  { %v1450_v27 = vpop.permute.xlu0 %1449 }
 0x2a5   :  { %v1514_v48 = vmul.f32 %v5298_v37, %v1450_v27 }
 0x2a6   :  { %v1445_v45 = vpop.permute.xlu2 %1444 }
 0x2a7   :  { %v1513_v34 = vmul.f32 %v5298_v37, %v1445_v45  ;;  %v1534_v25 = vadd.f32 %v5303_v17, %v1514_v48 }
 0x2a8   :  { %v5291_v20 = vpop.permute.xlu1 %1599 }
 0x2a9   :  { %v1533_v8 = vadd.f32 %v5303_v17, %v1513_v34  ;;  %v5349_v6 = vmax.f32 %v1534_v25, 0.0 }
 0x2ab   :  { %v5339_v43 = vmax.f32 %v1533_v8, 0.0 }
 0x2ac   :  { %v1465_v39 = vpop.permute.xlu0 %1464 }
 0x2ad   :  { %v1517_v14 = vmul.f32 %v5298_v37, %v1465_v39 }
 0x2ae   :  { %v1460_v13 = vpop.permute.xlu2 %1459 }
 0x2af   :  { %v1516_v32 = vmul.f32 %v5298_v37, %v1460_v13  ;;  %v1537_v36 = vadd.f32 %v5303_v17, %v1517_v14 }
 0x2b0   :  { %v1430_v10 = vpop.permute.xlu1 %1429 }
 0x2b1   :  { %v1510_v57 = vmul.f32 %v5298_v37, %v1430_v10  ;;  %v1536_v4 = vadd.f32 %v5303_v17, %v1516_v32  ;;  %v5379_v40 = vmax.f32 %v1537_v36, 0.0  ;;  %v6911_v32 = vld [vmem:[#allocation15_spill] sm:$0xff] }
 0x2b2   :  { %vm1610_vm6 = vcmp.eq.s32.totalorder %v5214_v24, %v6911_v32  ;;  %v2516_v24 = vld [vmem:[%s6699_s17 + $0xe0] sm:$0xff]  ;;  %vm1611_vm7 = vcmp.eq.s32.totalorder %v5229_v49, %v6911_v32  ;;  %v2851_v49 = vld [vmem:[%s6699_s17 + $0x30] sm:$0xff]  ;;  %vm1612_vm8 = vcmp.eq.s32.totalorder %v5226_v54, %v6911_v32  ;;  %vm1613_vm9 = vcmp.eq.s32.totalorder %v5244_v33, %v6911_v32 }
 0x2b3   :  { %v1530_v1 = vadd.f32 %v5303_v17, %v1510_v57  ;;  %v5369_v16 = vmax.f32 %v1536_v4, 0.0  ;;  %2533 = vmatpush.msra.mxu1 %v2516_v24  ;;  %vm1614_vm10 = vcmp.eq.s32.totalorder %v5242_v12, %v6911_v32  ;;  %vm1615_vm11 = vcmp.eq.s32.totalorder %v5231_v52, %v6911_v32 }
 0x2b4   :  { %vm1616_vm12 = vcmp.eq.s32.totalorder %v5279_v3, %v6911_v32  ;;  %vm1617_vm13 = vcmp.eq.s32.totalorder %v5281_v46, %v6911_v32  ;;  %vm1618_vm14 = vcmp.eq.s32.totalorder %v5249_v47, %v6911_v32  ;;  %vm1619_vm15 = vcmp.eq.s32.totalorder %v5285_v22, %v6911_v32 }
 0x2b5   :  { %v5308_v28 = vmax.f32 %v1530_v1, 0.0  ;;  %vm1620_vm1 = vcmp.eq.s32.totalorder %v5287_v42, %v6911_v32  ;;  %vm1621_vm2 = vcmp.eq.s32.totalorder %v5283_v15, %v6911_v32  ;;  %v2347_v15 = vld [vmem:[%s6699_s17 + $0xd8] sm:$0xff]  ;;  %vm1622_vm4 = vcmp.eq.s32.totalorder %v5291_v20, %v6911_v32 }
 0x2b6   :  { %v2344_v20 = vld [vmem:[%s6699_s17 + $0x18] sm:$0xff]  ;;  %vm1623_vm5 = vcmp.eq.s32.totalorder %v5293_v61, %v6911_v32 }
 0x2b7   :  { %3543 = vmatmul.msk.f32.vlgmr.msrb.gmra.mxu1 %vm547_vm3, %v5308_v28  ;;  %3559 = vmatmul.msk.f32.vlgmr.msrb.gmra.mxu2 %vm547_vm3, %v5308_v28  ;;  %v3257_v61 = vld [vmem:[#allocation9 + $0x70] sm:$0xff] }
 0x2b8   :  { %3575 = vmatmul.msk.f32.vlgmr.msra.gmra.mxu0 %vm547_vm3, %v5308_v28  ;;  %v1440_v44 = vpop.permute.xlu1 %1439 }
 0x2b9   :  { %v1512_v30 = vmul.f32 %v5298_v37, %v1440_v44 }
 0x2bb   :  { %v1532_v7 = vadd.f32 %v5303_v17, %v1512_v30 }
 0x2bd   :  { %v5329_v55 = vmax.f32 %v1532_v7, 0.0  ;;  %v3896_v7 = vld [vmem:[%s6695_s13] ss:$0 sm:$0xff] }
 0x2bf   :  { %3544 = vmatmul.msk.f32.gmra.mxu1 %vm547_vm3, %v5319_v62  ;;  %3560 = vmatmul.msk.f32.gmra.mxu2 %vm547_vm3, %v5319_v62 }
 0x2c0   :  { %3576 = vmatmul.msk.f32.gmra.mxu0 %vm547_vm3, %v5319_v62  ;;  %v1455_v19 = vpop.permute.xlu1 %1454 }
 0x2c1   :  { %v1515_v59 = vmul.f32 %v5298_v37, %v1455_v19  ;;  %v3897_v19 = vld [vmem:[%s6696_s14] ss:$0 sm:$0xff] }
 0x2c3   :  { %v1535_v9 = vadd.f32 %v5303_v17, %v1515_v59 }
 0x2c5   :  { %v5359_v26 = vmax.f32 %v1535_v9, 0.0 }
 0x2c7   :  { %3545 = vmatmul.msk.f32.gmra.mxu1 %vm547_vm3, %v5329_v55  ;;  %3561 = vmatmul.msk.f32.gmra.mxu2 %vm547_vm3, %v5329_v55  ;;  %v1475_v60 = vpop.permute.xlu2 %1474  ;;  %v1480_v5 = vpop.permute.xlu0 %1479 }
 0x2c8   :  { %3577 = vmatmul.msk.f32.gmra.mxu0 %vm547_vm3, %v5329_v55  ;;  %v1470_v58 = vpop.permute.xlu1 %1469  ;;  %v1519_v56 = vmul.f32 %v5298_v37, %v1475_v60  ;;  %v1520_v57 = vmul.f32 %v5298_v37, %v1480_v5  ;;  %v2685_v60 = vld [vmem:[%s6699_s17 + $0xe8] sm:$0xff] }
 0x2c9   :  { %v1518_v23 = vmul.f32 %v5298_v37, %v1470_v58  ;;  %v6912_v58 = vmov 0.0   ;;  %2702 = vmatpush.msra.mxu2 %v2685_v60 }
 0x2ca   :  { %v1539_v21 = vadd.f32 %v5303_v17, %v1519_v56  ;;  %v1540_v2 = vadd.f32 %v5303_v17, %v1520_v57  ;;  %v2854_v56 = vld [vmem:[%s6699_s17 + $0xf0] sm:$0xff]  ;;  %v2684_v57 = vld [vmem:[%s6699_s17 + $0xa8] sm:$0xff]  ;;  %v3514_v24 = vsel %vm1613_vm9, 1.0, %v6912_v58  ;;  %v3515_v33 = vsel %vm1614_vm10, 1.0, %v6912_v58 }
 0x2cb   :  { %v1538_v0 = vadd.f32 %v5303_v17, %v1518_v23  ;;  %v3511_v23 = vsel %vm1610_vm6, 1.0, %v6912_v58  ;;  %2871 = vmatpush.msrb.mxu0 %v2854_v56  ;;  %2703 = vmatpush.msra.mxu2 %v2684_v57  ;;  %v3516_v12 = vsel %vm1615_vm11, 1.0, %v6912_v58  ;;  %v3517_v52 = vsel %vm1616_vm12, 1.0, %v6912_v58  ;;  %v2345_v57 = vld [vmem:[%s6699_s17 + $0x58] sm:$0xff] }
 0x2cc   :  { %v5399_v51 = vmax.f32 %v1539_v21, 0.0  ;;  %v5413_v45 = vmax.f32 %v1540_v2, 0.0  ;;  %v3518_v3 = vsel %vm1617_vm13, 1.0, %v6912_v58  ;;  %v3519_v46 = vsel %vm1618_vm14, 1.0, %v6912_v58 }
 0x2cd   :  { %v5389_v29 = vmax.f32 %v1538_v0, 0.0  ;;  %v3520_v47 = vsel %vm1619_vm15, 1.0, %v6912_v58  ;;  %v3521_v22 = vsel %vm1620_vm1, 1.0, %v6912_v58  ;;  %vm1624_vm6 = vcmp.eq.s32.totalorder %v5289_v63, %v6911_v32  ;;  %v3253_v63 = vld [vmem:[#allocation9 + $0x50] sm:$0xff] }
 0x2cf   :  { %3546 = vmatmul.msk.f32.gmra.mxu1 %vm547_vm3, %v5339_v43  ;;  %3562 = vmatmul.msk.f32.gmra.mxu2 %vm547_vm3, %v5339_v43  ;;  %v1490_v4 = vpop.permute.xlu2 %1489 }
 0x2d0   :  { %3578 = vmatmul.msk.f32.gmra.mxu0 %vm547_vm3, %v5339_v43  ;;  %v1485_v44 = vpop.permute.xlu1 %1484  ;;  %v1522_v14 = vmul.f32 %v5298_v37, %v1490_v4 }
 0x2d1   :  { %v1521_v8 = vmul.f32 %v5298_v37, %v1485_v44  ;;  %v2514_v44 = vld [vmem:[%s6699_s17 + $0x60] sm:$0xff] }
 0x2d2   :  { %v1542_v21 = vadd.f32 %v5303_v17, %v1522_v14 }
 0x2d3   :  { %v1541_v59 = vadd.f32 %v5303_v17, %v1521_v8 }
 0x2d5   :  { %v5433_v39 = vmax.f32 %v1541_v59, 0.0  ;;  %v1495_v5 = vpop.permute.xlu0 %1494 }
 0x2d6   :  { %v1367_v10 = vpop.f32.mrf.mxu2  ;;  %v1523_v2 = vmul.f32 %v5298_v37, %v1495_v5 }
 0x2d7   :  { %3547 = vmatmul.msk.f32.gmra.mxu1 %vm547_vm3, %v5349_v6  ;;  %3563 = vmatmul.msk.f32.gmra.mxu2 %vm547_vm3, %v5349_v6  ;;  %v1505_v4 = vpop.permute.xlu2 %1504 }
 0x2d8   :  { %3579 = vmatmul.msk.f32.gmra.mxu0 %vm547_vm3, %v5349_v6  ;;  %v1543_v8 = vadd.f32 %v5303_v17, %v1523_v2  ;;  %v1525_v54 = vmul.f32 %v5298_v37, %v1505_v4  ;;  %v3523_v2 = vsel %vm1622_vm4, 1.0, %v6912_v58  ;;  %v3252_v4 = vld [vmem:[#allocation9 + $0x48] sm:$0xff] }
 0x2de   :  { %v1370_v34 = vpop.f32.mrf.mxu2 }
 0x2df   :  { %3548 = vmatmul.msk.f32.gmra.mxu1 %vm547_vm3, %v5359_v26  ;;  %3564 = vmatmul.msk.f32.gmra.mxu2 %vm547_vm3, %v5359_v26 }
 0x2e0   :  { %3580 = vmatmul.msk.f32.gmra.mxu0 %vm547_vm3, %v5359_v26 }
 0x2e7   :  { %3549 = vmatmul.msk.f32.gmra.mxu1 %vm547_vm3, %v5369_v16  ;;  %3565 = vmatmul.msk.f32.gmra.mxu2 %vm547_vm3, %v5369_v16 }
 0x2e8   :  { %3581 = vmatmul.msk.f32.gmra.mxu0 %vm547_vm3, %v5369_v16 }
 0x2ef   :  { %3550 = vmatmul.msk.f32.gmra.mxu1 %vm547_vm3, %v5379_v40  ;;  %3566 = vmatmul.msk.f32.gmra.mxu2 %vm547_vm3, %v5379_v40 }
 0x2f0   :  { %3582 = vmatmul.msk.f32.gmra.mxu0 %vm547_vm3, %v5379_v40 }
 0x2f7   :  { %3551 = vmatmul.msk.f32.gmra.mxu1 %vm547_vm3, %v5389_v29  ;;  %3567 = vmatmul.msk.f32.gmra.mxu2 %vm547_vm3, %v5389_v29 }
 0x2f8   :  { %3583 = vmatmul.msk.f32.gmra.mxu0 %vm547_vm3, %v5389_v29 }
 0x2fc   :  { %v1306_v1 = vpop.f32.mrf.mxu1 }
 0x2fd   :  { %v1330_v53 = vmul.f32 %v5210_v31, %v1306_v1  ;;  %v2853_v1 = vld [vmem:[%s6699_s17 + $0xb0] sm:$0xff] }
 0x2fe   :  { %2872 = vmatpush.msrb.mxu0 %v2853_v1 }
 0x2ff   :  { %3552 = vmatmul.msk.f32.gmra.mxu1 %vm547_vm3, %v5399_v51  ;;  %3568 = vmatmul.msk.f32.gmra.mxu2 %vm547_vm3, %v5399_v51  ;;  %v1373_v30 = vadd.f32 %v1367_v10, %v1330_v53  ;;  %v2515_v10 = vld [vmem:[%s6699_s17 + $0xa0] sm:$0xff]  ;;  %v5469_v53 = vmax.f32 %v1542_v21, 0.0  ;;  %v3522_v21 = vsel %vm1621_vm2, 1.0, %v6912_v58 }
 0x300   :  { %3584 = vmatmul.msk.f32.gmra.mxu0 %vm547_vm3, %v5399_v51  ;;  %2534 = vmatpush.msra.mxu1 %v2515_v10  ;;  %v2346_v10 = vld [vmem:[%s6699_s17 + $0x98] sm:$0xff] }
 0x301   :  { %v1379_v48 = vmul.f32 %v3896_v7, %v1373_v30  ;;  %6913 = vst [vmem:[#allocation19_spill] sm:$0xff] %v5469_v53  ;;  %v2683_v30 = vld [vmem:[%s6699_s17 + $0x68] sm:$0xff] }
 0x302   :  { %2535 = vmatpush.msra.mxu1 %v2514_v44  ;;  %2704 = vmatpush.msra.mxu2 %v2683_v30 }
 0x304   :  { %v1309_v31 = vpop.f32.mrf.mxu1 }
 0x305   :  { %v1331_v27 = vmul.f32 %v5217_v11, %v1309_v31  ;;  %v5429_v11 = vadd.f32 %v3897_v19, %v1379_v48  ;;  %v2513_v31 = vld [vmem:[%s6699_s17 + $0x20] sm:$0xff]  ;;  %v1500_v48 = vpop.permute.xlu1 %1499 }
 0x306   :  { %2536 = vmatpush.msra.mxu1 %v2513_v31  ;;  %v3524_v31 = vsel %vm1623_vm5, 1.0, %v6912_v58 }
 0x307   :  { %v1374_v25 = vadd.f32 %v1370_v34, %v1331_v27  ;;  %3553 = vmatmul.msk.f32.gmra.mxu1 %vm547_vm3, %v5413_v45  ;;  %3569 = vmatmul.msk.f32.gmra.mxu2 %vm547_vm3, %v5413_v45  ;;  %v1387_v0 = vmax.f32 %v5429_v11, 0.0  ;;  %v2682_v34 = vld [vmem:[%s6699_s17 + $0x28] sm:$0xff]  ;;  %v3512_v27 = vsel %vm1611_vm7, 1.0, %v6912_v58  ;;  %vm1625_vm7 = vcmp.eq.s32.totalorder %v5310_v18, %v6911_v32  ;;  %v3250_v18 = vld [vmem:[#allocation9 + $0x38] sm:$0xff]  ;;  %v3249_v32 = vld [vmem:[#allocation9 + $0x30] sm:$0xff] }
 0x308   :  { %3585 = vmatmul.msk.f32.gmra.mxu0 %vm547_vm3, %v5413_v45  ;;  %2705 = vmatpush.msra.mxu2 %v2682_v34 }
 0x309   :  { %v1380_v9 = vmul.f32 %v3896_v7, %v1374_v25  ;;  %v2852_v7 = vld [vmem:[%s6699_s17 + $0x70] sm:$0xff]  ;;  %v1524_v25 = vmul.f32 %v5298_v37, %v1500_v48 }
 0x30a   :  { %2873 = vmatpush.msrb.mxu0 %v2852_v7  ;;  %v3258_v7 = vld [vmem:[#allocation9 + $0x78] sm:$0xff] }
 0x30b   :  { %v5427_v13 = vadd.f32 %v3897_v19, %v1380_v9  ;;  %v5502_v19 = vmax.f32 %v1543_v8, 0.0  ;;  %v1544_v59 = vadd.f32 %v5303_v17, %v1524_v25  ;;  %v3513_v9 = vsel %vm1612_vm8, 1.0, %v6912_v58  ;;  %3259 = vmatpush.msrb.mxu2 %v3258_v7  ;;  %v3256_v8 = vld [vmem:[#allocation9 + $0x68] sm:$0xff] }
 0x30c   :  { %2874 = vmatpush.msrb.mxu0 %v2851_v49  ;;  %v3525_v25 = vsel %vm1624_vm6, 1.0, %v6912_v58 }
 0x30d   :  { %v1388_v36 = vmax.f32 %v5427_v13, 0.0  ;;  %6914 = vst [vmem:[#allocation42_spill] sm:$0xff] %v5502_v19  ;;  %v5515_v14 = vmax.f32 %v1544_v59, 0.0  ;;  %3260 = vmatpush.msrb.mxu2 %v3257_v61  ;;  %v3254_v59 = vld [vmem:[#allocation9 + $0x58] sm:$0xff]  ;;  %v6921_v61 = vmov 3  }
 0x30f   :  { %1722 = vmatpush.msrb.mxu3 %v1388_v36  ;;  %3554 = vmatmul.msk.f32.gmra.mxu1 %vm547_vm3, %v5433_v39  ;;  %6915 = vst [vmem:[#allocation47_spill] sm:$0xff] %v5515_v14 }
 0x310   :  { %3570 = vmatmul.msk.f32.gmra.mxu2 %vm547_vm3, %v5433_v39  ;;  %3586 = vmatmul.msk.f32.gmra.mxu0 %vm547_vm3, %v5433_v39 }
 0x311   :  { %1723 = vmatpush.msrb.mxu3 %v1387_v0  ;;  %3261 = vmatpush.msrb.mxu2 %v3256_v8  ;;  %v6922_v8 = vmov 2  }
 0x312   :  { %3527 = vmatmul.msk.f32.vlgmr.msrb.gmra.mxu3 %vm425_vm0, %v3511_v23  ;;  %v1545_v23 = vadd.f32 %v5303_v17, %v1525_v54 }
 0x313   :  { %2364 = vmatpush.msra.mxu3 %v2347_v15 }
 0x314   :  { %v5529_v60 = vmax.f32 %v1545_v23, 0.0  ;;  %v3251_v23 = vld [vmem:[#allocation9 + $0x40] sm:$0xff] }
 0x315   :  { %2365 = vmatpush.msra.mxu3 %v2346_v10  ;;  %v3244_v10 = vld [vmem:[#allocation9 + $0x8] sm:$0xff] }
 0x316   :  { %6916 = vst [vmem:[#allocation51_spill] sm:$0xff] %v5529_v60 }
 0x317   :  { %3555 = vmatmul.msk.f32.gmra.mxu1 %vm547_vm3, %v5469_v53  ;;  %2366 = vmatpush.msra.mxu3 %v2345_v57  ;;  %v3243_v57 = vld [vmem:[#allocation9] sm:$0xff] }
 0x318   :  { %3571 = vmatmul.msk.f32.gmra.mxu2 %vm547_vm3, %v5469_v53  ;;  %3587 = vmatmul.msk.f32.gmra.mxu0 %vm547_vm3, %v5469_v53 }
 0x319   :  { %2367 = vmatpush.msra.mxu3 %v2344_v20 }
 0x31a   :  { %3528 = vmatmul.msk.f32.gmra.mxu3 %vm425_vm0, %v3512_v27  ;;  %v3255_v27 = vld [vmem:[#allocation9 + $0x60] sm:$0xff] }
 0x31b   :  { %3262 = vmatpush.msrb.mxu2 %v3255_v27 }
 0x31d   :  { %3263 = vmatpush.msrb.mxu2 %v3254_v59 }
 0x31f   :  { %3556 = vmatmul.msk.f32.gmra.mxu1 %vm547_vm3, %v5502_v19  ;;  %3264 = vmatpush.msrb.mxu2 %v3253_v63  ;;  %v6746_v63 = vmov 4  }
 0x320   :  { %3572 = vmatmul.msk.f32.gmra.mxu2 %vm547_vm3, %v5502_v19  ;;  %3588 = vmatmul.msk.f32.gmra.mxu0 %vm547_vm3, %v5502_v19 }
 0x321   :  { %3265 = vmatpush.msrb.mxu2 %v3252_v4  ;;  %v6926_v4 = vmov 0  }
 0x322   :  { %3529 = vmatmul.msk.f32.gmra.mxu3 %vm425_vm0, %v3513_v9 }
 0x323   :  { %3266 = vmatpush.msrb.mxu2 %v3251_v23 }
 0x325   :  { %3267 = vmatpush.msrb.mxu2 %v3250_v18 }
 0x327   :  { %3557 = vmatmul.msk.f32.gmra.mxu1 %vm547_vm3, %v5515_v14  ;;  %3268 = vmatpush.msrb.mxu2 %v3249_v32 }
 0x328   :  { %3573 = vmatmul.msk.f32.gmra.mxu2 %vm547_vm3, %v5515_v14  ;;  %3589 = vmatmul.msk.f32.gmra.mxu0 %vm547_vm3, %v5515_v14 }
 0x32a   :  { %3530 = vmatmul.msk.f32.gmra.mxu3 %vm425_vm0, %v3514_v24  ;;  %v3526_v24 = vsel %vm1625_vm7, 1.0, %v6912_v58 }
 0x32f   :  { %3558 = vmatmul.msk.f32.gmra.mxu1 %vm547_vm3, %v5529_v60 }
 0x330   :  { %3574 = vmatmul.msk.f32.gmra.mxu2 %vm547_vm3, %v5529_v60  ;;  %3590 = vmatmul.msk.f32.gmra.mxu0 %vm547_vm3, %v5529_v60 }
 0x332   :  { %3531 = vmatmul.msk.f32.gmra.mxu3 %vm425_vm0, %v3515_v33 }
 0x334   :  { %v5581_v37 = vpop.f32.mrf.mxu1 }
 0x335   :  { %v5622_v5 = vpop.f32.mrf.mxu0 }
 0x337   :  { %3607 = vmatmul.msk.f32.vlgmr.msra.gmra.mxu1 %vm547_vm3, %v5308_v28 }
 0x338   :  { %3623 = vmatmul.msk.f32.vlgmr.msra.gmra.mxu2 %vm547_vm3, %v5308_v28  ;;  %3639 = vmatmul.msk.f32.vlgmr.msrb.gmra.mxu0 %vm547_vm3, %v5308_v28 }
 0x33a   :  { %3532 = vmatmul.msk.f32.gmra.mxu3 %vm425_vm0, %v3516_v12  ;;  %v5607_v56 = vpop.f32.mrf.mxu2  ;;  %v3248_v12 = vld [vmem:[#allocation9 + $0x28] sm:$0xff] }
 0x33b   :  { %3269 = vmatpush.msrb.mxu2 %v3248_v12 }
 0x33c   :  { %v5595_v17 = vpop.f32.mrf.mxu1 }
 0x33d   :  { %v5649_v30 = vpop.f32.mrf.mxu0 }
 0x33f   :  { %3608 = vmatmul.msk.f32.gmra.mxu1 %vm547_vm3, %v5319_v62 }
 0x340   :  { %3624 = vmatmul.msk.f32.gmra.mxu2 %vm547_vm3, %v5319_v62  ;;  %3640 = vmatmul.msk.f32.gmra.mxu0 %vm547_vm3, %v5319_v62 }
 0x342   :  { %3533 = vmatmul.msk.f32.gmra.mxu3 %vm425_vm0, %v3517_v52  ;;  %v5641_v1 = vpop.f32.mrf.mxu2  ;;  %v3247_v52 = vld [vmem:[#allocation9 + $0x20] sm:$0xff] }
 0x343   :  { %3270 = vmatpush.msrb.mxu2 %v3247_v52  ;;  %v6739_v52 = vmov 5  }
 0x344   :  { %v5611_v42 = vpop.f32.mrf.mxu1 }
 0x345   :  { %v5667_v48 = vpop.f32.mrf.mxu0 }
 0x347   :  { %3609 = vmatmul.msk.f32.gmra.mxu1 %vm547_vm3, %v5329_v55 }
 0x348   :  { %3625 = vmatmul.msk.f32.gmra.mxu2 %vm547_vm3, %v5329_v55  ;;  %3641 = vmatmul.msk.f32.gmra.mxu0 %vm547_vm3, %v5329_v55 }
 0x34a   :  { %3534 = vmatmul.msk.f32.gmra.mxu3 %vm425_vm0, %v3518_v3  ;;  %v5659_v34 = vpop.f32.mrf.mxu2 }
 0x34c   :  { %v5644_v44 = vpop.f32.mrf.mxu1 }
 0x34d   :  { %v5688_v33 = vpop.f32.mrf.mxu0 }
 0x34f   :  { %3610 = vmatmul.msk.f32.gmra.mxu1 %vm547_vm3, %v5339_v43 }
 0x350   :  { %3626 = vmatmul.msk.f32.gmra.mxu2 %vm547_vm3, %v5339_v43  ;;  %3642 = vmatmul.msk.f32.gmra.mxu0 %vm547_vm3, %v5339_v43 }
 0x352   :  { %3535 = vmatmul.msk.f32.gmra.mxu3 %vm425_vm0, %v3519_v46  ;;  %v5675_v9 = vpop.f32.mrf.mxu2 }
 0x354   :  { %v5661_v49 = vpop.f32.mrf.mxu1 }
 0x357   :  { %3611 = vmatmul.msk.f32.gmra.mxu1 %vm547_vm3, %v5349_v6 }
 0x358   :  { %3627 = vmatmul.msk.f32.gmra.mxu2 %vm547_vm3, %v5349_v6  ;;  %3643 = vmatmul.msk.f32.gmra.mxu0 %vm547_vm3, %v5349_v6 }
 0x35a   :  { %3536 = vmatmul.msk.f32.gmra.mxu3 %vm425_vm0, %v3520_v47  ;;  %v5691_v3 = vpop.f32.mrf.mxu2  ;;  %v3246_v47 = vld [vmem:[#allocation9 + $0x18] sm:$0xff] }
 0x35b   :  { %3271 = vmatpush.msrb.mxu2 %v3246_v47 }
 0x35c   :  { %v5679_v54 = vpop.f32.mrf.mxu1 }
 0x35f   :  { %3612 = vmatmul.msk.f32.gmra.mxu1 %vm547_vm3, %v5359_v26 }
 0x360   :  { %3628 = vmatmul.msk.f32.gmra.mxu2 %vm547_vm3, %v5359_v26  ;;  %3644 = vmatmul.msk.f32.gmra.mxu0 %vm547_vm3, %v5359_v26 }
 0x362   :  { %3537 = vmatmul.msk.f32.gmra.mxu3 %vm425_vm0, %v3521_v22  ;;  %v5703_v22 = vpop.f32.mrf.mxu0  ;;  %v5715_v20 = vpop.f32.mrf.mxu2 }
 0x364   :  { %v5695_v46 = vpop.f32.mrf.mxu1 }
 0x365   :  { %6917 = vst [vmem:[#allocation21_spill] sm:$0xff] %v5695_v46 }
 0x367   :  { %3613 = vmatmul.msk.f32.gmra.mxu1 %vm547_vm3, %v5369_v16 }
 0x368   :  { %3629 = vmatmul.msk.f32.gmra.mxu2 %vm547_vm3, %v5369_v16  ;;  %3645 = vmatmul.msk.f32.gmra.mxu0 %vm547_vm3, %v5369_v16 }
 0x36a   :  { %3538 = vmatmul.msk.f32.gmra.mxu3 %vm425_vm0, %v3522_v21  ;;  %v3245_v21 = vld [vmem:[#allocation9 + $0x10] sm:$0xff]  ;;  %v5738_v27 = vpop.f32.mrf.mxu2 }
 0x36b   :  { %3272 = vmatpush.msrb.mxu2 %v3245_v21  ;;  %6923 = vst [vmem:[#allocation29_spill] sm:$0xff] %v5738_v27 }
 0x36d   :  { %3273 = vmatpush.msrb.mxu2 %v3244_v10 }
 0x36f   :  { %3614 = vmatmul.msk.f32.gmra.mxu1 %vm547_vm3, %v5379_v40  ;;  %3274 = vmatpush.msrb.mxu2 %v3243_v57 }
 0x370   :  { %3630 = vmatmul.msk.f32.gmra.mxu2 %vm547_vm3, %v5379_v40  ;;  %3646 = vmatmul.msk.f32.gmra.mxu0 %vm547_vm3, %v5379_v40 }
 0x372   :  { %3539 = vmatmul.msk.f32.gmra.mxu3 %vm425_vm0, %v3523_v2  ;;  %v5717_v2 = vpop.f32.mrf.mxu1 }
 0x373   :  { %6919 = vst [vmem:[#allocation23_spill] sm:$0xff] %v5717_v2 }
 0x377   :  { %3615 = vmatmul.msk.f32.gmra.mxu1 %vm547_vm3, %v5389_v29 }
 0x378   :  { %3631 = vmatmul.msk.f32.gmra.mxu2 %vm547_vm3, %v5389_v29  ;;  %3647 = vmatmul.msk.f32.gmra.mxu0 %vm547_vm3, %v5389_v29 }
 0x37a   :  { %3540 = vmatmul.msk.f32.gmra.mxu3 %vm425_vm0, %v3524_v31  ;;  %v5723_v31 = vpop.f32.mrf.mxu0 }
 0x37f   :  { %3616 = vmatmul.msk.f32.gmra.mxu1 %vm547_vm3, %v5399_v51 }
 0x380   :  { %3632 = vmatmul.msk.f32.gmra.mxu2 %vm547_vm3, %v5399_v51  ;;  %3648 = vmatmul.msk.f32.gmra.mxu0 %vm547_vm3, %v5399_v51 }
 0x382   :  { %3541 = vmatmul.msk.f32.gmra.mxu3 %vm425_vm0, %v3525_v25  ;;  %v5740_v25 = vpop.f32.mrf.mxu1  ;;  %v5746_v23 = vpop.f32.mrf.mxu0 }
 0x383   :  { %6924 = vst [vmem:[#allocation39_spill] sm:$0xff] %v5740_v25 }
 0x384   :  { %6927 = vst [vmem:[#allocation28_spill] sm:$0xff] %v5746_v23  ;;  %v5962_v23 = vld [vmem:[%s6700_s18 + $0x2] ss:$0 sm:$0xff] }
 0x385   :  { %v2207_v46 = vadd.f32 %v5962_v23, %v5667_v48 }
 0x387   :  { %3617 = vmatmul.msk.f32.gmra.mxu1 %vm547_vm3, %v5413_v45 }
 0x388   :  { %3633 = vmatmul.msk.f32.gmra.mxu2 %vm547_vm3, %v5413_v45  ;;  %3649 = vmatmul.msk.f32.gmra.mxu0 %vm547_vm3, %v5413_v45 }
 0x38a   :  { %3542 = vmatmul.msk.f32.gmra.mxu3 %vm425_vm0, %v3526_v24  ;;  %v5760_v24 = vpop.f32.mrf.mxu2  ;;  %v5764_v32 = vpop.f32.mrf.mxu1 }
 0x38b   :  { %6929 = vst [vmem:[#allocation35_spill] sm:$0xff] %v5764_v32  ;;  %v5771_v12 = vpop.f32.mrf.mxu0 }
 0x38c   :  { %6930 = vst [vmem:[#allocation30_spill] sm:$0xff] %v5771_v12 }
 0x38f   :  { %3618 = vmatmul.msk.f32.gmra.mxu1 %vm547_vm3, %v5433_v39 }
 0x390   :  { %3634 = vmatmul.msk.f32.gmra.mxu2 %vm547_vm3, %v5433_v39  ;;  %3650 = vmatmul.msk.f32.gmra.mxu0 %vm547_vm3, %v5433_v39 }
 0x392   :  { %3591 = vmatmul.msk.f32.vlgmr.msra.gmra.mxu3 %vm547_vm3, %v5308_v28  ;;  %v5784_v21 = vpop.f32.mrf.mxu2  ;;  %v5786_v10 = vpop.f32.mrf.mxu1 }
 0x393   :  { %6932 = vst [vmem:[#allocation50_spill] sm:$0xff] %v5784_v21 }
 0x394   :  { %6933 = vst [vmem:[#allocation53_spill] sm:$0xff] %v5786_v10 }
 0x395   :  { %v5705_v15 = vpop.f32.mrf.mxu3 }
 0x396   :  { %6918 = vst [vmem:[#allocation48_spill] sm:$0xff] %v5705_v15  ;;  %2080 = vperm.xlu1 %3760, %v5705_v15   ;;  %1896 = vperm.xlu0 %3759, %v5705_v15  }
 0x397   :  { %3619 = vmatmul.msk.f32.gmra.mxu1 %vm547_vm3, %v5469_v53 }
 0x398   :  { %3635 = vmatmul.msk.f32.gmra.mxu2 %vm547_vm3, %v5469_v53  ;;  %3651 = vmatmul.msk.f32.gmra.mxu0 %vm547_vm3, %v5469_v53 }
 0x39a   :  { %3592 = vmatmul.msk.f32.gmra.mxu3 %vm547_vm3, %v5319_v62  ;;  %v5800_v50 = vpop.f32.mrf.mxu2  ;;  %v5804_v11 = vpop.f32.mrf.mxu1 }
 0x39b   :  { %6934 = vst [vmem:[#allocation40_spill] sm:$0xff] %v5800_v50 }
 0x39c   :  { %6935 = vst [vmem:[#allocation44_spill] sm:$0xff] %v5804_v11  ;;  %v3023_v11 = vld [vmem:[%s6699_s17 + $0xf8] sm:$0xff] }
 0x39d   :  { %v5721_v7 = vpop.f32.mrf.mxu3  ;;  %3040 = vmatpush.msrb.mxu3 %v3023_v11 }
 0x39e   :  { %6920 = vst [vmem:[#allocation25_spill] sm:$0xff] %v5721_v7  ;;  %3762 = vset.pattern.permute.xlu1 %v6921_v61  ;;  %3761 = vset.pattern.permute.xlu0 %v6922_v8 }
 0x39f   :  { %2084 = vperm.xlu2 %3764, %v5721_v7   ;;  %2418 = vperm.xlu1 %3762, %v5705_v15  }
 0x3a0   :  { %2249 = vperm.xlu0 %3761, %v5705_v15   ;;  %3620 = vmatmul.msk.f32.gmra.mxu1 %vm547_vm3, %v5502_v19  ;;  %v3021_v15 = vld [vmem:[%s6699_s17 + $0x78] sm:$0xff] }
 0x3a1   :  { %3636 = vmatmul.msk.f32.gmra.mxu2 %vm547_vm3, %v5502_v19  ;;  %3652 = vmatmul.msk.f32.gmra.mxu0 %vm547_vm3, %v5502_v19 }
 0x3a2   :  { %3593 = vmatmul.msk.f32.gmra.mxu3 %vm547_vm3, %v5329_v55  ;;  %v5815_v58 = vpop.f32.mrf.mxu1 }
 0x3a3   :  { %6936 = vst [vmem:[#allocation37_spill] sm:$0xff] %v5815_v58 }
 0x3a5   :  { %v5742_v59 = vpop.f32.mrf.mxu3 }
 0x3a6   :  { %6925 = vst [vmem:[#allocation45_spill] sm:$0xff] %v5742_v59 }
 0x3a7   :  { %3767 = vset.pattern.permute.xlu2 %v6746_v63  ;;  %3763 = vset.pattern.permute.xlu1 %v6926_v4 }
 0x3a8   :  { %3769 = vset.pattern.permute.xlu0 %v6909_v35  ;;  %2591 = vperm.xlu2 %3767, %v5721_v7  }
 0x3a9   :  { %3621 = vmatmul.msk.f32.gmra.mxu1 %vm547_vm3, %v5515_v14  ;;  %3637 = vmatmul.msk.f32.gmra.mxu2 %vm547_vm3, %v5515_v14 }
 0x3aa   :  { %3653 = vmatmul.msk.f32.gmra.mxu0 %vm547_vm3, %v5515_v14  ;;  %1901 = vperm.xlu1 %3763, %v5721_v7   ;;  %v5831_v38 = vpop.f32.mrf.mxu1 }
 0x3ab   :  { %2088 = vperm.xlu0 %3769, %v5742_v59   ;;  %3594 = vmatmul.msk.f32.gmra.mxu3 %vm547_vm3, %v5339_v43  ;;  %6938 = vst [vmem:[#allocation54_spill] sm:$0xff] %v5831_v38 }
 0x3ad   :  { %v5762_v18 = vpop.f32.mrf.mxu3 }
 0x3ae   :  { %6928 = vst [vmem:[#allocation31_spill] sm:$0xff] %v5762_v18 }
 0x3b0   :  { %3768 = vset.pattern.permute.xlu2 %v6926_v4 }
 0x3b1   :  { %3622 = vmatmul.msk.f32.gmra.mxu1 %vm547_vm3, %v5529_v60  ;;  %3638 = vmatmul.msk.f32.gmra.mxu2 %vm547_vm3, %v5529_v60 }
 0x3b2   :  { %3654 = vmatmul.msk.f32.gmra.mxu0 %vm547_vm3, %v5529_v60  ;;  %3765 = vset.pattern.permute.xlu1 %v6922_v8  ;;  %v5847_v38 = vpop.f32.mrf.mxu1 }
 0x3b3   :  { %3772 = vset.pattern.permute.xlu0 %v6739_v52  ;;  %1906 = vperm.xlu2 %3768, %v5742_v59   ;;  %6940 = vst [vmem:[#allocation59_spill] sm:$0xff] %v5847_v38  ;;  %v6944_v38 = vmov 5  }
 0x3b4   :  { %2253 = vperm.xlu1 %3765, %v5721_v7   ;;  %2764 = vperm.xlu0 %3772, %v5742_v59  }
 0x3b5   :  { %3595 = vmatmul.msk.f32.gmra.mxu3 %vm547_vm3, %v5349_v6  ;;  %v5782_v47 = vpop.f32.mrf.mxu3 }
 0x3b6   :  { %6931 = vst [vmem:[#allocation33_spill] sm:$0xff] %v5782_v47 }
 0x3b9   :  { %3275 = vmatmul.f32.vlgmr.msrb.gmra.mxu2 %v1387_v0 }
 0x3bb   :  { %3770 = vset.pattern.permute.xlu2 %v6922_v8 }
 0x3bc   :  { %3766 = vset.pattern.permute.xlu1 %v6921_v61  ;;  %3773 = vset.pattern.permute.xlu0 %v6926_v4 }
 0x3bd   :  { %2257 = vperm.xlu2 %3770, %v5742_v59   ;;  %2422 = vperm.xlu1 %3766, %v5721_v7   ;;  %v5795_v57 = vpop.f32.mrf.mxu3  ;;  %v3022_v7 = vld [vmem:[%s6699_s17 + $0xb8] sm:$0xff] }
 0x3be   :  { %1911 = vperm.xlu0 %3773, %v5762_v18   ;;  %3596 = vmatmul.msk.f32.gmra.mxu3 %vm547_vm3, %v5359_v26 }
 0x3bf   :  { %3041 = vmatpush.msrb.mxu3 %v3022_v7 }
 0x3c1   :  { %3278 = vmatmul.f32.gmra.mxu2 %v1388_v36  ;;  %v5827_v36 = vpop.f32.mrf.mxu2  ;;  %3042 = vmatpush.msrb.mxu3 %v3021_v15  ;;  %v6757_v15 = vmov 7  }
 0x3c2   :  { %6937 = vst [vmem:[#allocation56_spill] sm:$0xff] %v5827_v36  ;;  %v5865_v36 = vpop.f32.mrf.mxu1 }
 0x3c3   :  { %6945 = vst [vmem:[#allocation58_spill] sm:$0xff] %v5865_v36 }
 0x3c5   :  { %3771 = vset.pattern.permute.xlu2 %v6746_v63  ;;  %2426 = vperm.xlu1 %3766, %v5742_v59   ;;  %v5808_v0 = vpop.f32.mrf.mxu3 }
 0x3c6   :  { %2595 = vperm.xlu2 %3771, %v5742_v59   ;;  %3778 = vset.pattern.permute.xlu0 %v6739_v52 }
 0x3c7   :  { %3597 = vmatmul.msk.f32.gmra.mxu3 %vm547_vm3, %v5369_v16  ;;  %2768 = vperm.xlu0 %3778, %v5762_v18  }
 0x3c9   :  { %v5841_v41 = vpop.f32.mrf.mxu2 }
 0x3ca   :  { %6939 = vst [vmem:[#allocation65_spill] sm:$0xff] %v5841_v41  ;;  %v5892_v50 = vpop.f32.mrf.mxu1 }
 0x3cb   :  { %6948 = vst [vmem:[#allocation64_spill] sm:$0xff] %v5892_v50 }
 0x3cd   :  { %3774 = vset.pattern.permute.xlu1 %v6909_v35  ;;  %v5818_v13 = vpop.f32.mrf.mxu3 }
 0x3ce   :  { %3776 = vset.pattern.permute.xlu2 %v6921_v61  ;;  %2092 = vperm.xlu1 %3774, %v5762_v18  }
 0x3cf   :  { %3598 = vmatmul.msk.f32.gmra.mxu3 %vm547_vm3, %v5379_v40  ;;  %2430 = vperm.xlu2 %3776, %v5762_v18  }
 0x3d0   :  { %3783 = vset.pattern.permute.xlu0 %v6746_v63 }
 0x3d1   :  { %2603 = vperm.xlu0 %3783, %v5782_v47   ;;  %v5859_v58 = vpop.f32.mrf.mxu2 }
 0x3d2   :  { %6943 = vst [vmem:[#allocation52_spill] sm:$0xff] %v5859_v58 }
 0x3d5   :  { %v5829_v52 = vpop.f32.mrf.mxu3 }
 0x3d6   :  { %3775 = vset.pattern.permute.xlu1 %v6922_v8 }
 0x3d7   :  { %3599 = vmatmul.msk.f32.gmra.mxu3 %vm547_vm3, %v5389_v29  ;;  %3777 = vset.pattern.permute.xlu2 %v6746_v63  ;;  %v5853_v63 = vpop.f32.mrf.mxu0 }
 0x3d8   :  { %2599 = vperm.xlu2 %3777, %v5762_v18   ;;  %2261 = vperm.xlu1 %3775, %v5762_v18   ;;  %6941 = vst [vmem:[#allocation67_spill] sm:$0xff] %v5853_v63  ;;  %v6942_v18 = vmov 4  }
 0x3d9   :  { %3788 = vset.pattern.permute.xlu0 %v6922_v8  ;;  %v5880_v36 = vpop.f32.mrf.mxu2 }
 0x3da   :  { %2269 = vperm.xlu0 %3788, %v5795_v57   ;;  %6947 = vst [vmem:[#allocation68_spill] sm:$0xff] %v5880_v36  ;;  %v5904_v36 = vld [vmem:[%s6700_s18 + $0x1] ss:$0 sm:$0xff] }
 0x3db   :  { %v2035_v7 = vadd.f32 %v5904_v36, %v5641_v1  ;;  %v2541_v1 = vpop.f32.mrf.mxu1 }
 0x3dd   :  { %v5843_v59 = vpop.f32.mrf.mxu3 }
 0x3df   :  { %3600 = vmatmul.msk.f32.gmra.mxu3 %vm547_vm3, %v5399_v51  ;;  %v5870_v10 = vpop.f32.mrf.mxu0 }
 0x3e0   :  { %3780 = vset.pattern.permute.xlu2 %v6909_v35  ;;  %3779 = vset.pattern.permute.xlu1 %v6926_v4  ;;  %6946 = vst [vmem:[#allocation63_spill] sm:$0xff] %v5870_v10  ;;  %v6754_v10 = vmov 6  }
 0x3e1   :  { %2096 = vperm.xlu2 %3780, %v5782_v47   ;;  %1916 = vperm.xlu1 %3779, %v5782_v47   ;;  %v5912_v32 = vpop.f32.mrf.mxu2 }
 0x3e2   :  { %3790 = vset.pattern.permute.xlu0 %v6942_v18  ;;  %6950 = vst [vmem:[#allocation41_spill] sm:$0xff] %v5912_v32 }
 0x3e3   :  { %2607 = vperm.xlu0 %3790, %v5795_v57  }
 0x3e5   :  { %v5857_v41 = vpop.f32.mrf.mxu3 }
 0x3e7   :  { %3601 = vmatmul.msk.f32.gmra.mxu3 %vm547_vm3, %v5413_v45 }
 0x3e9   :  { %3781 = vset.pattern.permute.xlu2 %v6922_v8  ;;  %3784 = vset.pattern.permute.xlu1 %v6944_v38  ;;  %v5941_v12 = vpop.f32.mrf.mxu2 }
 0x3ea   :  { %2265 = vperm.xlu2 %3781, %v5782_v47   ;;  %2772 = vperm.xlu1 %3784, %v5782_v47   ;;  %6953 = vst [vmem:[#allocation60_spill] sm:$0xff] %v5941_v12 }
 0x3eb   :  { %3794 = vset.pattern.permute.xlu0 %v6926_v4 }
 0x3ec   :  { %1926 = vperm.xlu0 %3794, %v5808_v0  }
 0x3ed   :  { %v5873_v58 = vpop.f32.mrf.mxu3 }
 0x3ef   :  { %3602 = vmatmul.msk.f32.gmra.mxu3 %vm547_vm3, %v5433_v39 }
 0x3f2   :  { %3782 = vset.pattern.permute.xlu2 %v6921_v61  ;;  %3785 = vset.pattern.permute.xlu1 %v6754_v10  ;;  %v3020_v10 = vld [vmem:[%s6699_s17 + $0x38] sm:$0xff] }
 0x3f3   :  { %2434 = vperm.xlu2 %3782, %v5782_v47   ;;  %2941 = vperm.xlu1 %3785, %v5782_v47   ;;  %v5906_v47 = vpop.f32.mrf.mxu0 }
 0x3f4   :  { %3797 = vset.pattern.permute.xlu0 %v6921_v61  ;;  %6949 = vst [vmem:[#allocation69_spill] sm:$0xff] %v5906_v47  ;;  %3043 = vmatpush.msrb.mxu3 %v3020_v10 }
 0x3f5   :  { %2442 = vperm.xlu0 %3797, %v5808_v0   ;;  %v5896_v11 = vpop.f32.mrf.mxu3 }
 0x3f7   :  { %3603 = vmatmul.msk.f32.gmra.mxu3 %vm547_vm3, %v5469_v53 }
 0x3f9   :  { %v2085_v50 = vpop.permute.xlu2 %2084 }
 0x3fa   :  { %v5914_v21 = vmul.f32 %v2085_v50, %v2035_v7  ;;  %v5927_v50 = vld [vmem:[%s6700_s18 + $0x4] ss:$0 sm:$0xff] }
 0x3fb   :  { %3786 = vset.pattern.permute.xlu2 %v6926_v4  ;;  %3787 = vset.pattern.permute.xlu1 %v6909_v35  ;;  %v5931_v10 = vpop.f32.mrf.mxu0  ;;  %v2542_v7 = vadd.f32 %v5927_v50, %v2541_v1 }
 0x3fc   :  { %2100 = vperm.xlu1 %3787, %v5795_v57   ;;  %1921 = vperm.xlu2 %3786, %v5795_v57   ;;  %6952 = vst [vmem:[#allocation49_spill] sm:$0xff] %v5931_v10 }
 0x3fd   :  { %3801 = vset.pattern.permute.xlu0 %v6757_v15  ;;  %v5921_v47 = vpop.f32.mrf.mxu3  ;;  %v5937_v15 = vld [vmem:[%s6700_s18] ss:$0 sm:$0xff] }
 0x3fe   :  { %6951 = vst [vmem:[#allocation32_spill] sm:$0xff] %v5921_v47  ;;  %3118 = vperm.xlu0 %3801, %v5808_v0   ;;  %v1847_v1 = vadd.f32 %v5937_v15, %v5581_v37  ;;  %v6956_v37 = vmov 6   ;;  %v5966_v47 = vpop.f32.mrf.mxu2 }
 0x3ff   :  { %3604 = vmatmul.msk.f32.gmra.mxu3 %vm547_vm3, %v5502_v19  ;;  %6957 = vst [vmem:[#allocation27_spill] sm:$0xff] %v5966_v47 }
 0x402   :  { %v2592_v32 = vpop.permute.xlu2 %2591 }
 0x403   :  { %v5939_v25 = vmul.f32 %v2592_v32, %v2542_v7  ;;  %v2032_v32 = vadd.f32 %v5904_v36, %v5607_v56  ;;  %v5957_v19 = vpop.f32.mrf.mxu0 }
 0x404   :  { %3791 = vset.pattern.permute.xlu1 %v6944_v38  ;;  %3789 = vset.pattern.permute.xlu2 %v6921_v61  ;;  %6955 = vst [vmem:[#allocation24_spill] sm:$0xff] %v5957_v19 }
 0x405   :  { %2776 = vperm.xlu1 %3791, %v5795_v57   ;;  %2438 = vperm.xlu2 %3789, %v5795_v57   ;;  %v5947_v10 = vpop.f32.mrf.mxu3 }
 0x406   :  { %6954 = vst [vmem:[#allocation18_spill] sm:$0xff] %v5947_v10  ;;  %3803 = vset.pattern.permute.xlu0 %v6909_v35 }
 0x407   :  { %2108 = vperm.xlu0 %3803, %v5818_v13   ;;  %3605 = vmatmul.msk.f32.gmra.mxu3 %vm547_vm3, %v5515_v14 }
 0x408   :  { %v2081_v7 = vpop.permute.xlu1 %2080  ;;  %v1897_v12 = vpop.permute.xlu0 %1896 }
 0x409   :  { %v2143_v2 = vmul.f32 %v2081_v7, %v2032_v32  ;;  %v1974_v63 = vmul.f32 %v1897_v12, %v1847_v1  ;;  %v5981_v7 = vld [vmem:[%s6700_s18 + $0x3] ss:$0 sm:$0xff] }
 0x40b   :  { %v2159_v10 = vadd.f32 %v2143_v2, %v1974_v63  ;;  %v2201_v2 = vadd.f32 %v5962_v23, %v5622_v5  ;;  %v5983_v47 = vpop.f32.mrf.mxu0 }
 0x40c   :  { %6959 = vst [vmem:[#allocation66_spill] sm:$0xff] %v5983_v47 }
 0x40d   :  { %3796 = vset.pattern.permute.xlu1 %v6922_v8  ;;  %3792 = vset.pattern.permute.xlu2 %v6956_v37  ;;  %v1907_v56 = vpop.permute.xlu2 %1906  ;;  %v5970_v12 = vpop.f32.mrf.mxu3 }
 0x40e   :  { %2945 = vperm.xlu2 %3792, %v5795_v57   ;;  %2273 = vperm.xlu1 %3796, %v5808_v0   ;;  %6958 = vst [vmem:[#allocation62_spill] sm:$0xff] %v5970_v12  ;;  %v6960_v12 = vmov 7  }
 0x40f   :  { %3805 = vset.pattern.permute.xlu0 %v6921_v61  ;;  %3606 = vmatmul.msk.f32.gmra.mxu3 %vm547_vm3, %v5529_v60 }
 0x410   :  { %2446 = vperm.xlu0 %3805, %v5818_v13  }
 0x411   :  { %v2419_v63 = vpop.permute.xlu1 %2418 }
 0x412   :  { %v2250_v1 = vpop.permute.xlu0 %2249 }
 0x413   :  { %v2312_v32 = vmul.f32 %v2250_v1, %v2201_v2  ;;  %v5991_v1 = vpop.f32.mrf.mxu2  ;;  %v6006_v53 = vpop.f32.mrf.mxu0 }
 0x414   :  { %6961 = vst [vmem:[#allocation46_spill] sm:$0xff] %v5991_v1 }
 0x415   :  { %v2328_v19 = vadd.f32 %v2312_v32, %v2159_v10  ;;  %v2369_v60 = vpop.f32.mrf.mxu3  ;;  %v1850_v32 = vadd.f32 %v5937_v15, %v5595_v17 }
 0x416   :  { %3793 = vset.pattern.permute.xlu2 %v6960_v12  ;;  %3798 = vset.pattern.permute.xlu1 %v6942_v18  ;;  %v2370_v2 = vadd.f32 %v5981_v7, %v2369_v60  ;;  %v2038_v60 = vadd.f32 %v5904_v36, %v5659_v34 }
 0x417   :  { %3655 = vmatmul.msk.f32.vlgmr.msrb.gmra.mxu3 %vm547_vm3, %v5308_v28  ;;  %v2258_v5 = vpop.permute.xlu2 %2257  ;;  %3114 = vperm.xlu2 %3793, %v5795_v57   ;;  %v1853_v28 = vadd.f32 %v5937_v15, %v5611_v42  ;;  %v2544_v57 = vpop.f32.mrf.mxu1 }
 0x418   :  { %2611 = vperm.xlu1 %3798, %v5808_v0   ;;  %3809 = vset.pattern.permute.xlu0 %v6960_v12  ;;  %v2481_v10 = vmul.f32 %v2419_v63, %v2370_v2  ;;  %v2314_v42 = vmul.f32 %v2258_v5, %v2207_v46  ;;  %v2204_v46 = vadd.f32 %v5962_v23, %v5649_v30 }
 0x419   :  { %3122 = vperm.xlu0 %3809, %v5818_v13   ;;  %v1976_v63 = vmul.f32 %v1907_v56, %v1853_v28 }
 0x41a   :  { %v5998_v47 = vadd.f32 %v2481_v10, %v2328_v19  ;;  %v2545_v19 = vadd.f32 %v5927_v50, %v2544_v57 }
 0x41c   :  { %v1902_v1 = vpop.permute.xlu1 %1901 }
 0x41d   :  { %v1975_v14 = vmul.f32 %v1902_v1, %v1850_v32  ;;  %v2089_v27 = vpop.permute.xlu0 %2088  ;;  %v2372_v17 = vpop.f32.mrf.mxu3 }
 0x41e   :  { %v2145_v2 = vmul.f32 %v2089_v27, %v2038_v60  ;;  %v2713_v27 = vpop.f32.mrf.mxu2  ;;  %v6028_v60 = vpop.f32.mrf.mxu0  ;;  %v2373_v30 = vadd.f32 %v5981_v7, %v2372_v17 }
 0x41f   :  { %v2160_v10 = vadd.f32 %v5914_v21, %v1975_v14  ;;  %3656 = vmatmul.msk.f32.gmra.mxu3 %vm547_vm3, %v5319_v62  ;;  %3795 = vset.pattern.permute.xlu2 %v6909_v35  ;;  %v6021_v62 = vld [vmem:[%s6700_s18 + $0x5] ss:$0 sm:$0xff] }
 0x420   :  { %v2161_v34 = vadd.f32 %v2145_v2, %v1976_v63  ;;  %3799 = vset.pattern.permute.xlu1 %v6944_v38  ;;  %v2596_v1 = vpop.permute.xlu2 %2595  ;;  %2104 = vperm.xlu2 %3795, %v5808_v0   ;;  %v2714_v21 = vadd.f32 %v6021_v62, %v2713_v27 }
 0x421   :  { %v2652_v48 = vmul.f32 %v2596_v1, %v2545_v19  ;;  %2780 = vperm.xlu1 %3799, %v5808_v0   ;;  %3812 = vset.pattern.permute.xlu0 %v6922_v8 }
 0x422   :  { %2281 = vperm.xlu0 %3812, %v5829_v52   ;;  %v2330_v14 = vadd.f32 %v2314_v42, %v2161_v34 }
 0x425   :  { %v2375_v57 = vpop.f32.mrf.mxu3 }
 0x426   :  { %v2254_v56 = vpop.permute.xlu1 %2253  ;;  %v2765_v5 = vpop.permute.xlu0 %2764 }
 0x427   :  { %3657 = vmatmul.msk.f32.gmra.mxu3 %vm547_vm3, %v5329_v55  ;;  %v2313_v32 = vmul.f32 %v2254_v56, %v2204_v46  ;;  %v2821_v28 = vmul.f32 %v2765_v5, %v2714_v21  ;;  %v2547_v55 = vpop.f32.mrf.mxu1  ;;  %v6041_v1 = vpop.f32.mrf.mxu0 }
 0x428   :  { %3800 = vset.pattern.permute.xlu2 %v6956_v37  ;;  %v2548_v34 = vadd.f32 %v5927_v50, %v2547_v55  ;;  %6962 = vst [vmem:[#allocation34_spill] sm:$0xff] %v6041_v1  ;;  %v2716_v5 = vpop.f32.mrf.mxu2 }
 0x429   :  { %v2329_v63 = vadd.f32 %v2313_v32, %v2160_v10  ;;  %3802 = vset.pattern.permute.xlu1 %v6926_v4  ;;  %v2431_v2 = vpop.permute.xlu2 %2430  ;;  %2949 = vperm.xlu2 %3800, %v5808_v0   ;;  %v2376_v32 = vadd.f32 %v5981_v7, %v2375_v57  ;;  %v2717_v55 = vadd.f32 %v6021_v62, %v2716_v5 }
 0x42a   :  { %1931 = vperm.xlu1 %3802, %v5818_v13   ;;  %3816 = vset.pattern.permute.xlu0 %v6956_v37 }
 0x42b   :  { %2957 = vperm.xlu0 %3816, %v5829_v52  }
 0x42e   :  { %v2378_v0 = vpop.f32.mrf.mxu3 }
 0x42f   :  { %3658 = vmatmul.msk.f32.gmra.mxu3 %vm547_vm3, %v5339_v43  ;;  %v2423_v19 = vpop.permute.xlu1 %2422  ;;  %v2379_v46 = vadd.f32 %v5981_v7, %v2378_v0  ;;  %v6063_v57 = vpop.f32.mrf.mxu0 }
 0x430   :  { %v2482_v42 = vmul.f32 %v2423_v19, %v2373_v30  ;;  %v1912_v10 = vpop.permute.xlu0 %1911 }
 0x431   :  { %3804 = vset.pattern.permute.xlu2 %v6922_v8  ;;  %v2484_v43 = vmul.f32 %v2431_v2, %v2379_v46  ;;  %v2044_v2 = vadd.f32 %v5904_v36, %v5691_v3  ;;  %v2041_v46 = vadd.f32 %v5904_v36, %v5675_v9  ;;  %v2210_v9 = vadd.f32 %v5962_v23, %v5688_v33 }
 0x432   :  { %v2498_v27 = vadd.f32 %v2482_v42, %v2329_v63  ;;  %3806 = vset.pattern.permute.xlu1 %v6942_v18  ;;  %v2600_v21 = vpop.permute.xlu2 %2599  ;;  %2277 = vperm.xlu2 %3804, %v5818_v13  }
 0x433   :  { %v6046_v17 = vmul.f32 %v2600_v21, %v2548_v34  ;;  %2615 = vperm.xlu1 %3806, %v5818_v13   ;;  %3818 = vset.pattern.permute.xlu0 %v6926_v4  ;;  %v2550_v21 = vpop.f32.mrf.mxu1 }
 0x434   :  { %1941 = vperm.xlu0 %3818, %v5843_v59   ;;  %v6052_v56 = vadd.f32 %v5939_v25, %v2498_v27 }
 0x436   :  { %6963 = vst [vmem:[#allocation17_spill] sm:$0xff] %v6052_v56 }
 0x437   :  { %3659 = vmatmul.msk.f32.gmra.mxu3 %vm547_vm3, %v5349_v6  ;;  %v2427_v63 = vpop.permute.xlu1 %2426 }
 0x438   :  { %v2483_v30 = vmul.f32 %v2427_v63, %v2376_v32  ;;  %v2381_v19 = vpop.f32.mrf.mxu3 }
 0x439   :  { %v2769_v42 = vpop.permute.xlu0 %2768 }
 0x43a   :  { %v2499_v34 = vadd.f32 %v2483_v30, %v2330_v14  ;;  %v2822_v0 = vmul.f32 %v2769_v42, %v2717_v55  ;;  %3807 = vset.pattern.permute.xlu2 %v6944_v38  ;;  %v1856_v14 = vadd.f32 %v5937_v15, %v5644_v44  ;;  %v2551_v55 = vadd.f32 %v5927_v50, %v2550_v21 }
 0x43b   :  { %3811 = vset.pattern.permute.xlu1 %v6909_v35  ;;  %v2097_v25 = vpop.permute.xlu2 %2096  ;;  %2784 = vperm.xlu2 %3807, %v5818_v13  }
 0x43c   :  { %v2668_v6 = vadd.f32 %v2652_v48, %v2499_v34  ;;  %v2147_v27 = vmul.f32 %v2097_v25, %v2044_v2  ;;  %2112 = vperm.xlu1 %3811, %v5829_v52   ;;  %3824 = vset.pattern.permute.xlu0 %v6956_v37  ;;  %v1977_v5 = vmul.f32 %v1912_v10, %v1856_v14 }
 0x43d   :  { %2961 = vperm.xlu0 %3824, %v5843_v59  }
 0x43e   :  { %v6068_v3 = vadd.f32 %v2821_v28, %v2668_v6 }
 0x43f   :  { %3660 = vmatmul.msk.f32.gmra.mxu3 %vm547_vm3, %v5359_v26  ;;  %v6082_v26 = vpop.f32.mrf.mxu0 }
 0x440   :  { %v2093_v48 = vpop.permute.xlu1 %2092 }
 0x441   :  { %v2146_v32 = vmul.f32 %v2093_v48, %v2041_v46  ;;  %v2384_v63 = vpop.f32.mrf.mxu3  ;;  %v2553_v46 = vpop.f32.mrf.mxu1  ;;  %v1859_v48 = vadd.f32 %v5937_v15, %v5661_v49 }
 0x443   :  { %v2162_v30 = vadd.f32 %v2146_v32, %v1977_v5  ;;  %v2604_v42 = vpop.permute.xlu0 %2603  ;;  %3808 = vset.pattern.permute.xlu2 %v6956_v37 }
 0x444   :  { %v2654_v28 = vmul.f32 %v2604_v42, %v2551_v55  ;;  %3813 = vset.pattern.permute.xlu1 %v6921_v61  ;;  %v2266_v44 = vpop.permute.xlu2 %2265  ;;  %2953 = vperm.xlu2 %3808, %v5818_v13   ;;  %v2382_v13 = vadd.f32 %v5981_v7, %v2381_v19 }
 0x445   :  { %2450 = vperm.xlu1 %3813, %v5829_v52   ;;  %3827 = vset.pattern.permute.xlu0 %v6909_v35 }
 0x446   :  { %2120 = vperm.xlu0 %3827, %v5857_v41  }
 0x447   :  { %3661 = vmatmul.msk.f32.gmra.mxu3 %vm547_vm3, %v5369_v16  ;;  %v6102_v19 = vpop.f32.mrf.mxu0 }
 0x44a   :  { %v6089_v10 = vpop.f32.mrf.mxu3  ;;  %v2262_v2 = vpop.permute.xlu1 %2261 }
 0x44b   :  { %v2315_v34 = vmul.f32 %v2262_v2, %v2210_v9 }
 0x44c   :  { %v6092_v25 = vpop.permute.xlu0 %2269  ;;  %3810 = vset.pattern.permute.xlu2 %v6926_v4 }
 0x44d   :  { %v2331_v6 = vadd.f32 %v2315_v34, %v2162_v30  ;;  %3814 = vset.pattern.permute.xlu1 %v6942_v18  ;;  %v2435_v14 = vpop.permute.xlu2 %2434  ;;  %1936 = vperm.xlu2 %3810, %v5829_v52   ;;  %v2554_v30 = vadd.f32 %v5927_v50, %v2553_v46 }
 0x44e   :  { %v2485_v16 = vmul.f32 %v2435_v14, %v2382_v13  ;;  %2619 = vperm.xlu1 %3814, %v5829_v52   ;;  %3831 = vset.pattern.permute.xlu0 %v6944_v38 }
 0x44f   :  { %v2500_v33 = vadd.f32 %v2484_v43, %v2331_v6  ;;  %2796 = vperm.xlu0 %3831, %v5857_v41   ;;  %3662 = vmatmul.msk.f32.gmra.mxu3 %vm547_vm3, %v5379_v40  ;;  %v2213_v43 = vadd.f32 %v5962_v23, %v5703_v22  ;;  %v2719_v22 = vpop.f32.mrf.mxu2 }
 0x450   :  { %v2720_v13 = vadd.f32 %v6021_v62, %v2719_v22 }
 0x451   :  { %v2669_v21 = vadd.f32 %v6046_v17, %v2500_v33  ;;  %v2316_v9 = vmul.f32 %v2266_v44, %v2213_v43  ;;  %v2888_v44 = vpop.f32.mrf.mxu0 }
 0x452   :  { %v6107_v5 = vpop.f32.mrf.mxu3 }
 0x453   :  { %v1917_v32 = vpop.permute.xlu1 %1916  ;;  %v6109_v55 = vadd.f32 %v2822_v0, %v2669_v21 }
 0x454   :  { %v1978_v42 = vmul.f32 %v1917_v32, %v1859_v48 }
 0x455   :  { %v2608_v40 = vpop.permute.xlu0 %2607  ;;  %3815 = vset.pattern.permute.xlu2 %v6944_v38 }
 0x456   :  { %v2163_v2 = vadd.f32 %v2147_v27, %v1978_v42  ;;  %v6115_v17 = vmul.f32 %v2608_v40, %v2554_v30  ;;  %3817 = vset.pattern.permute.xlu1 %v6960_v12  ;;  %v1922_v49 = vpop.permute.xlu2 %1921  ;;  %2788 = vperm.xlu2 %3815, %v5829_v52  }
 0x457   :  { %3126 = vperm.xlu1 %3817, %v5829_v52   ;;  %3836 = vset.pattern.permute.xlu0 %v6922_v8  ;;  %v2385_v52 = vadd.f32 %v5981_v7, %v2384_v63  ;;  %v6140_v63 = vld [vmem:[%s6700_s18 + $0x6] ss:$0 sm:$0xff] }
 0x458   :  { %v2332_v0 = vadd.f32 %v2316_v9, %v2163_v2  ;;  %3663 = vmatmul.msk.f32.gmra.mxu3 %vm547_vm3, %v5389_v29  ;;  %2293 = vperm.xlu0 %3836, %v5873_v58   ;;  %v2889_v48 = vadd.f32 %v6140_v63, %v2888_v44  ;;  %v1862_v44 = vadd.f32 %v5937_v15, %v5679_v54 }
 0x459   :  { %v2891_v32 = vpop.f32.mrf.mxu0 }
 0x45a   :  { %v6124_v27 = vpop.f32.mrf.mxu3  ;;  %v2501_v34 = vadd.f32 %v2485_v16, %v2332_v0  ;;  %v2892_v42 = vadd.f32 %v6140_v63, %v2891_v32  ;;  %v2053_v32 = vadd.f32 %v5904_v36, %v5760_v24 }
 0x45c   :  { %v2773_v6 = vpop.permute.xlu1 %2772  ;;  %v2670_v14 = vadd.f32 %v2654_v28, %v2501_v34 }
 0x45d   :  { %v2823_v33 = vmul.f32 %v2773_v6, %v2720_v13  ;;  %v2216_v13 = vadd.f32 %v5962_v23, %v5723_v31  ;;  %v1979_v6 = vmul.f32 %v1922_v49, %v1862_v44  ;;  %v2722_v31 = vpop.f32.mrf.mxu2 }
 0x45e   :  { %v6128_v46 = vpop.permute.xlu0 %1926  ;;  %3819 = vset.pattern.permute.xlu2 %v6909_v35 }
 0x45f   :  { %v2839_v21 = vadd.f32 %v2823_v33, %v2670_v14  ;;  %3820 = vset.pattern.permute.xlu1 %v6922_v8  ;;  %v2439_v29 = vpop.permute.xlu2 %2438  ;;  %2116 = vperm.xlu2 %3819, %v5843_v59  }
 0x460   :  { %3664 = vmatmul.msk.f32.gmra.mxu3 %vm547_vm3, %v5399_v51  ;;  %v2486_v16 = vmul.f32 %v2439_v29, %v2385_v52  ;;  %2285 = vperm.xlu1 %3820, %v5843_v59   ;;  %v2388_v51 = vadd.f32 %v5981_v7, %v6089_v10  ;;  %v2317_v52 = vmul.f32 %v6092_v25, %v2216_v13 }
 0x461   :  { %3839 = vset.pattern.permute.xlu0 %v6944_v38  ;;  %v2723_v25 = vadd.f32 %v6021_v62, %v2722_v31  ;;  %v2894_v31 = vpop.f32.mrf.mxu0 }
 0x462   :  { %2800 = vperm.xlu0 %3839, %v5873_v58   ;;  %v6143_v28 = vpop.f32.mrf.mxu3 }
 0x465   :  { %v2942_v43 = vpop.permute.xlu1 %2941 }
 0x466   :  { %v2992_v30 = vmul.f32 %v2942_v43, %v2889_v48  ;;  %v6964_v43 = vld [vmem:[#allocation19_spill] sm:$0xff] }
 0x467   :  { %v2443_v40 = vpop.permute.xlu0 %2442  ;;  %3822 = vset.pattern.permute.xlu2 %v6942_v18 }
 0x468   :  { %v6150_v9 = vadd.f32 %v2992_v30, %v2839_v21  ;;  %3665 = vmatmul.msk.f32.gmra.mxu3 %vm547_vm3, %v5413_v45  ;;  %v6154_v2 = vmul.f32 %v2443_v40, %v2388_v51  ;;  %3821 = vset.pattern.permute.xlu1 %v6921_v61  ;;  %v2946_v22 = vpop.permute.xlu2 %2945  ;;  %v2047_v45 = vadd.f32 %v5904_v36, %v5715_v20  ;;  %v6965_v51 = vld [vmem:[#allocation21_spill] sm:$0xff] }
 0x469   :  { %v2993_v0 = vmul.f32 %v2946_v22, %v2892_v42  ;;  %2454 = vperm.xlu1 %3821, %v5843_v59   ;;  %2623 = vperm.xlu2 %3822, %v5843_v59   ;;  %v1865_v30 = vadd.f32 %v5937_v15, %v6965_v51  ;;  %v6966_v42 = vld [vmem:[#allocation29_spill] sm:$0xff] }
 0x46a   :  { %3842 = vset.pattern.permute.xlu0 %v6926_v4  ;;  %v6160_v10 = vpop.f32.mrf.mxu3  ;;  %v2050_v40 = vadd.f32 %v5904_v36, %v6966_v42  ;;  %v6970_v42 = vld [vmem:[#allocation18_spill] sm:$0xff] }
 0x46b   :  { %1956 = vperm.xlu0 %3842, %v5896_v11  }
 0x46e   :  { %v2101_v34 = vpop.permute.xlu1 %2100 }
 0x46f   :  { %v2148_v14 = vmul.f32 %v2101_v34, %v2047_v45  ;;  %v1980_v45 = vmul.f32 %v6128_v46, %v1865_v30  ;;  %v2556_v30 = vpop.f32.mrf.mxu1 }
 0x470   :  { %3666 = vmatmul.msk.f32.gmra.mxu3 %vm547_vm3, %v5433_v39  ;;  %v6171_v33 = vpop.permute.xlu0 %3118 }
 0x471   :  { %v2164_v21 = vadd.f32 %v2148_v14, %v1979_v6  ;;  %3825 = vset.pattern.permute.xlu1 %v6960_v12  ;;  %3823 = vset.pattern.permute.xlu2 %v6944_v38  ;;  %v6176_v54 = vpop.permute.xlu2 %3114  ;;  %v6967_v14 = vld [vmem:[#allocation32_spill] sm:$0xff] }
 0x472   :  { %3130 = vperm.xlu1 %3825, %v5843_v59   ;;  %2792 = vperm.xlu2 %3823, %v5843_v59   ;;  %v6180_v20 = vpop.f32.mrf.mxu3 }
 0x473   :  { %v2333_v49 = vadd.f32 %v2317_v52, %v2164_v21  ;;  %3845 = vset.pattern.permute.xlu0 %v6921_v61  ;;  %v6968_v52 = vld [vmem:[#allocation28_spill] sm:$0xff] }
 0x474   :  { %2466 = vperm.xlu0 %3845, %v5896_v11   ;;  %v2219_v21 = vadd.f32 %v5962_v23, %v6968_v52 }
 0x475   :  { %v2502_v39 = vadd.f32 %v2486_v16, %v2333_v49  ;;  %v6969_v49 = vld [vmem:[#allocation42_spill] sm:$0xff] }
 0x477   :  { %v2777_v29 = vpop.permute.xlu1 %2776  ;;  %v2671_v48 = vadd.f32 %v6115_v17, %v2502_v39  ;;  %v2391_v39 = vadd.f32 %v5981_v7, %v6107_v5 }
 0x478   :  { %3667 = vmatmul.msk.f32.gmra.mxu3 %vm547_vm3, %v6964_v43  ;;  %v2824_v59 = vmul.f32 %v2777_v29, %v2723_v25 }
 0x479   :  { %v2109_v22 = vpop.permute.xlu0 %2108 }
 0x47a   :  { %v2840_v16 = vadd.f32 %v2824_v59, %v2671_v48  ;;  %v6194_v44 = vmul.f32 %v2109_v22, %v2053_v32  ;;  %3826 = vset.pattern.permute.xlu1 %v6926_v4  ;;  %3828 = vset.pattern.permute.xlu2 %v6922_v8  ;;  %v6198_v17 = vpop.f32.mrf.mxu3  ;;  %v2105_v24 = vpop.permute.xlu2 %2104  ;;  %v6971_v22 = vld [vmem:[#allocation47_spill] sm:$0xff] }
 0x47b   :  { %v2149_v34 = vmul.f32 %v2105_v24, %v2050_v40  ;;  %2289 = vperm.xlu2 %3828, %v5857_v41   ;;  %1946 = vperm.xlu1 %3826, %v5857_v41   ;;  %v2725_v40 = vpop.f32.mrf.mxu2 }
 0x47c   :  { %v6203_v13 = vadd.f32 %v2993_v0, %v2840_v16  ;;  %3851 = vset.pattern.permute.xlu0 %v6909_v35  ;;  %v2895_v0 = vadd.f32 %v6140_v63, %v2894_v31  ;;  %v2557_v16 = vadd.f32 %v5927_v50, %v2556_v30  ;;  %v6972_v31 = vld [vmem:[#allocation51_spill] sm:$0xff] }
 0x47d   :  { %v2165_v6 = vadd.f32 %v2149_v34, %v1980_v45  ;;  %2132 = vperm.xlu0 %3851, %v6967_v14  }
 0x480   :  { %3668 = vmatmul.msk.f32.gmra.mxu3 %vm547_vm3, %v6969_v49  ;;  %v2274_v46 = vpop.permute.xlu1 %2273 }
 0x481   :  { %v2318_v25 = vmul.f32 %v2274_v46, %v2219_v21  ;;  %v2897_v21 = vpop.f32.mrf.mxu0  ;;  %v2726_v46 = vadd.f32 %v6021_v62, %v2725_v40 }
 0x482   :  { %v6214_v29 = vpop.f32.mrf.mxu3  ;;  %v2447_v48 = vpop.permute.xlu0 %2446 }
 0x483   :  { %v2334_v32 = vadd.f32 %v2318_v25, %v2165_v6  ;;  %v6216_v43 = vmul.f32 %v2447_v48, %v2391_v39  ;;  %3830 = vset.pattern.permute.xlu2 %v6942_v18  ;;  %3829 = vset.pattern.permute.xlu1 %v6921_v61  ;;  %v2950_v59 = vpop.permute.xlu2 %2949  ;;  %v2728_v49 = vpop.f32.mrf.mxu2  ;;  %v6973_v25 = vld [vmem:[#allocation67_spill] sm:$0xff] }
 0x484   :  { %v2994_v51 = vmul.f32 %v2950_v59, %v2895_v0  ;;  %2627 = vperm.xlu2 %3830, %v5857_v41   ;;  %2458 = vperm.xlu1 %3829, %v5857_v41   ;;  %v2225_v0 = vadd.f32 %v5962_v23, %v6973_v25 }
 0x485   :  { %3860 = vset.pattern.permute.xlu0 %v6922_v8  ;;  %v2503_v5 = vadd.f32 %v6154_v2, %v2334_v32  ;;  %v2729_v32 = vadd.f32 %v6021_v62, %v2728_v49  ;;  %v6975_v49 = vld [vmem:[#allocation23_spill] sm:$0xff] }
 0x486   :  { %2305 = vperm.xlu0 %3860, %v6970_v42  }
 0x488   :  { %3669 = vmatmul.msk.f32.gmra.mxu3 %vm547_vm3, %v6971_v22 }
 0x48a   :  { %v2612_v24 = vpop.permute.xlu1 %2611  ;;  %v6228_v45 = vpop.f32.mrf.mxu3 }
 0x48b   :  { %v2656_v34 = vmul.f32 %v2612_v24, %v2557_v16  ;;  %v6230_v6 = vpop.permute.xlu0 %3122 }
 0x48c   :  { %3834 = vset.pattern.permute.xlu2 %v6926_v4  ;;  %3832 = vset.pattern.permute.xlu1 %v6956_v37  ;;  %v2278_v2 = vpop.permute.xlu2 %2277 }
 0x48d   :  { %v2672_v52 = vadd.f32 %v2656_v34, %v2503_v5  ;;  %2965 = vperm.xlu1 %3832, %v5857_v41   ;;  %1951 = vperm.xlu2 %3834, %v5873_v58   ;;  %v2900_v34 = vpop.f32.mrf.mxu0 }
 0x48e   :  { %3861 = vset.pattern.permute.xlu0 %v6921_v61  ;;  %v2901_v25 = vadd.f32 %v6140_v63, %v2900_v34 }
 0x48f   :  { %2474 = vperm.xlu0 %3861, %v6970_v42  }
 0x490   :  { %3670 = vmatmul.msk.f32.gmra.mxu3 %vm547_vm3, %v6972_v31 }
 0x492   :  { %v6241_v39 = vpop.f32.mrf.mxu3 }
 0x493   :  { %v2781_v48 = vpop.permute.xlu1 %2780 }
 0x494   :  { %v2825_v59 = vmul.f32 %v2781_v48, %v2726_v46  ;;  %v2282_v5 = vpop.permute.xlu0 %2281  ;;  %v1868_v46 = vadd.f32 %v5937_v15, %v6975_v49  ;;  %v2898_v48 = vadd.f32 %v6140_v63, %v2897_v21  ;;  %v2559_v21 = vpop.f32.mrf.mxu1 }
 0x495   :  { %v6246_v30 = vmul.f32 %v2282_v5, %v2225_v0  ;;  %3833 = vset.pattern.permute.xlu1 %v6960_v12  ;;  %3838 = vset.pattern.permute.xlu2 %v6942_v18  ;;  %v2785_v22 = vpop.permute.xlu2 %2784  ;;  %v6976_v0 = vld [vmem:[#allocation30_spill] sm:$0xff] }
 0x496   :  { %v2841_v16 = vadd.f32 %v2825_v59, %v2672_v52  ;;  %v2826_v24 = vmul.f32 %v2785_v22, %v2729_v32  ;;  %3134 = vperm.xlu1 %3833, %v5857_v41   ;;  %2631 = vperm.xlu2 %3838, %v5873_v58   ;;  %v2222_v41 = vadd.f32 %v5962_v23, %v6976_v0 }
 0x497   :  { %3865 = vset.pattern.permute.xlu0 %v6960_v12  ;;  %v2560_v0 = vadd.f32 %v5927_v50, %v2559_v21 }
 0x498   :  { %v6253_v40 = vadd.f32 %v2994_v51, %v2841_v16  ;;  %3150 = vperm.xlu0 %3865, %v6970_v42   ;;  %v2319_v22 = vmul.f32 %v2278_v2, %v2222_v41 }
 0x49a   :  { %v6256_v31 = vpop.f32.mrf.mxu3 }
 0x49b   :  { %6974 = vst [vmem:[#allocation55_spill] sm:$0xff] %v6256_v31 }
 0x49c   :  { %v1932_v52 = vpop.permute.xlu1 %1931 }
 0x49d   :  { %v1981_v32 = vmul.f32 %v1932_v52, %v1868_v46  ;;  %v2958_v59 = vpop.permute.xlu0 %2957  ;;  %v6977_v46 = vld [vmem:[#allocation62_spill] sm:$0xff] }
 0x49e   :  { %v6264_v51 = vmul.f32 %v2958_v59, %v2901_v25  ;;  %3835 = vset.pattern.permute.xlu1 %v6909_v35  ;;  %3841 = vset.pattern.permute.xlu2 %v6960_v12  ;;  %v2954_v5 = vpop.permute.xlu2 %2953 }
 0x49f   :  { %v2166_v16 = vadd.f32 %v6194_v44, %v1981_v32  ;;  %v2995_v49 = vmul.f32 %v2954_v5, %v2898_v48  ;;  %2124 = vperm.xlu1 %3835, %v5873_v58   ;;  %3138 = vperm.xlu2 %3841, %v5873_v58   ;;  %v2731_v5 = vpop.f32.mrf.mxu2 }
 0x4a0   :  { %3866 = vset.pattern.permute.xlu0 %v6926_v4 }
 0x4a1   :  { %v2335_v34 = vadd.f32 %v2319_v22, %v2166_v16  ;;  %1971 = vperm.xlu0 %3866, %v6977_v46   ;;  %v6980_v16 = vld [vmem:[#allocation39_spill] sm:$0xff] }
 0x4a2   :  { %v6273_v25 = vpop.f32.mrf.mxu3  ;;  %v1871_v21 = vadd.f32 %v5937_v15, %v6980_v16 }
 0x4a3   :  { %6978 = vst [vmem:[#allocation22_spill] sm:$0xff] %v6273_v25  ;;  %v2504_v52 = vadd.f32 %v6216_v43, %v2335_v34  ;;  %v6981_v34 = vld [vmem:[#allocation50_spill] sm:$0xff] }
 0x4a5   :  { %v2616_v2 = vpop.permute.xlu1 %2615 }
 0x4a6   :  { %v2657_v41 = vmul.f32 %v2616_v2, %v2560_v0  ;;  %v1942_v44 = vpop.permute.xlu0 %1941  ;;  %v2732_v2 = vadd.f32 %v6021_v62, %v2731_v5  ;;  %v2394_v5 = vadd.f32 %v5981_v7, %v6124_v27 }
 0x4a7   :  { %3837 = vset.pattern.permute.xlu1 %v6921_v61  ;;  %3843 = vset.pattern.permute.xlu2 %v6909_v35  ;;  %v1937_v48 = vpop.permute.xlu2 %1936 }
 0x4a8   :  { %v2673_v32 = vadd.f32 %v2657_v41, %v2504_v52  ;;  %2462 = vperm.xlu1 %3837, %v5873_v58   ;;  %2128 = vperm.xlu2 %3843, %v5896_v11   ;;  %v2056_v52 = vadd.f32 %v5904_v36, %v6981_v34  ;;  %v1982_v41 = vmul.f32 %v1937_v48, %v1871_v21  ;;  %v6983_v21 = vld [vmem:[#allocation35_spill] sm:$0xff]  ;;  %v6984_v34 = vld [vmem:[#allocation40_spill] sm:$0xff] }
 0x4a9   :  { %3874 = vset.pattern.permute.xlu0 %v6956_v37 }
 0x4aa   :  { %v2842_v59 = vadd.f32 %v2826_v24, %v2673_v32  ;;  %2985 = vperm.xlu0 %3874, %v6977_v46   ;;  %v6283_v43 = vpop.f32.mrf.mxu3 }
 0x4ab   :  { %6979 = vst [vmem:[#allocation16_spill] sm:$0xff] %v6283_v43 }
 0x4ac   :  { %v6285_v22 = vadd.f32 %v2995_v49, %v2842_v59 }
 0x4ae   :  { %v2113_v0 = vpop.permute.xlu1 %2112 }
 0x4af   :  { %v2151_v25 = vmul.f32 %v2113_v0, %v2056_v52  ;;  %v6292_v31 = vpop.permute.xlu0 %2961 }
 0x4b0   :  { %3840 = vset.pattern.permute.xlu1 %v6956_v37  ;;  %3846 = vset.pattern.permute.xlu2 %v6942_v18  ;;  %v2789_v24 = vpop.permute.xlu2 %2788 }
 0x4b1   :  { %v2167_v49 = vadd.f32 %v2151_v25, %v1982_v41  ;;  %v2827_v32 = vmul.f32 %v2789_v24, %v2732_v2  ;;  %2969 = vperm.xlu1 %3840, %v5873_v58   ;;  %2635 = vperm.xlu2 %3846, %v5896_v11   ;;  %v1874_v25 = vadd.f32 %v5937_v15, %v6983_v21 }
 0x4b2   :  { %3875 = vset.pattern.permute.xlu0 %v6960_v12  ;;  %v6299_v59 = vpop.f32.mrf.mxu3  ;;  %v2059_v58 = vadd.f32 %v5904_v36, %v6984_v34  ;;  %v2562_v36 = vpop.f32.mrf.mxu1 }
 0x4b3   :  { %6982 = vst [vmem:[#allocation57_spill] sm:$0xff] %v6299_v59  ;;  %3154 = vperm.xlu0 %3875, %v6977_v46   ;;  %v2336_v48 = vadd.f32 %v6246_v30, %v2167_v49  ;;  %v1983_v41 = vmul.f32 %v1942_v44, %v1874_v25  ;;  %v6323_v44 = vld [vmem:[%s6700_s18 + $0x7] ss:$0 sm:$0xff] }
 0x4b7   :  { %v2451_v16 = vpop.permute.xlu1 %2450 }
 0x4b8   :  { %v2489_v52 = vmul.f32 %v2451_v16, %v2394_v5  ;;  %v6309_v0 = vpop.permute.xlu0 %2120  ;;  %v6985_v5 = vld [vmem:[#allocation48_spill] sm:$0xff]  ;;  %v2563_v16 = vadd.f32 %v5927_v50, %v2562_v36  ;;  %v6986_v36 = vld [vmem:[#allocation25_spill] sm:$0xff] }
 0x4b9   :  { %3844 = vset.pattern.permute.xlu1 %v6922_v8  ;;  %3849 = vset.pattern.permute.xlu2 %v6960_v12  ;;  %v2117_v2 = vpop.permute.xlu2 %2116 }
 0x4ba   :  { %v2505_v30 = vadd.f32 %v2489_v52, %v2336_v48  ;;  %v2152_v24 = vmul.f32 %v2117_v2, %v2059_v58  ;;  %2297 = vperm.xlu1 %3844, %v5896_v11   ;;  %3142 = vperm.xlu2 %3849, %v5896_v11   ;;  %v6315_v27 = vpop.f32.mrf.mxu3 }
 0x4bb   :  { %3876 = vset.pattern.permute.xlu0 %v6942_v18 }
 0x4bc   :  { %v2168_v49 = vadd.f32 %v2152_v24, %v1983_v41  ;;  %2587 = vperm.xlu0 %3876, %v6985_v5  }
 0x4c0   :  { %v2620_v21 = vpop.permute.xlu1 %2619 }
 0x4c1   :  { %v2658_v48 = vmul.f32 %v2620_v21, %v2563_v16  ;;  %v6325_v25 = vpop.permute.xlu0 %2796 }
 0x4c2   :  { %3847 = vset.pattern.permute.xlu1 %v6944_v38  ;;  %3852 = vset.pattern.permute.xlu2 %v6922_v8  ;;  %v3060_v34 = vpop.f32.mrf.mxu3 }
 0x4c3   :  { %v2674_v58 = vadd.f32 %v2658_v48, %v2505_v30  ;;  %v3061_v52 = vadd.f32 %v6323_v44, %v3060_v34  ;;  %v2624_v2 = vpop.permute.xlu2 %2623  ;;  %2804 = vperm.xlu1 %3847, %v5896_v11   ;;  %2301 = vperm.xlu2 %3852, %v6967_v14   ;;  %v6988_v30 = vld [vmem:[#allocation49_spill] sm:$0xff] }
 0x4c4   :  { %3881 = vset.pattern.permute.xlu0 %v6956_v37  ;;  %v2234_v48 = vadd.f32 %v5962_v23, %v6988_v30 }
 0x4c5   :  { %v2843_v41 = vadd.f32 %v2827_v32, %v2674_v58  ;;  %v3162_v24 = vmul.f32 %v6176_v54, %v3061_v52  ;;  %2929 = vperm.xlu0 %3881, %v6986_v36   ;;  %v6990_v32 = vld [vmem:[#allocation63_spill] sm:$0xff] }
 0x4c7   :  { %v3012_v16 = vadd.f32 %v6264_v51, %v2843_v41  ;;  %v6337_v21 = vadd.f32 %v3162_v24, %v6203_v13  ;;  %v6991_v24 = vld [vmem:[#allocation69_spill] sm:$0xff] }
 0x4c9   :  { %6987 = vst [vmem:[#allocation43_spill] sm:$0xff] %v6337_v21  ;;  %v3127_v34 = vpop.permute.xlu1 %3126 }
 0x4ca   :  { %v3063_v43 = vpop.f32.mrf.mxu3  ;;  %v2294_v59 = vpop.permute.xlu0 %2293 }
 0x4cb   :  { %v3064_v56 = vadd.f32 %v6323_v44, %v3063_v43  ;;  %v6342_v1 = vmul.f32 %v2294_v59, %v2234_v48  ;;  %3848 = vset.pattern.permute.xlu1 %v6956_v37  ;;  %3853 = vset.pattern.permute.xlu2 %v6921_v61  ;;  %v2228_v43 = vadd.f32 %v5962_v23, %v6990_v32  ;;  %v2565_v32 = vpop.f32.mrf.mxu1 }
 0x4cc   :  { %v2793_v54 = vpop.permute.xlu2 %2792  ;;  %2973 = vperm.xlu1 %3848, %v5896_v11   ;;  %2470 = vperm.xlu2 %3853, %v6967_v14   ;;  %v2231_v11 = vadd.f32 %v5962_v23, %v6991_v24  ;;  %v2734_v23 = vpop.f32.mrf.mxu2 }
 0x4cd   :  { %v3163_v13 = vmul.f32 %v6171_v33, %v3064_v56  ;;  %3884 = vset.pattern.permute.xlu0 %v6926_v4  ;;  %v2735_v24 = vadd.f32 %v6021_v62, %v2734_v23 }
 0x4cf   :  { %v6351_v51 = vadd.f32 %v3163_v13, %v6253_v40 }
 0x4d1   :  { %6989 = vst [vmem:[#allocation26_spill] sm:$0xff] %v6351_v51 }
 0x4d2   :  { %v2286_v59 = vpop.permute.xlu1 %2285  ;;  %v3066_v58 = vpop.f32.mrf.mxu3 }
 0x4d3   :  { %v2321_v52 = vmul.f32 %v2286_v59, %v2228_v43  ;;  %v3067_v41 = vadd.f32 %v6323_v44, %v3066_v58  ;;  %v2397_v43 = vadd.f32 %v5981_v7, %v6143_v28 }
 0x4d4   :  { %v6358_v30 = vpop.permute.xlu0 %2800  ;;  %3850 = vset.pattern.permute.xlu1 %v6926_v4  ;;  %3856 = vset.pattern.permute.xlu2 %v6956_v37 }
 0x4d5   :  { %v2337_v56 = vadd.f32 %v2321_v52, %v2168_v49  ;;  %v3164_v33 = vmul.f32 %v6230_v6, %v3067_v41  ;;  %v2290_v40 = vpop.permute.xlu2 %2289  ;;  %2977 = vperm.xlu2 %3856, %v6967_v14   ;;  %1961 = vperm.xlu1 %3850, %v6967_v14   ;;  %v2566_v49 = vadd.f32 %v5927_v50, %v2565_v32  ;;  %v2903_v41 = vpop.f32.mrf.mxu0 }
 0x4d6   :  { %v2322_v48 = vmul.f32 %v2290_v40, %v2231_v11  ;;  %v2904_v50 = vadd.f32 %v6140_v63, %v2903_v41  ;;  %v2828_v40 = vmul.f32 %v2793_v54, %v2735_v24  ;;  %v6993_v41 = vld [vmem:[#allocation53_spill] sm:$0xff] }
 0x4d7   :  { %v6366_v13 = vadd.f32 %v3164_v33, %v6285_v22  ;;  %v2659_v22 = vmul.f32 %v2624_v2, %v2566_v49  ;;  %v1877_v24 = vadd.f32 %v5937_v15, %v6993_v41 }
 0x4d8   :  { %v2997_v23 = vmul.f32 %v6292_v31, %v2904_v50 }
 0x4db   :  { %v3069_v59 = vpop.f32.mrf.mxu3  ;;  %v2455_v58 = vpop.permute.xlu1 %2454 }
 0x4dc   :  { %v3070_v6 = vadd.f32 %v6323_v44, %v3069_v59  ;;  %v2490_v52 = vmul.f32 %v2455_v58, %v2397_v43 }
 0x4dd   :  { %v6373_v21 = vpop.permute.xlu0 %1956  ;;  %3857 = vset.pattern.permute.xlu2 %v6960_v12  ;;  %3854 = vset.pattern.permute.xlu1 %v6942_v18  ;;  %v2906_v41 = vpop.f32.mrf.mxu0 }
 0x4de   :  { %v3165_v11 = vmul.f32 %v3127_v34, %v3070_v6  ;;  %v2506_v33 = vadd.f32 %v2490_v52, %v2337_v56  ;;  %v2628_v28 = vpop.permute.xlu2 %2627  ;;  %3146 = vperm.xlu2 %3857, %v6967_v14   ;;  %2639 = vperm.xlu1 %3854, %v6967_v14   ;;  %v6992_v56 = vld [vmem:[#allocation44_spill] sm:$0xff] }
 0x4df   :  { %v1880_v49 = vadd.f32 %v5937_v15, %v6992_v56 }
 0x4e0   :  { %v2675_v32 = vadd.f32 %v2659_v22, %v2506_v33  ;;  %v6380_v43 = vadd.f32 %v3165_v11, %v3012_v16  ;;  %v6994_v22 = vld [vmem:[#allocation56_spill] sm:$0xff] }
 0x4e2   :  { %v2844_v59 = vadd.f32 %v2828_v40, %v2675_v32 }
 0x4e3   :  { %v3072_v58 = vpop.f32.mrf.mxu3 }
 0x4e4   :  { %v3073_v51 = vadd.f32 %v6323_v44, %v3072_v58  ;;  %v3131_v2 = vpop.permute.xlu1 %3130  ;;  %v3013_v34 = vadd.f32 %v2997_v23, %v2844_v59  ;;  %v2568_v59 = vpop.f32.mrf.mxu1  ;;  %v2400_v58 = vadd.f32 %v5981_v7, %v6160_v10 }
 0x4e6   :  { %v3166_v6 = vmul.f32 %v3131_v2, %v3073_v51  ;;  %v6386_v52 = vpop.permute.xlu0 %2466  ;;  %3858 = vset.pattern.permute.xlu2 %v6926_v4  ;;  %3855 = vset.pattern.permute.xlu1 %v6944_v38  ;;  %v6401_v51 = vld [vmem:[%s6700_s18 + $0x1] ss:$0 sm:$0xff] }
 0x4e7   :  { %v1952_v16 = vpop.permute.xlu2 %1951  ;;  %2808 = vperm.xlu1 %3855, %v6967_v14   ;;  %1966 = vperm.xlu2 %3858, %v6970_v42   ;;  %v2062_v11 = vadd.f32 %v6401_v51, %v6994_v22 }
 0x4e8   :  { %v6392_v31 = vadd.f32 %v3166_v6, %v3013_v34  ;;  %v6394_v54 = vmul.f32 %v1952_v16, %v1880_v49  ;;  %v6419_v34 = vld [vmem:[%s6700_s18 + $0x4] ss:$0 sm:$0xff] }
 0x4e9   :  { %v2153_v14 = vmul.f32 %v6309_v0, %v2062_v11  ;;  %v2737_v0 = vpop.f32.mrf.mxu2  ;;  %v2569_v56 = vadd.f32 %v6419_v34, %v2568_v59  ;;  %v6996_v59 = vld [vmem:[#allocation52_spill] sm:$0xff] }
 0x4eb   :  { %v2660_v16 = vmul.f32 %v2628_v28, %v2569_v56  ;;  %v6436_v28 = vld [vmem:[%s6700_s18] ss:$0 sm:$0xff] }
 0x4ed   :  { %v1947_v33 = vpop.permute.xlu1 %1946 }
 0x4ee   :  { %v1984_v50 = vmul.f32 %v1947_v33, %v1877_v24  ;;  %v2907_v33 = vadd.f32 %v6140_v63, %v2906_v41 }
 0x4ef   :  { %v6406_v40 = vpop.permute.xlu0 %2132  ;;  %3859 = vset.pattern.permute.xlu1 %v6909_v35  ;;  %3863 = vset.pattern.permute.xlu2 %v6944_v38 }
 0x4f0   :  { %v2169_v32 = vadd.f32 %v2153_v14, %v1984_v50  ;;  %v6410_v15 = vpop.permute.xlu2 %2631  ;;  %2136 = vperm.xlu1 %3859, %v6970_v42   ;;  %2812 = vperm.xlu2 %3863, %v6970_v42  }
 0x4f2   :  { %v2338_v23 = vadd.f32 %v2322_v48, %v2169_v32  ;;  %v2738_v48 = vadd.f32 %v6021_v62, %v2737_v0  ;;  %v6995_v32 = vld [vmem:[#allocation37_spill] sm:$0xff] }
 0x4f4   :  { %v2829_v24 = vmul.f32 %v6325_v25, %v2738_v48 }
 0x4f6   :  { %v2459_v2 = vpop.permute.xlu1 %2458 }
 0x4f7   :  { %v2491_v49 = vmul.f32 %v2459_v2, %v2400_v58 }
 0x4f8   :  { %v6422_v6 = vpop.permute.xlu0 %2305  ;;  %3862 = vset.pattern.permute.xlu1 %v6942_v18  ;;  %3864 = vset.pattern.permute.xlu2 %v6956_v37 }
 0x4f9   :  { %v2507_v7 = vadd.f32 %v2491_v49, %v2338_v23  ;;  %v6427_v10 = vpop.permute.xlu2 %3138  ;;  %2643 = vperm.xlu1 %3862, %v6970_v42   ;;  %2981 = vperm.xlu2 %3864, %v6970_v42   ;;  %v1883_v23 = vadd.f32 %v6436_v28, %v6995_v32  ;;  %v2068_v42 = vadd.f32 %v6401_v51, %v6996_v59  ;;  %v3075_v49 = vpop.f32.mrf.mxu3  ;;  %v6477_v59 = vld [vmem:[%s6700_s18 + $0x3] ss:$0 sm:$0xff] }
 0x4fb   :  { %v2676_v22 = vadd.f32 %v2660_v16, %v2507_v7  ;;  %v1986_v2 = vmul.f32 %v6373_v21, %v1883_v23  ;;  %v3076_v16 = vadd.f32 %v6323_v44, %v3075_v49  ;;  %v6997_v21 = vld [vmem:[#allocation65_spill] sm:$0xff]  ;;  %v2571_v23 = vpop.f32.mrf.mxu1 }
 0x4fd   :  { %v2845_v11 = vadd.f32 %v2829_v24, %v2676_v22  ;;  %v2065_v22 = vadd.f32 %v6401_v51, %v6997_v21  ;;  %v7000_v21 = vld [vmem:[#allocation33_spill] sm:$0xff] }
 0x4ff   :  { %v2966_v14 = vpop.permute.xlu1 %2965 }
 0x500   :  { %v2998_v50 = vmul.f32 %v2966_v14, %v2907_v33 }
 0x501   :  { %v6442_v58 = vpop.permute.xlu0 %2474  ;;  %3869 = vset.pattern.permute.xlu1 %v6921_v61  ;;  %3867 = vset.pattern.permute.xlu2 %v6909_v35 }
 0x502   :  { %v3014_v25 = vadd.f32 %v2998_v50, %v2845_v11  ;;  %v2129_v0 = vpop.permute.xlu2 %2128  ;;  %2478 = vperm.xlu1 %3869, %v6977_v46   ;;  %2140 = vperm.xlu2 %3867, %v6977_v46   ;;  %v6998_v50 = vld [vmem:[#allocation31_spill] sm:$0xff] }
 0x503   :  { %v2155_v56 = vmul.f32 %v2129_v0, %v2068_v42  ;;  %v2403_v42 = vadd.f32 %v6477_v59, %v6180_v20 }
 0x505   :  { %v6449_v48 = vadd.f32 %v2155_v56, %v1986_v2 }
 0x508   :  { %v3135_v7 = vpop.permute.xlu1 %3134 }
 0x509   :  { %v3167_v41 = vmul.f32 %v3135_v7, %v3076_v16 }
 0x50a   :  { %v6452_v24 = vpop.permute.xlu0 %3150  ;;  %3870 = vset.pattern.permute.xlu1 %v6942_v18  ;;  %3868 = vset.pattern.permute.xlu2 %v6922_v8 }
 0x50b   :  { %v6456_v35 = vadd.f32 %v3167_v41, %v3014_v25  ;;  %v6458_v61 = vpop.permute.xlu2 %2635  ;;  %2647 = vperm.xlu1 %3870, %v6977_v46   ;;  %2309 = vperm.xlu2 %3868, %v6977_v46   ;;  %v2740_v25 = vpop.f32.mrf.mxu2 }
 0x50c   :  { %v2741_v20 = vadd.f32 %v6021_v62, %v2740_v25 }
 0x511   :  { %v2125_v11 = vpop.permute.xlu1 %2124 }
 0x512   :  { %v2154_v33 = vmul.f32 %v2125_v11, %v2065_v22  ;;  %v2909_v11 = vpop.f32.mrf.mxu0 }
 0x513   :  { %v6464_v14 = vpop.permute.xlu0 %1971  ;;  %3871 = vset.pattern.permute.xlu1 %v6956_v37  ;;  %3872 = vset.pattern.permute.xlu2 %v6944_v38 }
 0x514   :  { %v2170_v8 = vadd.f32 %v2154_v33, %v6394_v54  ;;  %v6469_v18 = vpop.permute.xlu2 %3142  ;;  %2937 = vperm.xlu1 %3871, %v6998_v50   ;;  %2816 = vperm.xlu2 %3872, %v6977_v46   ;;  %v2572_v54 = vadd.f32 %v6419_v34, %v2571_v23  ;;  %v6485_v46 = vld [vmem:[%s6700_s18 + $0x2] ss:$0 sm:$0xff]  ;;  %v2830_v33 = vmul.f32 %v6358_v30, %v2741_v20  ;;  %v3078_v23 = vpop.f32.mrf.mxu3 }
 0x515   :  { %v3079_v62 = vadd.f32 %v6323_v44, %v3078_v23 }
 0x516   :  { %v2339_v32 = vadd.f32 %v6342_v1, %v2170_v8  ;;  %v6999_v1 = vld [vmem:[#allocation66_spill] sm:$0xff]  ;;  %v2661_v16 = vmul.f32 %v6410_v15, %v2572_v54 }
 0x517   :  { %v2240_v56 = vadd.f32 %v6485_v46, %v6999_v1  ;;  %v3168_v30 = vmul.f32 %v6427_v10, %v3079_v62  ;;  %v2406_v10 = vadd.f32 %v6477_v59, %v6198_v17 }
 0x51a   :  { %v2463_v0 = vpop.permute.xlu1 %2462 }
 0x51b   :  { %v2492_v2 = vmul.f32 %v2463_v0, %v2403_v42  ;;  %v2910_v0 = vadd.f32 %v6140_v63, %v2909_v11  ;;  %v7003_v11 = vld [vmem:[#allocation64_spill] sm:$0xff] }
 0x51c   :  { %v6489_v49 = vpop.permute.xlu0 %2985  ;;  %3877 = vset.pattern.permute.xlu1 %v6944_v38  ;;  %3873 = vset.pattern.permute.xlu2 %v6960_v12 }
 0x51d   :  { %v2508_v7 = vadd.f32 %v2492_v2, %v2339_v32  ;;  %v2302_v41 = vpop.permute.xlu2 %2301  ;;  %2760 = vperm.xlu1 %3877, %v6986_v36   ;;  %3110 = vperm.xlu2 %3873, %v7000_v21   ;;  %v2409_v32 = vadd.f32 %v6477_v59, %v6214_v29 }
 0x51e   :  { %v6497_v22 = vmul.f32 %v2302_v41, %v2240_v56  ;;  %v7001_v56 = vld [vmem:[#allocation45_spill] sm:$0xff]  ;;  %v2574_v41 = vpop.f32.mrf.mxu1 }
 0x51f   :  { %v2677_v8 = vadd.f32 %v2661_v16, %v2508_v7  ;;  %v7002_v7 = vld [vmem:[#allocation24_spill] sm:$0xff] }
 0x520   :  { %v2237_v29 = vadd.f32 %v6485_v46, %v7002_v7  ;;  %v3081_v7 = vpop.f32.mrf.mxu3 }
 0x521   :  { %v2846_v42 = vadd.f32 %v2830_v33, %v2677_v8  ;;  %v2539_v33 = vadd.f32 %v6419_v34, %v7003_v11 }
 0x523   :  { %v2970_v1 = vpop.permute.xlu1 %2969 }
 0x524   :  { %v2999_v15 = vmul.f32 %v2970_v1, %v2910_v0 }
 0x525   :  { %v6504_v25 = vpop.permute.xlu0 %3154  ;;  %3879 = vset.pattern.permute.xlu1 %v6960_v12  ;;  %3878 = vset.pattern.permute.xlu2 %v6956_v37 }
 0x526   :  { %v3015_v54 = vadd.f32 %v2999_v15, %v2846_v42  ;;  %v2471_v2 = vpop.permute.xlu2 %2470  ;;  %3106 = vperm.xlu1 %3879, %v6998_v50   ;;  %2933 = vperm.xlu2 %3878, %v7001_v56   ;;  %v2575_v50 = vadd.f32 %v6419_v34, %v2574_v41  ;;  %v2493_v42 = vmul.f32 %v6386_v52, %v2406_v10  ;;  %v2743_v15 = vpop.f32.mrf.mxu2 }
 0x527   :  { %v2494_v20 = vmul.f32 %v2471_v2, %v2409_v32 }
 0x528   :  { %v6511_v16 = vadd.f32 %v3168_v30, %v3015_v54  ;;  %v2662_v17 = vmul.f32 %v6458_v61, %v2575_v50  ;;  %v7005_v50 = vld [vmem:[#allocation68_spill] sm:$0xff] }
 0x52c   :  { %v2298_v21 = vpop.permute.xlu1 %2297 }
 0x52d   :  { %v2324_v8 = vmul.f32 %v2298_v21, %v2237_v29  ;;  %v3082_v21 = vadd.f32 %v6323_v44, %v3081_v7 }
 0x52e   :  { %v2588_v23 = vpop.permute.xlu0 %2587  ;;  %3102 = vperm.xlu1 %3879, %v7001_v56   ;;  %3880 = vset.pattern.permute.xlu2 %v6944_v38  ;;  %v6534_v38 = vld [vmem:[%s6700_s18 + $0x5] ss:$0 sm:$0xff] }
 0x52f   :  { %v2340_v0 = vadd.f32 %v2324_v8, %v6449_v48  ;;  %v2650_v1 = vmul.f32 %v2588_v23, %v2539_v33  ;;  %v6524_v62 = vpop.permute.xlu2 %2977  ;;  %2756 = vperm.xlu2 %3880, %v6985_v5   ;;  %v2744_v52 = vadd.f32 %v6534_v38, %v2743_v15  ;;  %v7004_v8 = vld [vmem:[#allocation54_spill] sm:$0xff] }
 0x530   :  { %v1886_v23 = vadd.f32 %v6436_v28, %v7004_v8 }
 0x531   :  { %v2509_v32 = vadd.f32 %v2493_v42, %v2340_v0  ;;  %v6529_v30 = vadd.f32 %v2650_v1, %v5998_v47  ;;  %v2912_v47 = vpop.f32.mrf.mxu0  ;;  %v2071_v42 = vadd.f32 %v6401_v51, %v7005_v50  ;;  %v2577_v50 = vpop.f32.mrf.mxu1 }
 0x532   :  { %v2913_v29 = vadd.f32 %v6140_v63, %v2912_v47 }
 0x533   :  { %v2678_v54 = vadd.f32 %v2662_v17, %v2509_v32  ;;  %v2156_v1 = vmul.f32 %v6406_v40, %v2071_v42 }
 0x535   :  { %v2805_v48 = vpop.permute.xlu1 %2804 }
 0x536   :  { %v2831_v2 = vmul.f32 %v2805_v48, %v2744_v52  ;;  %3098 = vperm.xlu1 %3879, %v6986_v36   ;;  %v3169_v36 = vmul.f32 %v6469_v18, %v3082_v21  ;;  %v7006_v48 = vld [vmem:[#allocation58_spill] sm:$0xff] }
 0x537   :  { %3882 = vset.pattern.permute.xlu2 %v6956_v37 }
 0x538   :  { %v2847_v56 = vadd.f32 %v2831_v2, %v2678_v54  ;;  %v6539_v61 = vpop.permute.xlu2 %3146  ;;  %2925 = vperm.xlu2 %3882, %v6985_v5   ;;  %v1892_v2 = vadd.f32 %v6436_v28, %v7006_v48  ;;  %v3084_v48 = vpop.f32.mrf.mxu3 }
 0x53a   :  { %v1989_v7 = vmul.f32 %v6464_v14, %v1892_v2  ;;  %v2412_v14 = vadd.f32 %v6477_v59, %v6228_v45  ;;  %v2415_v45 = vadd.f32 %v6477_v59, %v6241_v39 }
 0x53e   :  { %v2974_v41 = vpop.permute.xlu1 %2973  ;;  %3885 = vset.pattern.permute.xlu1 %v6926_v4 }
 0x53f   :  { %v3000_v11 = vmul.f32 %v2974_v41, %v2913_v29  ;;  %v7008_v41 = vld [vmem:[#allocation59_spill] sm:$0xff] }
 0x540   :  { %3883 = vset.pattern.permute.xlu2 %v6960_v12 }
 0x541   :  { %v3016_v37 = vadd.f32 %v3000_v11, %v2847_v56  ;;  %v1967_v33 = vpop.permute.xlu2 %1966  ;;  %3094 = vperm.xlu2 %3883, %v6985_v5   ;;  %v7007_v56 = vld [vmem:[#allocation60_spill] sm:$0xff] }
 0x542   :  { %v2077_v47 = vadd.f32 %v6401_v51, %v7007_v56 }
 0x543   :  { %v6548_v10 = vadd.f32 %v3169_v36, %v3016_v37  ;;  %v2243_v36 = vadd.f32 %v6485_v46, %v6006_v53 }
 0x545   :  { %v2326_v42 = vmul.f32 %v6422_v6, %v2243_v36  ;;  %v3087_v6 = vpop.f32.mrf.mxu3 }
 0x547   :  { %v1962_v0 = vpop.permute.xlu1 %1961 }
 0x548   :  { %v1987_v15 = vmul.f32 %v1962_v0, %v1886_v23  ;;  %v2246_v23 = vadd.f32 %v6485_v46, %v6028_v60  ;;  %v2580_v60 = vpop.f32.mrf.mxu1 }
 0x549   :  { %3886 = vset.pattern.permute.xlu2 %v6926_v4 }
 0x54a   :  { %v2172_v12 = vadd.f32 %v2156_v1, %v1987_v15  ;;  %v2813_v18 = vpop.permute.xlu2 %2812  ;;  %v2746_v15 = vpop.f32.mrf.mxu2 }
 0x54b   :  { %v2747_v39 = vadd.f32 %v6534_v38, %v2746_v15 }
 0x54c   :  { %v2341_v17 = vadd.f32 %v6497_v22, %v2172_v12  ;;  %v1889_v22 = vadd.f32 %v6436_v28, %v7008_v41 }
 0x54e   :  { %v6557_v32 = vadd.f32 %v2494_v20, %v2341_v17  ;;  %v7009_v20 = vld [vmem:[#allocation41_spill] sm:$0xff]  ;;  %v1988_v37 = vmul.f32 %v1967_v33, %v1889_v22  ;;  %v2915_v17 = vpop.f32.mrf.mxu0 }
 0x54f   :  { %v2074_v21 = vadd.f32 %v6401_v51, %v7009_v20  ;;  %v2495_v51 = vmul.f32 %v6442_v58, %v2412_v14  ;;  %v3058_v58 = vadd.f32 %v6323_v44, %v6315_v27 }
 0x550   :  { %v2640_v5 = vpop.permute.xlu1 %2639 }
 0x552   :  { %v2749_v46 = vpop.f32.mrf.mxu2 }
 0x553   :  { %v6559_v54 = vpop.permute.xlu2 %2981 }
 0x559   :  { %v2809_v52 = vpop.permute.xlu1 %2808 }
 0x55a   :  { %v2752_v59 = vpop.f32.mrf.mxu2 }
 0x55c   :  { %v2141_v40 = vpop.permute.xlu2 %2140 }
 0x55d   :  { %v2158_v4 = vmul.f32 %v2141_v40, %v2077_v47  ;;  %v2918_v47 = vpop.f32.mrf.mxu0 }
 0x55e   :  { %v2919_v15 = vadd.f32 %v6140_v63, %v2918_v47 }
 0x55f   :  { %v2174_v29 = vadd.f32 %v2158_v4, %v1989_v7  ;;  %v2581_v4 = vadd.f32 %v6419_v34, %v2580_v60  ;;  %v3920_v60 = vld [vmem:[%s6700_s18 + $0x6] ss:$0 sm:$0xff] }
 0x562   :  { %v2137_v11 = vpop.permute.xlu1 %2136 }
 0x563   :  { %v2157_v8 = vmul.f32 %v2137_v11, %v2074_v21  ;;  %v2583_v21 = vpop.f32.mrf.mxu1  ;;  %v2578_v11 = vadd.f32 %v6419_v34, %v2577_v50 }
 0x565   :  { %v2173_v0 = vadd.f32 %v2157_v8, %v1988_v37  ;;  %v2310_v28 = vpop.permute.xlu2 %2309  ;;  %v2750_v37 = vadd.f32 %v6534_v38, %v2749_v46  ;;  %v2584_v8 = vadd.f32 %v6419_v34, %v2583_v21  ;;  %v2663_v14 = vmul.f32 %v2640_v5, %v2578_v11 }
 0x566   :  { %v2327_v1 = vmul.f32 %v2310_v28, %v2246_v23  ;;  %v2921_v23 = vpop.f32.mrf.mxu0  ;;  %v3090_v28 = vpop.f32.mrf.mxu3 }
 0x567   :  { %v2342_v12 = vadd.f32 %v2326_v42, %v2173_v0  ;;  %v2753_v0 = vadd.f32 %v6534_v38, %v2752_v59  ;;  %v3091_v46 = vadd.f32 %v6323_v44, %v3090_v28 }
 0x568   :  { %v2343_v53 = vadd.f32 %v2327_v1, %v2174_v29  ;;  %v2833_v1 = vmul.f32 %v2813_v18, %v2750_v37  ;;  %v2916_v18 = vadd.f32 %v3920_v60, %v2915_v17  ;;  %v2930_v37 = vpop.permute.xlu0 %2929 }
 0x569   :  { %v2511_v33 = vadd.f32 %v2495_v51, %v2342_v12  ;;  %v2832_v51 = vmul.f32 %v2809_v52, %v2747_v39  ;;  %v2922_v12 = vadd.f32 %v6140_v63, %v2921_v23  ;;  %v3088_v52 = vadd.f32 %v6323_v44, %v3087_v6 }
 0x56a   :  { %v2886_v6 = vadd.f32 %v3920_v60, %v6102_v19 }
 0x56b   :  { %v2644_v2 = vpop.permute.xlu1 %2643  ;;  %v3003_v47 = vmul.f32 %v6489_v49, %v2922_v12 }
 0x56c   :  { %v2664_v22 = vmul.f32 %v2644_v2, %v2581_v4 }
 0x56e   :  { %v2817_v56 = vpop.permute.xlu2 %2816  ;;  %v2680_v27 = vadd.f32 %v2664_v22, %v2511_v33 }
 0x56f   :  { %v2834_v2 = vmul.f32 %v2817_v56, %v2753_v0 }
 0x570   :  { %v2849_v34 = vadd.f32 %v2833_v1, %v2680_v27  ;;  %v7014_v1 = vld [vmem:[#allocation57_spill] sm:$0xff] }
 0x574   :  { %v2479_v40 = vpop.permute.xlu1 %2478 }
 0x575   :  { %v2496_v7 = vmul.f32 %v2479_v40, %v2415_v45  ;;  %v3172_v40 = vmul.f32 %v6504_v25, %v3091_v46 }
 0x577   :  { %v2512_v41 = vadd.f32 %v2496_v7, %v2343_v53  ;;  %v3111_v29 = vpop.permute.xlu2 %3110  ;;  %v2679_v53 = vadd.f32 %v2663_v14, %v6557_v32  ;;  %v3001_v7 = vmul.f32 %v6524_v62, %v2916_v18 }
 0x578   :  { %v3161_v20 = vmul.f32 %v3111_v29, %v3058_v58  ;;  %v3085_v58 = vadd.f32 %v6323_v44, %v3084_v48 }
 0x579   :  { %v2848_v45 = vadd.f32 %v2832_v51, %v2679_v53 }
 0x57a   :  { %v6585_v36 = vadd.f32 %v3161_v20, %v6150_v9  ;;  %v2883_v9 = vadd.f32 %v6140_v63, %v6082_v26  ;;  %v3002_v63 = vmul.f32 %v6559_v54, %v2919_v15  ;;  %v7010_v20 = vld [vmem:[#allocation27_spill] sm:$0xff]  ;;  %v3170_v21 = vmul.f32 %v6539_v61, %v3085_v58  ;;  %v7017_v15 = vld [vmem:[#allocation26_spill] sm:$0xff] }
 0x57b   :  { %v3017_v49 = vadd.f32 %v3001_v7, %v2848_v45  ;;  %v2880_v61 = vadd.f32 %v3920_v60, %v6063_v57  ;;  %v3055_v57 = vadd.f32 %v6323_v44, %v7014_v1  ;;  %v7023_v7 = vmov 1.0   ;;  %v3348_v58 = vld [vmem:[#allocation10 + $0x58] sm:$0xff]  ;;  %v3338_v1 = vld [vmem:[#allocation10 + $0x8] sm:$0xff] }
 0x57c   :  { %v3018_v17 = vadd.f32 %v3002_v63, %v2849_v34  ;;  %v7018_v34 = vld [vmem:[#allocation43_spill] sm:$0xff] }
 0x57d   :  { %v2648_v42 = vpop.permute.xlu1 %2647  ;;  %v3186_v19 = vadd.f32 %v3170_v21, %v3017_v49  ;;  %v2989_v27 = vmul.f32 %v2930_v37, %v2880_v61  ;;  %v3276_v49 = vpop.f32.mrf.mxu2  ;;  %v3344_v21 = vld [vmem:[#allocation10 + $0x38] sm:$0xff] }
 0x57e   :  { %v2665_v50 = vmul.f32 %v2648_v42, %v2584_v8  ;;  %v7013_v42 = vld [vmem:[#allocation17_spill] sm:$0xff] }
 0x580   :  { %v2681_v5 = vadd.f32 %v2665_v50, %v2512_v41  ;;  %v2934_v33 = vpop.permute.xlu2 %2933  ;;  %v3171_v41 = vmul.f32 %v6452_v24, %v3088_v52  ;;  %v7011_v24 = vld [vmem:[#allocation46_spill] sm:$0xff] }
 0x581   :  { %v2990_v26 = vmul.f32 %v2934_v33, %v2883_v9  ;;  %v2711_v59 = vadd.f32 %v6534_v38, %v7011_v24  ;;  %v7020_v33 = vld [vmem:[#allocation16_spill] sm:$0xff] }
 0x582   :  { %v2850_v32 = vadd.f32 %v2834_v2, %v2681_v5  ;;  %v3187_v25 = vadd.f32 %v3171_v41, %v3018_v17  ;;  %v3353_v5 = vld [vmem:[%s7019_s6] sm:$0xff]  ;;  %v3351_v17 = vld [vmem:[#allocation10 + $0x70] sm:$0xff]  ;;  %v3342_v24 = vld [vmem:[#allocation10 + $0x28] sm:$0xff] }
 0x583   :  { %v6604_v56 = vadd.f32 %v2990_v26, %v6068_v3  ;;  %v2708_v3 = vadd.f32 %v6534_v38, %v7010_v20  ;;  %v7021_v26 = vld [vmem:[#allocation22_spill] sm:$0xff]  ;;  %v3347_v41 = vld [vmem:[#allocation10 + $0x50] sm:$0xff]  ;;  %v3345_v20 = vld [vmem:[#allocation10 + $0x40] sm:$0xff] }
 0x584   :  { %v3019_v4 = vadd.f32 %v3003_v47, %v2850_v32  ;;  %v3049_v47 = vadd.f32 %v6323_v44, %v7021_v26 }
 0x585   :  { %v3279_v37 = vpop.f32.mrf.mxu2 }
 0x586   :  { %v2938_v29 = vpop.permute.xlu1 %2937  ;;  %v3188_v54 = vadd.f32 %v3172_v40, %v3019_v4  ;;  %v7022_v40 = vld [vmem:[#allocation36_spill] sm:$0xff]  ;;  %v7024_v4 = vld [vmem:[#allocation38_spill] sm:$0xff] }
 0x587   :  { %v2991_v22 = vmul.f32 %v2938_v29, %v2886_v6  ;;  %v3349_v6 = vld [vmem:[#allocation10 + $0x60] sm:$0xff] }
 0x588   :  { %3198 = vmatpush.msrb.mxu1 %v3188_v54 }
 0x589   :  { %v3007_v62 = vadd.f32 %v2991_v22, %v6109_v55  ;;  %v2757_v11 = vpop.permute.xlu2 %2756  ;;  %v7012_v55 = vld [vmem:[#allocation34_spill] sm:$0xff]  ;;  %v3346_v22 = vld [vmem:[#allocation10 + $0x48] sm:$0xff] }
 0x58a   :  { %v2819_v39 = vmul.f32 %v2757_v11, %v2708_v3  ;;  %3199 = vmatpush.msrb.mxu1 %v3187_v25  ;;  %v2877_v14 = vadd.f32 %v3920_v60, %v7012_v55  ;;  %v3052_v60 = vadd.f32 %v6323_v44, %v7020_v33  ;;  %v3913_v33 = vld [vmem:[#allocation4] ss:$0 sm:$0xff] }
 0x58c   :  { %v2835_v48 = vadd.f32 %v2819_v39, %v6529_v30  ;;  %3200 = vmatpush.msrb.mxu1 %v3186_v19  ;;  %v3907_v39 = vld [vmem:[%s6702_s20] ss:$0 sm:$0xff] }
 0x58e   :  { %3201 = vmatpush.msrb.mxu1 %v6548_v10 }
 0x58f   :  { %v2761_v8 = vpop.permute.xlu1 %2760 }
 0x590   :  { %v2820_v23 = vmul.f32 %v2761_v8, %v2711_v59  ;;  %3202 = vmatpush.msrb.mxu1 %v6511_v16  ;;  %v3227_v16 = vld [vmem:[%s6834_s12] sm:$0xff] }
 0x591   :  { %3231 = vperm.xlu1 %3885, %v3227_v16   ;;  %v3341_v8 = vld [vmem:[#allocation10 + $0x20] sm:$0xff] }
 0x592   :  { %v2836_v0 = vadd.f32 %v2820_v23, %v7013_v42  ;;  %v2926_v28 = vpop.permute.xlu2 %2925  ;;  %3203 = vmatpush.msrb.mxu1 %v6456_v35  ;;  %v3228_v35 = vld [vmem:[%s6834_s12 + $0x8] sm:$0xff]  ;;  %v3908_v23 = vld [vmem:[%s6703_s21] ss:$0 sm:$0xff]  ;;  %v3339_v42 = vld [vmem:[#allocation10 + $0x10] sm:$0xff] }
 0x593   :  { %v2988_v30 = vmul.f32 %v2926_v28, %v2877_v14  ;;  %3236 = vperm.xlu0 %3884, %v3228_v35   ;;  %v3340_v14 = vld [vmem:[#allocation10 + $0x18] sm:$0xff]  ;;  %v7026_v28 = vmov 0.0   ;;  %v3337_v35 = vld [vmem:[#allocation10] sm:$0xff] }
 0x594   :  { %3204 = vmatpush.msrb.mxu1 %v6392_v31  ;;  %v3005_v38 = vadd.f32 %v2989_v27, %v2836_v0  ;;  %v3305_v31 = vld [vmem:[%s7015_s22] sm:$0xff] }
 0x595   :  { %v3004_v10 = vadd.f32 %v2988_v30, %v2835_v48  ;;  %3308 = vperm.xlu2 %3886, %v3305_v31   ;;  %v3909_v48 = vld [vmem:[%s7025_s16] ss:$0 sm:$0xff] }
 0x596   :  { %3205 = vmatpush.msrb.mxu1 %v6380_v43  ;;  %v7016_v43 = vld [vmem:[#allocation55_spill] sm:$0xff]  ;;  %vm3302_vm9 = vcmp.eq.s32.totalorder %v3909_v48, %v7022_v40 }
 0x597   :  { %v3046_v9 = vadd.f32 %v6323_v44, %v7016_v43  ;;  %v3350_v44 = vld [vmem:[#allocation10 + $0x68] sm:$0xff]  ;;  %v3675_v30 = vsel %vm3302_vm9, 1.0, %v7026_v28 }
 0x598   :  { %v3107_v51 = vpop.permute.xlu1 %3106  ;;  %3206 = vmatpush.msrb.mxu1 %v6366_v13 }
 0x599   :  { %v3160_v50 = vmul.f32 %v3107_v51, %v3055_v57  ;;  %3357 = vperm.xlu1 %3885, %v3353_v5  }
 0x59a   :  { %3207 = vmatpush.msrb.mxu1 %v7017_v15  ;;  %v3911_v15 = vld [vmem:[%s6706_s24] ss:$0 sm:$0xff] }
 0x59b   :  { %v3176_v13 = vadd.f32 %v3160_v50, %v3007_v62  ;;  %v3095_v12 = vpop.permute.xlu2 %3094  ;;  %v3343_v62 = vld [vmem:[#allocation10 + $0x30] sm:$0xff]  ;;  %v3910_v50 = vld [vmem:[%s6705_s23] ss:$0 sm:$0xff] }
 0x59c   :  { %v3157_v53 = vmul.f32 %v3095_v12, %v3046_v9  ;;  %3208 = vmatpush.msrb.mxu1 %v7018_v34  ;;  %v3912_v34 = vld [vmem:[%s6707_s25] ss:$0 sm:$0xff] }
 0x59e   :  { %v3173_v2 = vadd.f32 %v3157_v53, %v3004_v10  ;;  %3209 = vmatpush.msrb.mxu1 %v6585_v36  ;;  %v3906_v36 = vld [vmem:[%s6908_s11] ss:$0 sm:$0xff] }
 0x59f   :  { %vm3190_vm3 = vcmp.eq.s32.totalorder %v3906_v36, %v7022_v40  ;;  %vm3191_vm8 = vcmp.eq.s32.totalorder %v3906_v36, %v7024_v4 }
 0x5a0   :  { %v3103_v18 = vpop.permute.xlu1 %3102  ;;  %3210 = vmatpush.msrb.mxu1 %v3176_v13 }
 0x5a1   :  { %v3159_v52 = vmul.f32 %v3103_v18, %v3052_v60 }
 0x5a3   :  { %v3175_v46 = vadd.f32 %v3159_v52, %v6604_v56  ;;  %v3352_v56 = vld [vmem:[#allocation10 + $0x78] sm:$0xff] }
 0x5a4   :  { %3364 = vmatpush.msra.mxu2 %v3352_v56 }
 0x5a5   :  { %3211 = vmatpush.msrb.mxu1 %v3175_v46 }
 0x5a6   :  { %3365 = vmatpush.msra.mxu2 %v3351_v17 }
 0x5a8   :  { %v3099_v63 = vpop.permute.xlu1 %3098  ;;  %3366 = vmatpush.msra.mxu2 %v3350_v44 }
 0x5a9   :  { %v3158_v45 = vmul.f32 %v3099_v63, %v3049_v47 }
 0x5aa   :  { %3367 = vmatpush.msra.mxu2 %v3349_v6 }
 0x5ab   :  { %v3174_v32 = vadd.f32 %v3158_v45, %v3005_v38 }
 0x5ac   :  { %3368 = vmatpush.msra.mxu2 %v3348_v58 }
 0x5ad   :  { %3212 = vmatpush.msrb.mxu1 %v3174_v32 }
 0x5ae   :  { %3369 = vmatpush.msra.mxu2 %v3347_v41 }
 0x5af   :  { %3213 = vmatpush.msrb.mxu1 %v3173_v2 }
 0x5b0   :  { %3673 = vmatmul.msk.f32.vlgmr.msrb.gmra.mxu1 %vm3190_vm3, %v7023_v7  ;;  %3370 = vmatpush.msra.mxu2 %v3346_v22 }
 0x5b2   :  { %3371 = vmatpush.msra.mxu2 %v3345_v20 }
 0x5b4   :  { %3372 = vmatpush.msra.mxu2 %v3344_v21 }
 0x5b6   :  { %3373 = vmatpush.msra.mxu2 %v3343_v62 }
 0x5b8   :  { %3674 = vmatmul.msk.f32.gmra.mxu1 %vm3191_vm8, %v7023_v7  ;;  %3374 = vmatpush.msra.mxu2 %v3342_v24 }
 0x5ba   :  { %3375 = vmatpush.msra.mxu2 %v3341_v8 }
 0x5bc   :  { %3376 = vmatpush.msra.mxu2 %v3340_v14 }
 0x5be   :  { %3377 = vmatpush.msra.mxu2 %v3339_v42 }
 0x5c0   :  { %3378 = vmatpush.msra.mxu2 %v3338_v1 }
 0x5c2   :  { %3379 = vmatpush.msra.mxu2 %v3337_v35 }
 0x5ef   :  { %v3309_v38 = vpop.permute.xlu2 %3308 }
 0x5f0   :  { %v3311_v51 = vmul.f32 %v3675_v30, %v3309_v38 }
 0x603   :  { %v3232_v29 = vpop.permute.xlu1 %3231 }
 0x605   :  { %v3237_v25 = vpop.permute.xlu0 %3236 }
 0x60b   :  { %v3358_v43 = vpop.permute.xlu1 %3357 }
 0x60c   :  { %v3363_v9 = vmul.f32 %v3910_v50, %v3358_v43 }
 0x62d   :  { %v3215_v54 = vpop.f32.mrf.mxu1 }
 0x62e   :  { %v3239_v3 = vmul.f32 %v3232_v29, %v3215_v54 }
 0x630   :  { %v3282_v11 = vadd.f32 %v3276_v49, %v3239_v3 }
 0x632   :  { %v3288_v61 = vmul.f32 %v3907_v39, %v3282_v11 }
 0x634   :  { %v3294_v10 = vadd.f32 %v3908_v23, %v3288_v61 }
 0x635   :  { %v3218_v19 = vpop.f32.mrf.mxu1 }
 0x636   :  { %v3240_v59 = vmul.f32 %v3237_v25, %v3218_v19  ;;  %v3296_v16 = vmax.f32 %v3294_v10, 0.0 }
 0x638   :  { %v3283_v55 = vadd.f32 %v3279_v37, %v3240_v59 }
 0x63a   :  { %v3289_v27 = vmul.f32 %v3907_v39, %v3283_v55 }
 0x63c   :  { %v3295_v0 = vadd.f32 %v3908_v23, %v3289_v27 }
 0x63e   :  { %v3297_v57 = vmax.f32 %v3295_v0, 0.0 }
 0x640   :  { %3331 = vmatpush.msra.mxu1 %v3297_v57 }
 0x642   :  { %3332 = vmatpush.msra.mxu1 %v3296_v16 }
 0x643   :  { %3676 = vmatmul.msk.f32.vlgmr.msra.gmra.mxu1 %vm425_vm0, %v3311_v51  ;;  %vm3402_vm0 = vcmask 7168  }
 0x6c0   :  { %v3334_v31 = vpop.f32.mrf.mxu1 }
 0x6c1   :  { %3380 = vmatmul.f32.vlgmr.msra.gmra.mxu2 %v3334_v31 }
 0x744   :  { %v3381_v13 = vpop.f32.mrf.mxu2 }
 0x745   :  { %v3382_v12 = vadd.f32 %v3381_v13, %v3363_v9 }
 0x747   :  { %v3388_v53 = vadd.f32 %v3911_v15, %v3382_v12 }
 0x749   :  { %v3389_v2 = vmax.f32 %v3388_v53, 0.0 }
 0x74b   :  { %v3394_v5 = vmul.f32 %v3912_v34, %v3389_v2 }
 0x74d   :  { %3395 = vadd.xlane.f32.xlu2 %v3394_v5 }
 0x7c0   :  { %v3396_v60 = vpop.xlane.xlu2 %3395 }
 0x7c1   :  { %v3401_v18 = vadd.f32 %v3913_v33, %v3396_v60 }
 0x7c3   :  { %3403 = vst.msk [vmem:[%s6709_s27] sm:$0xff] %vm3402_vm0, %v3401_v18 }
 0x7c4   :  { %3408 = vsyncpa [#allocation6], 1 }
 0x7c5   :  { %3409 = vsyncpa [#allocation8], 1 }
 0x7c6   :  { %3410 = vsyncpa [#allocation11], 1 }

</bundles_post_ra>
